<compile_context>
chip_gen: v7x
topology: tpu7x:2x2x1
jax: 0.10.0
libtpu: 0.0.40
codegen_flags: <defaults>
</compile_context>

<pallas_src>
import jax
import jax.numpy as jnp
from jax import lax
from jax.experimental import pallas as pl
from jax.experimental.pallas import tpu as pltpu


# ----------------------------------------------------------------------------
# Fused MFAM0 kernel (one batch image per grid step, channels-major layout).
# ----------------------------------------------------------------------------
def _make_mfam0_kernel(H, W, C, P):
    HW = H * W

    def kernel(x_ref, w1_ref, b1_ref, w2_ref, b2_ref, w15_ref,
               bn_s_ref, bn_b_ref, o_ref, patch_ref, buf_ref):
        # Column-edge validity masks (lane constants, broadcast over C sublanes).
        # Row padding is handled automatically by the flat zero halo.
        flat = lax.broadcasted_iota(jnp.int32, (1, HW), 1)
        col = (flat & (W - 1)) if (W & (W - 1)) == 0 else (flat % W)
        col_mask = {}
        for dj in (-2, -1, 1, 2):
            col_mask[dj] = (col < (W - dj)) if dj > 0 else (col >= -dj)

        # Zero ONLY the two halo strips (tiny), every step (megacore-safe).
        zpad = jnp.zeros((C, P), jnp.bfloat16)
        buf_ref[:, 0:P] = zpad
        buf_ref[:, P + HW:P + HW + P] = zpad

        def build_patch(ksize):
            # patch[(ki*ks+kj)*C + cin, f] = img[cin, r+di, c+dj] (SAME-padded),
            # each tap = ONE static lane-offset slice of the flat halo'd buffer
            # + a column-edge mask.  Stores are lane-dense (HW = 256 lanes).
            r0 = (ksize - 1) // 2
            for ki in range(ksize):
                for kj in range(ksize):
                    di, dj = ki - r0, kj - r0
                    a = P + di * W + dj
                    tap = buf_ref[:, a:a + HW]
                    if dj != 0:
                        tap = jnp.where(col_mask[dj], tap, jnp.zeros_like(tap))
                    idx = ki * ksize + kj
                    patch_ref[idx * C:(idx + 1) * C, :] = tap

        # ---- stage 1: x_3_1 / x_5_1 (3x3 zero-padded to 5x5, merged) ----------
        x = x_ref[...]                                    # (C, HW) f32, residual later
        buf_ref[:, P:P + HW] = x.astype(jnp.bfloat16)     # single bf16 cast of x
        build_patch(5)
        y1 = jnp.dot(w1_ref[...], patch_ref[...],
                     preferred_element_type=jnp.float32)  # (2C, HW)
        y1 = jnp.maximum(y1 + b1_ref[...], 0.0)
        s = y1[:C, :] + y1[C:, :]                         # x_3_1 + x_5_1

        # ---- stage 2: x_3_2 / x_5_2 on s (same merged conv) --------------------
        buf_ref[:, P:P + HW] = s.astype(jnp.bfloat16)     # single bf16 cast of s
        build_patch(5)
        y2 = jnp.dot(w2_ref[...], patch_ref[...],
                     preferred_element_type=jnp.float32)
        y2 = jnp.maximum(y2 + b2_ref[...], 0.0)
        t = y2[:C, :] * y2[C:, :] + s                     # x32*x52 + (x31+x51)

        # ---- stage 3: conv_1_5 (3x3, BN folded) + residual + ReLU --------------
        buf_ref[:, P:P + HW] = t.astype(jnp.bfloat16)     # single bf16 cast of t
        build_patch(3)                                    # reuses first 9C patch rows
        y3 = jnp.dot(w15_ref[...], patch_ref[0:9 * C, :],
                     preferred_element_type=jnp.float32)  # (C, HW)
        y3 = y3 * bn_s_ref[...] + bn_b_ref[...]
        o_ref[...] = jnp.maximum(x + y3, 0.0).astype(o_ref.dtype)

    return kernel


# ----------------------------------------------------------------------------
# Weight plumbing (one-time, in the wrapper).
# ----------------------------------------------------------------------------
def _oihw_to_rowmat(w):
    # (Cout, Cin, K, K) -> (Cout, K*K*Cin), column order (ki*K+kj)*Cin + cin,
    # matching the patch row order built in the kernel.
    Cout, Cin, K, _ = w.shape
    return jnp.transpose(w, (0, 2, 3, 1)).reshape(Cout, K * K * Cin)


def _pad3_to_5(w3):
    # Zero-pad a (Cout, Cin, 3, 3) kernel to 5x5: exact (extra taps hit zeros).
    return jnp.pad(w3, ((0, 0), (0, 0), (1, 1), (1, 1)))


@jax.jit
def mfam0_forward(x, p):
    """x: (B, C, H, W) float32 (NCHW, as in PyTorch) -> (B, C, H, W)."""
    B, C, H, W = x.shape
    HW = H * W
    P = 2 * W + 2                      # flat halo covering |di|<=2 rows, |dj|<=2 cols

    # Merged bf16 weights: rows [0:C] = 3x3 branch, [C:2C] = 5x5 branch.
    w1 = jnp.concatenate([_oihw_to_rowmat(_pad3_to_5(p["w31"])),
                          _oihw_to_rowmat(p["w51"])], axis=0).astype(jnp.bfloat16)
    w2 = jnp.concatenate([_oihw_to_rowmat(_pad3_to_5(p["w32"])),
                          _oihw_to_rowmat(p["w52"])], axis=0).astype(jnp.bfloat16)
    w15 = _oihw_to_rowmat(p["w15"]).astype(jnp.bfloat16)

    b1 = jnp.concatenate([p["b31"], p["b51"]]).reshape(2 * C, 1).astype(jnp.float32)
    b2 = jnp.concatenate([p["b32"], p["b52"]]).reshape(2 * C, 1).astype(jnp.float32)
    bn_s = p["bn_scale"].reshape(C, 1).astype(jnp.float32)
    bn_b = p["bn_shift"].reshape(C, 1).astype(jnp.float32)

    xf = x.reshape(B, C, HW)           # free reshape: HW already contiguous per channel

    kernel = _make_mfam0_kernel(H, W, C, P)
    out = pl.pallas_call(
        kernel,
        out_shape=jax.ShapeDtypeStruct((B, C, HW), x.dtype),
        grid=(B,),
        in_specs=[
            pl.BlockSpec((None, C, HW), lambda b: (b, 0, 0)),   # x (one image)
            pl.BlockSpec((2 * C, 25 * C), lambda b: (0, 0)),    # merged w, stage 1
            pl.BlockSpec((2 * C, 1), lambda b: (0, 0)),         # merged bias 1
            pl.BlockSpec((2 * C, 25 * C), lambda b: (0, 0)),    # merged w, stage 2
            pl.BlockSpec((2 * C, 1), lambda b: (0, 0)),         # merged bias 2
            pl.BlockSpec((C, 9 * C), lambda b: (0, 0)),         # conv_1_5 weight
            pl.BlockSpec((C, 1), lambda b: (0, 0)),             # BN scale (folded)
            pl.BlockSpec((C, 1), lambda b: (0, 0)),             # BN shift (folded)
        ],
        out_specs=pl.BlockSpec((None, C, HW), lambda b: (b, 0, 0)),
        scratch_shapes=[
            pltpu.VMEM((25 * C, HW), jnp.bfloat16),      # im2col patches (5x5 & 3x3)
            pltpu.VMEM((C, HW + 2 * P), jnp.bfloat16),   # flat halo'd image (x/s/t)
        ],
        compiler_params=pltpu.CompilerParams(
            dimension_semantics=("parallel",)),
    )(xf, w1, b1, w2, b2, w15, bn_s, bn_b)

    return out.reshape(B, C, H, W)


# ----------------------------------------------------------------------------
# Pure-JAX reference: same math, same bf16-input / f32-accumulation conv path.
# ----------------------------------------------------------------------------
def _conv_ref(x, w, pad):
    return lax.conv_general_dilated(
        x.astype(jnp.bfloat16), w.astype(jnp.bfloat16), (1, 1),
        [(pad, pad), (pad, pad)],
        dimension_numbers=("NCHW", "OIHW", "NCHW"),
        preferred_element_type=jnp.float32)


def mfam0_ref(x, p):
    def cb(v):
        return v.reshape(1, -1, 1, 1)
    x31 = jnp.maximum(_conv_ref(x, p["w31"], 1) + cb(p["b31"]), 0.0)
    x51 = jnp.maximum(_conv_ref(x, p["w51"], 2) + cb(p["b51"]), 0.0)
    s = x31 + x51
    x32 = jnp.maximum(_conv_ref(s, p["w32"], 1) + cb(p["b32"]), 0.0)
    x52 = jnp.maximum(_conv_ref(s, p["w52"], 2) + cb(p["b52"]), 0.0)
    t = x32 * x52 + s
    y = _conv_ref(t, p["w15"], 1) * cb(p["bn_scale"]) + cb(p["bn_shift"])
    return jnp.maximum(x + y, 0.0)


# ----------------------------------------------------------------------------
# Deterministic parameter init (fresh-module semantics, OIHW like PyTorch).
# ----------------------------------------------------------------------------
def init_params(key, C):
    ks = jax.random.split(key, 9)

    def w(k, K):
        return jax.random.normal(k, (C, C, K, K), jnp.float32) * 0.05

    def b(k):
        return jax.random.normal(k, (C,), jnp.float32) * 0.1

    eps = 1e-5
    gamma = jnp.ones((C,), jnp.float32)
    beta = jnp.zeros((C,), jnp.float32)
    run_mean = jnp.zeros((C,), jnp.float32)
    run_var = jnp.ones((C,), jnp.float32)
    bn_scale = gamma / jnp.sqrt(run_var + eps)
    bn_shift = beta - run_mean * bn_scale

    return {
        "w31": w(ks[0], 3), "b31": b(ks[1]),
        "w51": w(ks[2], 5), "b51": b(ks[3]),
        "w32": w(ks[4], 3), "b32": b(ks[5]),
        "w52": w(ks[6], 5), "b52": b(ks[7]),
        "w15": w(ks[8], 3),                       # BasicConv2d: bias=False
        "bn_scale": bn_scale, "bn_shift": bn_shift,
    }


if __name__ == "__main__":
    key = jax.random.PRNGKey(0)
    k_x, k_p = jax.random.split(key)

    # MFAM0 forward requires in_channels == out_channels.
    B, C, H, W = 2, 32, 16, 16
    x = jax.random.normal(k_x, (B, C, H, W), jnp.float32)    # NCHW, like PyTorch
    params = init_params(k_p, C)

    out = jax.block_until_ready(mfam0_forward(x, params))
    ref = mfam0_ref(x, params)

    assert out.shape == (B, C, H, W), out.shape
    if not jnp.allclose(out, ref, atol=5e-2, rtol=5e-2):
        raise AssertionError(
            f"mismatch vs reference, max abs err={float(jnp.max(jnp.abs(out - ref)))}")
    print("KERNEL_OK")
</pallas_src>

<mosaic_0001>
module attributes {stable_mosaic.version = 11 : i64} {
  func.func @kernel(%arg0: i32, %arg1: memref<1x32x256xf32, #tpu.memory_space<vmem>>, %arg2: memref<64x800xbf16, #tpu.memory_space<vmem>>, %arg3: memref<64x1xf32, #tpu.memory_space<vmem>>, %arg4: memref<64x800xbf16, #tpu.memory_space<vmem>>, %arg5: memref<64x1xf32, #tpu.memory_space<vmem>>, %arg6: memref<32x288xbf16, #tpu.memory_space<vmem>>, %arg7: memref<32x1xf32, #tpu.memory_space<vmem>>, %arg8: memref<32x1xf32, #tpu.memory_space<vmem>>, %arg9: memref<1x32x256xf32, #tpu.memory_space<vmem>>, %arg10: memref<800x256xbf16, #tpu.memory_space<vmem>>, %arg11: memref<32x324xbf16, #tpu.memory_space<vmem>>) attributes {dimension_semantics = [#tpu.dimension_semantics<parallel>], iteration_bounds = array<i64: 2>, scalar_prefetch = 0 : i64, scratch_operands = 2 : i64, tpu.core_type = #tpu.core_type<tc>, window_params = [{transform_indices = @transform_0, window_bounds = array<i64: 1, 32, 256>}, {pipeline_mode = #tpu.pipeline_mode<synchronous>, transform_indices = @transform_1, window_bounds = array<i64: 64, 800>}, {pipeline_mode = #tpu.pipeline_mode<synchronous>, transform_indices = @transform_2, window_bounds = array<i64: 64, 1>}, {pipeline_mode = #tpu.pipeline_mode<synchronous>, transform_indices = @transform_3, window_bounds = array<i64: 64, 800>}, {pipeline_mode = #tpu.pipeline_mode<synchronous>, transform_indices = @transform_4, window_bounds = array<i64: 64, 1>}, {pipeline_mode = #tpu.pipeline_mode<synchronous>, transform_indices = @transform_5, window_bounds = array<i64: 32, 288>}, {pipeline_mode = #tpu.pipeline_mode<synchronous>, transform_indices = @transform_6, window_bounds = array<i64: 32, 1>}, {pipeline_mode = #tpu.pipeline_mode<synchronous>, transform_indices = @transform_7, window_bounds = array<i64: 32, 1>}, {transform_indices = @transform_8, window_bounds = array<i64: 1, 32, 256>}]} {
    %0 = tpu.iota {dimensions = array<i32: 1>} : vector<1x256xi32>
    %c15_i32 = arith.constant 15 : i32
    %1 = vector.broadcast %c15_i32 : i32 to vector<1x256xi32>
    %2 = arith.andi %0, %1 : vector<1x256xi32>
    %c2_i32 = arith.constant 2 : i32
    %3 = vector.broadcast %c2_i32 : i32 to vector<1x256xi32>
    %4 = arith.cmpi sge, %2, %3 : vector<1x256xi32>
    %c1_i32 = arith.constant 1 : i32
    %5 = vector.broadcast %c1_i32 : i32 to vector<1x256xi32>
    %6 = arith.cmpi sge, %2, %5 : vector<1x256xi32>
    %c15_i32_0 = arith.constant 15 : i32
    %7 = vector.broadcast %c15_i32_0 : i32 to vector<1x256xi32>
    %8 = arith.cmpi slt, %2, %7 : vector<1x256xi32>
    %c14_i32 = arith.constant 14 : i32
    %9 = vector.broadcast %c14_i32 : i32 to vector<1x256xi32>
    %10 = arith.cmpi slt, %2, %9 : vector<1x256xi32>
    %cst = arith.constant 0.000000e+00 : bf16
    %11 = vector.broadcast %cst : bf16 to vector<32x34xbf16>
    %c0 = arith.constant 0 : index
    %c0_1 = arith.constant 0 : index
    %12 = vector.load %arg11[%c0, %c0_1] : memref<32x324xbf16, #tpu.memory_space<vmem>>, vector<32x34xbf16>
    tpu.vector_store %arg11[%c0, %c0_1], %11 {strides = array<i32>} : memref<32x324xbf16, #tpu.memory_space<vmem>>, vector<32x34xbf16>,
    %c0_2 = arith.constant 0 : index
    %c290 = arith.constant 290 : index
    %13 = vector.load %arg11[%c0_2, %c290] : memref<32x324xbf16, #tpu.memory_space<vmem>>, vector<32x34xbf16>
    tpu.vector_store %arg11[%c0_2, %c290], %11 {strides = array<i32>} : memref<32x324xbf16, #tpu.memory_space<vmem>>, vector<32x34xbf16>,
    %c0_3 = arith.constant 0 : index
    %c0_4 = arith.constant 0 : index
    %c0_5 = arith.constant 0 : index
    %14 = vector.load %arg1[%c0_3, %c0_4, %c0_5] : memref<1x32x256xf32, #tpu.memory_space<vmem>>, vector<1x32x256xf32>
    %15 = vector.shape_cast %14 : vector<1x32x256xf32> to vector<32x256xf32>
    %16 = arith.truncf %15 : vector<32x256xf32> to vector<32x256xbf16>
    %c0_6 = arith.constant 0 : index
    %c34 = arith.constant 34 : index
    %17 = vector.load %arg11[%c0_6, %c34] : memref<32x324xbf16, #tpu.memory_space<vmem>>, vector<32x256xbf16>
    tpu.vector_store %arg11[%c0_6, %c34], %16 {strides = array<i32>} : memref<32x324xbf16, #tpu.memory_space<vmem>>, vector<32x256xbf16>,
    %c0_7 = arith.constant 0 : index
    %c0_8 = arith.constant 0 : index
    %18 = vector.load %arg11[%c0_7, %c0_8] : memref<32x324xbf16, #tpu.memory_space<vmem>>, vector<32x256xbf16>
    %cst_9 = arith.constant 0.000000e+00 : bf16
    %19 = vector.broadcast %cst_9 : bf16 to vector<32x256xbf16>
    %20 = vector.shape_cast %4 : vector<1x256xi1> to vector<1x256xi1>
    %21 = vector.broadcast %20 : vector<1x256xi1> to vector<32x256xi1>
    %22 = arith.select %21, %18, %19 : vector<32x256xi1>, vector<32x256xbf16>
    %c0_10 = arith.constant 0 : index
    %c0_11 = arith.constant 0 : index
    %23 = vector.load %arg10[%c0_10, %c0_11] : memref<800x256xbf16, #tpu.memory_space<vmem>>, vector<32x256xbf16>
    tpu.vector_store %arg10[%c0_10, %c0_11], %22 {strides = array<i32>} : memref<800x256xbf16, #tpu.memory_space<vmem>>, vector<32x256xbf16>,
    %c0_12 = arith.constant 0 : index
    %c1 = arith.constant 1 : index
    %24 = vector.load %arg11[%c0_12, %c1] : memref<32x324xbf16, #tpu.memory_space<vmem>>, vector<32x256xbf16>
    %cst_13 = arith.constant 0.000000e+00 : bf16
    %25 = vector.broadcast %cst_13 : bf16 to vector<32x256xbf16>
    %26 = vector.shape_cast %6 : vector<1x256xi1> to vector<1x256xi1>
    %27 = vector.broadcast %26 : vector<1x256xi1> to vector<32x256xi1>
    %28 = arith.select %27, %24, %25 : vector<32x256xi1>, vector<32x256xbf16>
    %c32 = arith.constant 32 : index
    %c0_14 = arith.constant 0 : index
    %29 = vector.load %arg10[%c32, %c0_14] : memref<800x256xbf16, #tpu.memory_space<vmem>>, vector<32x256xbf16>
    tpu.vector_store %arg10[%c32, %c0_14], %28 {strides = array<i32>} : memref<800x256xbf16, #tpu.memory_space<vmem>>, vector<32x256xbf16>,
    %c0_15 = arith.constant 0 : index
    %c2 = arith.constant 2 : index
    %30 = vector.load %arg11[%c0_15, %c2] : memref<32x324xbf16, #tpu.memory_space<vmem>>, vector<32x256xbf16>
    %c64 = arith.constant 64 : index
    %c0_16 = arith.constant 0 : index
    %31 = vector.load %arg10[%c64, %c0_16] : memref<800x256xbf16, #tpu.memory_space<vmem>>, vector<32x256xbf16>
    tpu.vector_store %arg10[%c64, %c0_16], %30 {strides = array<i32>} : memref<800x256xbf16, #tpu.memory_space<vmem>>, vector<32x256xbf16>,
    %c0_17 = arith.constant 0 : index
    %c3 = arith.constant 3 : index
    %32 = vector.load %arg11[%c0_17, %c3] : memref<32x324xbf16, #tpu.memory_space<vmem>>, vector<32x256xbf16>
    %cst_18 = arith.constant 0.000000e+00 : bf16
    %33 = vector.broadcast %cst_18 : bf16 to vector<32x256xbf16>
    %34 = vector.shape_cast %8 : vector<1x256xi1> to vector<1x256xi1>
    %35 = vector.broadcast %34 : vector<1x256xi1> to vector<32x256xi1>
    %36 = arith.select %35, %32, %33 : vector<32x256xi1>, vector<32x256xbf16>
    %c96 = arith.constant 96 : index
    %c0_19 = arith.constant 0 : index
    %37 = vector.load %arg10[%c96, %c0_19] : memref<800x256xbf16, #tpu.memory_space<vmem>>, vector<32x256xbf16>
    tpu.vector_store %arg10[%c96, %c0_19], %36 {strides = array<i32>} : memref<800x256xbf16, #tpu.memory_space<vmem>>, vector<32x256xbf16>,
    %c0_20 = arith.constant 0 : index
    %c4 = arith.constant 4 : index
    %38 = vector.load %arg11[%c0_20, %c4] : memref<32x324xbf16, #tpu.memory_space<vmem>>, vector<32x256xbf16>
    %cst_21 = arith.constant 0.000000e+00 : bf16
    %39 = vector.broadcast %cst_21 : bf16 to vector<32x256xbf16>
    %40 = vector.shape_cast %10 : vector<1x256xi1> to vector<1x256xi1>
    %41 = vector.broadcast %40 : vector<1x256xi1> to vector<32x256xi1>
    %42 = arith.select %41, %38, %39 : vector<32x256xi1>, vector<32x256xbf16>
    %c128 = arith.constant 128 : index
    %c0_22 = arith.constant 0 : index
    %43 = vector.load %arg10[%c128, %c0_22] : memref<800x256xbf16, #tpu.memory_space<vmem>>, vector<32x256xbf16>
    tpu.vector_store %arg10[%c128, %c0_22], %42 {strides = array<i32>} : memref<800x256xbf16, #tpu.memory_space<vmem>>, vector<32x256xbf16>,
    %c0_23 = arith.constant 0 : index
    %c16 = arith.constant 16 : index
    %44 = vector.load %arg11[%c0_23, %c16] : memref<32x324xbf16, #tpu.memory_space<vmem>>, vector<32x256xbf16>
    %cst_24 = arith.constant 0.000000e+00 : bf16
    %45 = vector.broadcast %cst_24 : bf16 to vector<32x256xbf16>
    %46 = vector.shape_cast %4 : vector<1x256xi1> to vector<1x256xi1>
    %47 = vector.broadcast %46 : vector<1x256xi1> to vector<32x256xi1>
    %48 = arith.select %47, %44, %45 : vector<32x256xi1>, vector<32x256xbf16>
    %c160 = arith.constant 160 : index
    %c0_25 = arith.constant 0 : index
    %49 = vector.load %arg10[%c160, %c0_25] : memref<800x256xbf16, #tpu.memory_space<vmem>>, vector<32x256xbf16>
    tpu.vector_store %arg10[%c160, %c0_25], %48 {strides = array<i32>} : memref<800x256xbf16, #tpu.memory_space<vmem>>, vector<32x256xbf16>,
    %c0_26 = arith.constant 0 : index
    %c17 = arith.constant 17 : index
    %50 = vector.load %arg11[%c0_26, %c17] : memref<32x324xbf16, #tpu.memory_space<vmem>>, vector<32x256xbf16>
    %cst_27 = arith.constant 0.000000e+00 : bf16
    %51 = vector.broadcast %cst_27 : bf16 to vector<32x256xbf16>
    %52 = vector.shape_cast %6 : vector<1x256xi1> to vector<1x256xi1>
    %53 = vector.broadcast %52 : vector<1x256xi1> to vector<32x256xi1>
    %54 = arith.select %53, %50, %51 : vector<32x256xi1>, vector<32x256xbf16>
    %c192 = arith.constant 192 : index
    %c0_28 = arith.constant 0 : index
    %55 = vector.load %arg10[%c192, %c0_28] : memref<800x256xbf16, #tpu.memory_space<vmem>>, vector<32x256xbf16>
    tpu.vector_store %arg10[%c192, %c0_28], %54 {strides = array<i32>} : memref<800x256xbf16, #tpu.memory_space<vmem>>, vector<32x256xbf16>,
    %c0_29 = arith.constant 0 : index
    %c18 = arith.constant 18 : index
    %56 = vector.load %arg11[%c0_29, %c18] : memref<32x324xbf16, #tpu.memory_space<vmem>>, vector<32x256xbf16>
    %c224 = arith.constant 224 : index
    %c0_30 = arith.constant 0 : index
    %57 = vector.load %arg10[%c224, %c0_30] : memref<800x256xbf16, #tpu.memory_space<vmem>>, vector<32x256xbf16>
    tpu.vector_store %arg10[%c224, %c0_30], %56 {strides = array<i32>} : memref<800x256xbf16, #tpu.memory_space<vmem>>, vector<32x256xbf16>,
    %c0_31 = arith.constant 0 : index
    %c19 = arith.constant 19 : index
    %58 = vector.load %arg11[%c0_31, %c19] : memref<32x324xbf16, #tpu.memory_space<vmem>>, vector<32x256xbf16>
    %cst_32 = arith.constant 0.000000e+00 : bf16
    %59 = vector.broadcast %cst_32 : bf16 to vector<32x256xbf16>
    %60 = vector.shape_cast %8 : vector<1x256xi1> to vector<1x256xi1>
    %61 = vector.broadcast %60 : vector<1x256xi1> to vector<32x256xi1>
    %62 = arith.select %61, %58, %59 : vector<32x256xi1>, vector<32x256xbf16>
    %c256 = arith.constant 256 : index
    %c0_33 = arith.constant 0 : index
    %63 = vector.load %arg10[%c256, %c0_33] : memref<800x256xbf16, #tpu.memory_space<vmem>>, vector<32x256xbf16>
    tpu.vector_store %arg10[%c256, %c0_33], %62 {strides = array<i32>} : memref<800x256xbf16, #tpu.memory_space<vmem>>, vector<32x256xbf16>,
    %c0_34 = arith.constant 0 : index
    %c20 = arith.constant 20 : index
    %64 = vector.load %arg11[%c0_34, %c20] : memref<32x324xbf16, #tpu.memory_space<vmem>>, vector<32x256xbf16>
    %cst_35 = arith.constant 0.000000e+00 : bf16
    %65 = vector.broadcast %cst_35 : bf16 to vector<32x256xbf16>
    %66 = vector.shape_cast %10 : vector<1x256xi1> to vector<1x256xi1>
    %67 = vector.broadcast %66 : vector<1x256xi1> to vector<32x256xi1>
    %68 = arith.select %67, %64, %65 : vector<32x256xi1>, vector<32x256xbf16>
    %c288 = arith.constant 288 : index
    %c0_36 = arith.constant 0 : index
    %69 = vector.load %arg10[%c288, %c0_36] : memref<800x256xbf16, #tpu.memory_space<vmem>>, vector<32x256xbf16>
    tpu.vector_store %arg10[%c288, %c0_36], %68 {strides = array<i32>} : memref<800x256xbf16, #tpu.memory_space<vmem>>, vector<32x256xbf16>,
    %c0_37 = arith.constant 0 : index
    %c32_38 = arith.constant 32 : index
    %70 = vector.load %arg11[%c0_37, %c32_38] : memref<32x324xbf16, #tpu.memory_space<vmem>>, vector<32x256xbf16>
    %cst_39 = arith.constant 0.000000e+00 : bf16
    %71 = vector.broadcast %cst_39 : bf16 to vector<32x256xbf16>
    %72 = vector.shape_cast %4 : vector<1x256xi1> to vector<1x256xi1>
    %73 = vector.broadcast %72 : vector<1x256xi1> to vector<32x256xi1>
    %74 = arith.select %73, %70, %71 : vector<32x256xi1>, vector<32x256xbf16>
    %c320 = arith.constant 320 : index
    %c0_40 = arith.constant 0 : index
    %75 = vector.load %arg10[%c320, %c0_40] : memref<800x256xbf16, #tpu.memory_space<vmem>>, vector<32x256xbf16>
    tpu.vector_store %arg10[%c320, %c0_40], %74 {strides = array<i32>} : memref<800x256xbf16, #tpu.memory_space<vmem>>, vector<32x256xbf16>,
    %c0_41 = arith.constant 0 : index
    %c33 = arith.constant 33 : index
    %76 = vector.load %arg11[%c0_41, %c33] : memref<32x324xbf16, #tpu.memory_space<vmem>>, vector<32x256xbf16>
    %cst_42 = arith.constant 0.000000e+00 : bf16
    %77 = vector.broadcast %cst_42 : bf16 to vector<32x256xbf16>
    %78 = vector.shape_cast %6 : vector<1x256xi1> to vector<1x256xi1>
    %79 = vector.broadcast %78 : vector<1x256xi1> to vector<32x256xi1>
    %80 = arith.select %79, %76, %77 : vector<32x256xi1>, vector<32x256xbf16>
    %c352 = arith.constant 352 : index
    %c0_43 = arith.constant 0 : index
    %81 = vector.load %arg10[%c352, %c0_43] : memref<800x256xbf16, #tpu.memory_space<vmem>>, vector<32x256xbf16>
    tpu.vector_store %arg10[%c352, %c0_43], %80 {strides = array<i32>} : memref<800x256xbf16, #tpu.memory_space<vmem>>, vector<32x256xbf16>,
    %c0_44 = arith.constant 0 : index
    %c34_45 = arith.constant 34 : index
    %82 = vector.load %arg11[%c0_44, %c34_45] : memref<32x324xbf16, #tpu.memory_space<vmem>>, vector<32x256xbf16>
    %c384 = arith.constant 384 : index
    %c0_46 = arith.constant 0 : index
    %83 = vector.load %arg10[%c384, %c0_46] : memref<800x256xbf16, #tpu.memory_space<vmem>>, vector<32x256xbf16>
    tpu.vector_store %arg10[%c384, %c0_46], %82 {strides = array<i32>} : memref<800x256xbf16, #tpu.memory_space<vmem>>, vector<32x256xbf16>,
    %c0_47 = arith.constant 0 : index
    %c35 = arith.constant 35 : index
    %84 = vector.load %arg11[%c0_47, %c35] : memref<32x324xbf16, #tpu.memory_space<vmem>>, vector<32x256xbf16>
    %cst_48 = arith.constant 0.000000e+00 : bf16
    %85 = vector.broadcast %cst_48 : bf16 to vector<32x256xbf16>
    %86 = vector.shape_cast %8 : vector<1x256xi1> to vector<1x256xi1>
    %87 = vector.broadcast %86 : vector<1x256xi1> to vector<32x256xi1>
    %88 = arith.select %87, %84, %85 : vector<32x256xi1>, vector<32x256xbf16>
    %c416 = arith.constant 416 : index
    %c0_49 = arith.constant 0 : index
    %89 = vector.load %arg10[%c416, %c0_49] : memref<800x256xbf16, #tpu.memory_space<vmem>>, vector<32x256xbf16>
    tpu.vector_store %arg10[%c416, %c0_49], %88 {strides = array<i32>} : memref<800x256xbf16, #tpu.memory_space<vmem>>, vector<32x256xbf16>,
    %c0_50 = arith.constant 0 : index
    %c36 = arith.constant 36 : index
    %90 = vector.load %arg11[%c0_50, %c36] : memref<32x324xbf16, #tpu.memory_space<vmem>>, vector<32x256xbf16>
    %cst_51 = arith.constant 0.000000e+00 : bf16
    %91 = vector.broadcast %cst_51 : bf16 to vector<32x256xbf16>
    %92 = vector.shape_cast %10 : vector<1x256xi1> to vector<1x256xi1>
    %93 = vector.broadcast %92 : vector<1x256xi1> to vector<32x256xi1>
    %94 = arith.select %93, %90, %91 : vector<32x256xi1>, vector<32x256xbf16>
    %c448 = arith.constant 448 : index
    %c0_52 = arith.constant 0 : index
    %95 = vector.load %arg10[%c448, %c0_52] : memref<800x256xbf16, #tpu.memory_space<vmem>>, vector<32x256xbf16>
    tpu.vector_store %arg10[%c448, %c0_52], %94 {strides = array<i32>} : memref<800x256xbf16, #tpu.memory_space<vmem>>, vector<32x256xbf16>,
    %c0_53 = arith.constant 0 : index
    %c48 = arith.constant 48 : index
    %96 = vector.load %arg11[%c0_53, %c48] : memref<32x324xbf16, #tpu.memory_space<vmem>>, vector<32x256xbf16>
    %cst_54 = arith.constant 0.000000e+00 : bf16
    %97 = vector.broadcast %cst_54 : bf16 to vector<32x256xbf16>
    %98 = vector.shape_cast %4 : vector<1x256xi1> to vector<1x256xi1>
    %99 = vector.broadcast %98 : vector<1x256xi1> to vector<32x256xi1>
    %100 = arith.select %99, %96, %97 : vector<32x256xi1>, vector<32x256xbf16>
    %c480 = arith.constant 480 : index
    %c0_55 = arith.constant 0 : index
    %101 = vector.load %arg10[%c480, %c0_55] : memref<800x256xbf16, #tpu.memory_space<vmem>>, vector<32x256xbf16>
    tpu.vector_store %arg10[%c480, %c0_55], %100 {strides = array<i32>} : memref<800x256xbf16, #tpu.memory_space<vmem>>, vector<32x256xbf16>,
    %c0_56 = arith.constant 0 : index
    %c49 = arith.constant 49 : index
    %102 = vector.load %arg11[%c0_56, %c49] : memref<32x324xbf16, #tpu.memory_space<vmem>>, vector<32x256xbf16>
    %cst_57 = arith.constant 0.000000e+00 : bf16
    %103 = vector.broadcast %cst_57 : bf16 to vector<32x256xbf16>
    %104 = vector.shape_cast %6 : vector<1x256xi1> to vector<1x256xi1>
    %105 = vector.broadcast %104 : vector<1x256xi1> to vector<32x256xi1>
    %106 = arith.select %105, %102, %103 : vector<32x256xi1>, vector<32x256xbf16>
    %c512 = arith.constant 512 : index
    %c0_58 = arith.constant 0 : index
    %107 = vector.load %arg10[%c512, %c0_58] : memref<800x256xbf16, #tpu.memory_space<vmem>>, vector<32x256xbf16>
    tpu.vector_store %arg10[%c512, %c0_58], %106 {strides = array<i32>} : memref<800x256xbf16, #tpu.memory_space<vmem>>, vector<32x256xbf16>,
    %c0_59 = arith.constant 0 : index
    %c50 = arith.constant 50 : index
    %108 = vector.load %arg11[%c0_59, %c50] : memref<32x324xbf16, #tpu.memory_space<vmem>>, vector<32x256xbf16>
    %c544 = arith.constant 544 : index
    %c0_60 = arith.constant 0 : index
    %109 = vector.load %arg10[%c544, %c0_60] : memref<800x256xbf16, #tpu.memory_space<vmem>>, vector<32x256xbf16>
    tpu.vector_store %arg10[%c544, %c0_60], %108 {strides = array<i32>} : memref<800x256xbf16, #tpu.memory_space<vmem>>, vector<32x256xbf16>,
    %c0_61 = arith.constant 0 : index
    %c51 = arith.constant 51 : index
    %110 = vector.load %arg11[%c0_61, %c51] : memref<32x324xbf16, #tpu.memory_space<vmem>>, vector<32x256xbf16>
    %cst_62 = arith.constant 0.000000e+00 : bf16
    %111 = vector.broadcast %cst_62 : bf16 to vector<32x256xbf16>
    %112 = vector.shape_cast %8 : vector<1x256xi1> to vector<1x256xi1>
    %113 = vector.broadcast %112 : vector<1x256xi1> to vector<32x256xi1>
    %114 = arith.select %113, %110, %111 : vector<32x256xi1>, vector<32x256xbf16>
    %c576 = arith.constant 576 : index
    %c0_63 = arith.constant 0 : index
    %115 = vector.load %arg10[%c576, %c0_63] : memref<800x256xbf16, #tpu.memory_space<vmem>>, vector<32x256xbf16>
    tpu.vector_store %arg10[%c576, %c0_63], %114 {strides = array<i32>} : memref<800x256xbf16, #tpu.memory_space<vmem>>, vector<32x256xbf16>,
    %c0_64 = arith.constant 0 : index
    %c52 = arith.constant 52 : index
    %116 = vector.load %arg11[%c0_64, %c52] : memref<32x324xbf16, #tpu.memory_space<vmem>>, vector<32x256xbf16>
    %cst_65 = arith.constant 0.000000e+00 : bf16
    %117 = vector.broadcast %cst_65 : bf16 to vector<32x256xbf16>
    %118 = vector.shape_cast %10 : vector<1x256xi1> to vector<1x256xi1>
    %119 = vector.broadcast %118 : vector<1x256xi1> to vector<32x256xi1>
    %120 = arith.select %119, %116, %117 : vector<32x256xi1>, vector<32x256xbf16>
    %c608 = arith.constant 608 : index
    %c0_66 = arith.constant 0 : index
    %121 = vector.load %arg10[%c608, %c0_66] : memref<800x256xbf16, #tpu.memory_space<vmem>>, vector<32x256xbf16>
    tpu.vector_store %arg10[%c608, %c0_66], %120 {strides = array<i32>} : memref<800x256xbf16, #tpu.memory_space<vmem>>, vector<32x256xbf16>,
    %c0_67 = arith.constant 0 : index
    %c64_68 = arith.constant 64 : index
    %122 = vector.load %arg11[%c0_67, %c64_68] : memref<32x324xbf16, #tpu.memory_space<vmem>>, vector<32x256xbf16>
    %cst_69 = arith.constant 0.000000e+00 : bf16
    %123 = vector.broadcast %cst_69 : bf16 to vector<32x256xbf16>
    %124 = vector.shape_cast %4 : vector<1x256xi1> to vector<1x256xi1>
    %125 = vector.broadcast %124 : vector<1x256xi1> to vector<32x256xi1>
    %126 = arith.select %125, %122, %123 : vector<32x256xi1>, vector<32x256xbf16>
    %c640 = arith.constant 640 : index
    %c0_70 = arith.constant 0 : index
    %127 = vector.load %arg10[%c640, %c0_70] : memref<800x256xbf16, #tpu.memory_space<vmem>>, vector<32x256xbf16>
    tpu.vector_store %arg10[%c640, %c0_70], %126 {strides = array<i32>} : memref<800x256xbf16, #tpu.memory_space<vmem>>, vector<32x256xbf16>,
    %c0_71 = arith.constant 0 : index
    %c65 = arith.constant 65 : index
    %128 = vector.load %arg11[%c0_71, %c65] : memref<32x324xbf16, #tpu.memory_space<vmem>>, vector<32x256xbf16>
    %cst_72 = arith.constant 0.000000e+00 : bf16
    %129 = vector.broadcast %cst_72 : bf16 to vector<32x256xbf16>
    %130 = vector.shape_cast %6 : vector<1x256xi1> to vector<1x256xi1>
    %131 = vector.broadcast %130 : vector<1x256xi1> to vector<32x256xi1>
    %132 = arith.select %131, %128, %129 : vector<32x256xi1>, vector<32x256xbf16>
    %c672 = arith.constant 672 : index
    %c0_73 = arith.constant 0 : index
    %133 = vector.load %arg10[%c672, %c0_73] : memref<800x256xbf16, #tpu.memory_space<vmem>>, vector<32x256xbf16>
    tpu.vector_store %arg10[%c672, %c0_73], %132 {strides = array<i32>} : memref<800x256xbf16, #tpu.memory_space<vmem>>, vector<32x256xbf16>,
    %c0_74 = arith.constant 0 : index
    %c66 = arith.constant 66 : index
    %134 = vector.load %arg11[%c0_74, %c66] : memref<32x324xbf16, #tpu.memory_space<vmem>>, vector<32x256xbf16>
    %c704 = arith.constant 704 : index
    %c0_75 = arith.constant 0 : index
    %135 = vector.load %arg10[%c704, %c0_75] : memref<800x256xbf16, #tpu.memory_space<vmem>>, vector<32x256xbf16>
    tpu.vector_store %arg10[%c704, %c0_75], %134 {strides = array<i32>} : memref<800x256xbf16, #tpu.memory_space<vmem>>, vector<32x256xbf16>,
    %c0_76 = arith.constant 0 : index
    %c67 = arith.constant 67 : index
    %136 = vector.load %arg11[%c0_76, %c67] : memref<32x324xbf16, #tpu.memory_space<vmem>>, vector<32x256xbf16>
    %cst_77 = arith.constant 0.000000e+00 : bf16
    %137 = vector.broadcast %cst_77 : bf16 to vector<32x256xbf16>
    %138 = vector.shape_cast %8 : vector<1x256xi1> to vector<1x256xi1>
    %139 = vector.broadcast %138 : vector<1x256xi1> to vector<32x256xi1>
    %140 = arith.select %139, %136, %137 : vector<32x256xi1>, vector<32x256xbf16>
    %c736 = arith.constant 736 : index
    %c0_78 = arith.constant 0 : index
    %141 = vector.load %arg10[%c736, %c0_78] : memref<800x256xbf16, #tpu.memory_space<vmem>>, vector<32x256xbf16>
    tpu.vector_store %arg10[%c736, %c0_78], %140 {strides = array<i32>} : memref<800x256xbf16, #tpu.memory_space<vmem>>, vector<32x256xbf16>,
    %c0_79 = arith.constant 0 : index
    %c68 = arith.constant 68 : index
    %142 = vector.load %arg11[%c0_79, %c68] : memref<32x324xbf16, #tpu.memory_space<vmem>>, vector<32x256xbf16>
    %cst_80 = arith.constant 0.000000e+00 : bf16
    %143 = vector.broadcast %cst_80 : bf16 to vector<32x256xbf16>
    %144 = vector.shape_cast %10 : vector<1x256xi1> to vector<1x256xi1>
    %145 = vector.broadcast %144 : vector<1x256xi1> to vector<32x256xi1>
    %146 = arith.select %145, %142, %143 : vector<32x256xi1>, vector<32x256xbf16>
    %c768 = arith.constant 768 : index
    %c0_81 = arith.constant 0 : index
    %147 = vector.load %arg10[%c768, %c0_81] : memref<800x256xbf16, #tpu.memory_space<vmem>>, vector<32x256xbf16>
    tpu.vector_store %arg10[%c768, %c0_81], %146 {strides = array<i32>} : memref<800x256xbf16, #tpu.memory_space<vmem>>, vector<32x256xbf16>,
    %c0_82 = arith.constant 0 : index
    %c0_83 = arith.constant 0 : index
    %148 = vector.load %arg2[%c0_82, %c0_83] : memref<64x800xbf16, #tpu.memory_space<vmem>>, vector<64x800xbf16>
    %c0_84 = arith.constant 0 : index
    %c0_85 = arith.constant 0 : index
    %149 = vector.load %arg10[%c0_84, %c0_85] : memref<800x256xbf16, #tpu.memory_space<vmem>>, vector<800x256xbf16>
    %cst_86 = arith.constant dense<0.000000e+00> : vector<64x256xf32>
    %150 = tpu.matmul %148, %149, %cst_86 {dimension_numbers = #tpu.dot_dimension_numbers<[1], [0], [0], [1], [0, 0, 1, 1], [], []>} : vector<64x800xbf16>, vector<800x256xbf16>, vector<64x256xf32> -> vector<64x256xf32>
    %c0_87 = arith.constant 0 : index
    %c0_88 = arith.constant 0 : index
    %151 = vector.load %arg3[%c0_87, %c0_88] : memref<64x1xf32, #tpu.memory_space<vmem>>, vector<64x1xf32>
    %152 = vector.broadcast %151 : vector<64x1xf32> to vector<64x256xf32>
    %153 = arith.addf %150, %152 : vector<64x256xf32>
    %cst_89 = arith.constant 0.000000e+00 : f32
    %154 = vector.broadcast %cst_89 : f32 to vector<64x256xf32>
    %155 = arith.maximumf %153, %154 : vector<64x256xf32>
    %156 = vector.extract_strided_slice %155 {offsets = [0, 0], sizes = [32, 256], strides = [1, 1]} : vector<64x256xf32> to vector<32x256xf32>
    %157 = vector.extract_strided_slice %155 {offsets = [32, 0], sizes = [32, 256], strides = [1, 1]} : vector<64x256xf32> to vector<32x256xf32>
    %158 = arith.addf %156, %157 : vector<32x256xf32>
    %159 = arith.truncf %158 : vector<32x256xf32> to vector<32x256xbf16>
    %c0_90 = arith.constant 0 : index
    %c34_91 = arith.constant 34 : index
    %160 = vector.load %arg11[%c0_90, %c34_91] : memref<32x324xbf16, #tpu.memory_space<vmem>>, vector<32x256xbf16>
    tpu.vector_store %arg11[%c0_90, %c34_91], %159 {strides = array<i32>} : memref<32x324xbf16, #tpu.memory_space<vmem>>, vector<32x256xbf16>,
    %c0_92 = arith.constant 0 : index
    %c0_93 = arith.constant 0 : index
    %161 = vector.load %arg11[%c0_92, %c0_93] : memref<32x324xbf16, #tpu.memory_space<vmem>>, vector<32x256xbf16>
    %cst_94 = arith.constant 0.000000e+00 : bf16
    %162 = vector.broadcast %cst_94 : bf16 to vector<32x256xbf16>
    %163 = vector.shape_cast %4 : vector<1x256xi1> to vector<1x256xi1>
    %164 = vector.broadcast %163 : vector<1x256xi1> to vector<32x256xi1>
    %165 = arith.select %164, %161, %162 : vector<32x256xi1>, vector<32x256xbf16>
    %c0_95 = arith.constant 0 : index
    %c0_96 = arith.constant 0 : index
    %166 = vector.load %arg10[%c0_95, %c0_96] : memref<800x256xbf16, #tpu.memory_space<vmem>>, vector<32x256xbf16>
    tpu.vector_store %arg10[%c0_95, %c0_96], %165 {strides = array<i32>} : memref<800x256xbf16, #tpu.memory_space<vmem>>, vector<32x256xbf16>,
    %c0_97 = arith.constant 0 : index
    %c1_98 = arith.constant 1 : index
    %167 = vector.load %arg11[%c0_97, %c1_98] : memref<32x324xbf16, #tpu.memory_space<vmem>>, vector<32x256xbf16>
    %cst_99 = arith.constant 0.000000e+00 : bf16
    %168 = vector.broadcast %cst_99 : bf16 to vector<32x256xbf16>
    %169 = vector.shape_cast %6 : vector<1x256xi1> to vector<1x256xi1>
    %170 = vector.broadcast %169 : vector<1x256xi1> to vector<32x256xi1>
    %171 = arith.select %170, %167, %168 : vector<32x256xi1>, vector<32x256xbf16>
    %c32_100 = arith.constant 32 : index
    %c0_101 = arith.constant 0 : index
    %172 = vector.load %arg10[%c32_100, %c0_101] : memref<800x256xbf16, #tpu.memory_space<vmem>>, vector<32x256xbf16>
    tpu.vector_store %arg10[%c32_100, %c0_101], %171 {strides = array<i32>} : memref<800x256xbf16, #tpu.memory_space<vmem>>, vector<32x256xbf16>,
    %c0_102 = arith.constant 0 : index
    %c2_103 = arith.constant 2 : index
    %173 = vector.load %arg11[%c0_102, %c2_103] : memref<32x324xbf16, #tpu.memory_space<vmem>>, vector<32x256xbf16>
    %c64_104 = arith.constant 64 : index
    %c0_105 = arith.constant 0 : index
    %174 = vector.load %arg10[%c64_104, %c0_105] : memref<800x256xbf16, #tpu.memory_space<vmem>>, vector<32x256xbf16>
    tpu.vector_store %arg10[%c64_104, %c0_105], %173 {strides = array<i32>} : memref<800x256xbf16, #tpu.memory_space<vmem>>, vector<32x256xbf16>,
    %c0_106 = arith.constant 0 : index
    %c3_107 = arith.constant 3 : index
    %175 = vector.load %arg11[%c0_106, %c3_107] : memref<32x324xbf16, #tpu.memory_space<vmem>>, vector<32x256xbf16>
    %cst_108 = arith.constant 0.000000e+00 : bf16
    %176 = vector.broadcast %cst_108 : bf16 to vector<32x256xbf16>
    %177 = vector.shape_cast %8 : vector<1x256xi1> to vector<1x256xi1>
    %178 = vector.broadcast %177 : vector<1x256xi1> to vector<32x256xi1>
    %179 = arith.select %178, %175, %176 : vector<32x256xi1>, vector<32x256xbf16>
    %c96_109 = arith.constant 96 : index
    %c0_110 = arith.constant 0 : index
    %180 = vector.load %arg10[%c96_109, %c0_110] : memref<800x256xbf16, #tpu.memory_space<vmem>>, vector<32x256xbf16>
    tpu.vector_store %arg10[%c96_109, %c0_110], %179 {strides = array<i32>} : memref<800x256xbf16, #tpu.memory_space<vmem>>, vector<32x256xbf16>,
    %c0_111 = arith.constant 0 : index
    %c4_112 = arith.constant 4 : index
    %181 = vector.load %arg11[%c0_111, %c4_112] : memref<32x324xbf16, #tpu.memory_space<vmem>>, vector<32x256xbf16>
    %cst_113 = arith.constant 0.000000e+00 : bf16
    %182 = vector.broadcast %cst_113 : bf16 to vector<32x256xbf16>
    %183 = vector.shape_cast %10 : vector<1x256xi1> to vector<1x256xi1>
    %184 = vector.broadcast %183 : vector<1x256xi1> to vector<32x256xi1>
    %185 = arith.select %184, %181, %182 : vector<32x256xi1>, vector<32x256xbf16>
    %c128_114 = arith.constant 128 : index
    %c0_115 = arith.constant 0 : index
    %186 = vector.load %arg10[%c128_114, %c0_115] : memref<800x256xbf16, #tpu.memory_space<vmem>>, vector<32x256xbf16>
    tpu.vector_store %arg10[%c128_114, %c0_115], %185 {strides = array<i32>} : memref<800x256xbf16, #tpu.memory_space<vmem>>, vector<32x256xbf16>,
    %c0_116 = arith.constant 0 : index
    %c16_117 = arith.constant 16 : index
    %187 = vector.load %arg11[%c0_116, %c16_117] : memref<32x324xbf16, #tpu.memory_space<vmem>>, vector<32x256xbf16>
    %cst_118 = arith.constant 0.000000e+00 : bf16
    %188 = vector.broadcast %cst_118 : bf16 to vector<32x256xbf16>
    %189 = vector.shape_cast %4 : vector<1x256xi1> to vector<1x256xi1>
    %190 = vector.broadcast %189 : vector<1x256xi1> to vector<32x256xi1>
    %191 = arith.select %190, %187, %188 : vector<32x256xi1>, vector<32x256xbf16>
    %c160_119 = arith.constant 160 : index
    %c0_120 = arith.constant 0 : index
    %192 = vector.load %arg10[%c160_119, %c0_120] : memref<800x256xbf16, #tpu.memory_space<vmem>>, vector<32x256xbf16>
    tpu.vector_store %arg10[%c160_119, %c0_120], %191 {strides = array<i32>} : memref<800x256xbf16, #tpu.memory_space<vmem>>, vector<32x256xbf16>,
    %c0_121 = arith.constant 0 : index
    %c17_122 = arith.constant 17 : index
    %193 = vector.load %arg11[%c0_121, %c17_122] : memref<32x324xbf16, #tpu.memory_space<vmem>>, vector<32x256xbf16>
    %cst_123 = arith.constant 0.000000e+00 : bf16
    %194 = vector.broadcast %cst_123 : bf16 to vector<32x256xbf16>
    %195 = vector.shape_cast %6 : vector<1x256xi1> to vector<1x256xi1>
    %196 = vector.broadcast %195 : vector<1x256xi1> to vector<32x256xi1>
    %197 = arith.select %196, %193, %194 : vector<32x256xi1>, vector<32x256xbf16>
    %c192_124 = arith.constant 192 : index
    %c0_125 = arith.constant 0 : index
    %198 = vector.load %arg10[%c192_124, %c0_125] : memref<800x256xbf16, #tpu.memory_space<vmem>>, vector<32x256xbf16>
    tpu.vector_store %arg10[%c192_124, %c0_125], %197 {strides = array<i32>} : memref<800x256xbf16, #tpu.memory_space<vmem>>, vector<32x256xbf16>,
    %c0_126 = arith.constant 0 : index
    %c18_127 = arith.constant 18 : index
    %199 = vector.load %arg11[%c0_126, %c18_127] : memref<32x324xbf16, #tpu.memory_space<vmem>>, vector<32x256xbf16>
    %c224_128 = arith.constant 224 : index
    %c0_129 = arith.constant 0 : index
    %200 = vector.load %arg10[%c224_128, %c0_129] : memref<800x256xbf16, #tpu.memory_space<vmem>>, vector<32x256xbf16>
    tpu.vector_store %arg10[%c224_128, %c0_129], %199 {strides = array<i32>} : memref<800x256xbf16, #tpu.memory_space<vmem>>, vector<32x256xbf16>,
    %c0_130 = arith.constant 0 : index
    %c19_131 = arith.constant 19 : index
    %201 = vector.load %arg11[%c0_130, %c19_131] : memref<32x324xbf16, #tpu.memory_space<vmem>>, vector<32x256xbf16>
    %cst_132 = arith.constant 0.000000e+00 : bf16
    %202 = vector.broadcast %cst_132 : bf16 to vector<32x256xbf16>
    %203 = vector.shape_cast %8 : vector<1x256xi1> to vector<1x256xi1>
    %204 = vector.broadcast %203 : vector<1x256xi1> to vector<32x256xi1>
    %205 = arith.select %204, %201, %202 : vector<32x256xi1>, vector<32x256xbf16>
    %c256_133 = arith.constant 256 : index
    %c0_134 = arith.constant 0 : index
    %206 = vector.load %arg10[%c256_133, %c0_134] : memref<800x256xbf16, #tpu.memory_space<vmem>>, vector<32x256xbf16>
    tpu.vector_store %arg10[%c256_133, %c0_134], %205 {strides = array<i32>} : memref<800x256xbf16, #tpu.memory_space<vmem>>, vector<32x256xbf16>,
    %c0_135 = arith.constant 0 : index
    %c20_136 = arith.constant 20 : index
    %207 = vector.load %arg11[%c0_135, %c20_136] : memref<32x324xbf16, #tpu.memory_space<vmem>>, vector<32x256xbf16>
    %cst_137 = arith.constant 0.000000e+00 : bf16
    %208 = vector.broadcast %cst_137 : bf16 to vector<32x256xbf16>
    %209 = vector.shape_cast %10 : vector<1x256xi1> to vector<1x256xi1>
    %210 = vector.broadcast %209 : vector<1x256xi1> to vector<32x256xi1>
    %211 = arith.select %210, %207, %208 : vector<32x256xi1>, vector<32x256xbf16>
    %c288_138 = arith.constant 288 : index
    %c0_139 = arith.constant 0 : index
    %212 = vector.load %arg10[%c288_138, %c0_139] : memref<800x256xbf16, #tpu.memory_space<vmem>>, vector<32x256xbf16>
    tpu.vector_store %arg10[%c288_138, %c0_139], %211 {strides = array<i32>} : memref<800x256xbf16, #tpu.memory_space<vmem>>, vector<32x256xbf16>,
    %c0_140 = arith.constant 0 : index
    %c32_141 = arith.constant 32 : index
    %213 = vector.load %arg11[%c0_140, %c32_141] : memref<32x324xbf16, #tpu.memory_space<vmem>>, vector<32x256xbf16>
    %cst_142 = arith.constant 0.000000e+00 : bf16
    %214 = vector.broadcast %cst_142 : bf16 to vector<32x256xbf16>
    %215 = vector.shape_cast %4 : vector<1x256xi1> to vector<1x256xi1>
    %216 = vector.broadcast %215 : vector<1x256xi1> to vector<32x256xi1>
    %217 = arith.select %216, %213, %214 : vector<32x256xi1>, vector<32x256xbf16>
    %c320_143 = arith.constant 320 : index
    %c0_144 = arith.constant 0 : index
    %218 = vector.load %arg10[%c320_143, %c0_144] : memref<800x256xbf16, #tpu.memory_space<vmem>>, vector<32x256xbf16>
    tpu.vector_store %arg10[%c320_143, %c0_144], %217 {strides = array<i32>} : memref<800x256xbf16, #tpu.memory_space<vmem>>, vector<32x256xbf16>,
    %c0_145 = arith.constant 0 : index
    %c33_146 = arith.constant 33 : index
    %219 = vector.load %arg11[%c0_145, %c33_146] : memref<32x324xbf16, #tpu.memory_space<vmem>>, vector<32x256xbf16>
    %cst_147 = arith.constant 0.000000e+00 : bf16
    %220 = vector.broadcast %cst_147 : bf16 to vector<32x256xbf16>
    %221 = vector.shape_cast %6 : vector<1x256xi1> to vector<1x256xi1>
    %222 = vector.broadcast %221 : vector<1x256xi1> to vector<32x256xi1>
    %223 = arith.select %222, %219, %220 : vector<32x256xi1>, vector<32x256xbf16>
    %c352_148 = arith.constant 352 : index
    %c0_149 = arith.constant 0 : index
    %224 = vector.load %arg10[%c352_148, %c0_149] : memref<800x256xbf16, #tpu.memory_space<vmem>>, vector<32x256xbf16>
    tpu.vector_store %arg10[%c352_148, %c0_149], %223 {strides = array<i32>} : memref<800x256xbf16, #tpu.memory_space<vmem>>, vector<32x256xbf16>,
    %c0_150 = arith.constant 0 : index
    %c34_151 = arith.constant 34 : index
    %225 = vector.load %arg11[%c0_150, %c34_151] : memref<32x324xbf16, #tpu.memory_space<vmem>>, vector<32x256xbf16>
    %c384_152 = arith.constant 384 : index
    %c0_153 = arith.constant 0 : index
    %226 = vector.load %arg10[%c384_152, %c0_153] : memref<800x256xbf16, #tpu.memory_space<vmem>>, vector<32x256xbf16>
    tpu.vector_store %arg10[%c384_152, %c0_153], %225 {strides = array<i32>} : memref<800x256xbf16, #tpu.memory_space<vmem>>, vector<32x256xbf16>,
    %c0_154 = arith.constant 0 : index
    %c35_155 = arith.constant 35 : index
    %227 = vector.load %arg11[%c0_154, %c35_155] : memref<32x324xbf16, #tpu.memory_space<vmem>>, vector<32x256xbf16>
    %cst_156 = arith.constant 0.000000e+00 : bf16
    %228 = vector.broadcast %cst_156 : bf16 to vector<32x256xbf16>
    %229 = vector.shape_cast %8 : vector<1x256xi1> to vector<1x256xi1>
    %230 = vector.broadcast %229 : vector<1x256xi1> to vector<32x256xi1>
    %231 = arith.select %230, %227, %228 : vector<32x256xi1>, vector<32x256xbf16>
    %c416_157 = arith.constant 416 : index
    %c0_158 = arith.constant 0 : index
    %232 = vector.load %arg10[%c416_157, %c0_158] : memref<800x256xbf16, #tpu.memory_space<vmem>>, vector<32x256xbf16>
    tpu.vector_store %arg10[%c416_157, %c0_158], %231 {strides = array<i32>} : memref<800x256xbf16, #tpu.memory_space<vmem>>, vector<32x256xbf16>,
    %c0_159 = arith.constant 0 : index
    %c36_160 = arith.constant 36 : index
    %233 = vector.load %arg11[%c0_159, %c36_160] : memref<32x324xbf16, #tpu.memory_space<vmem>>, vector<32x256xbf16>
    %cst_161 = arith.constant 0.000000e+00 : bf16
    %234 = vector.broadcast %cst_161 : bf16 to vector<32x256xbf16>
    %235 = vector.shape_cast %10 : vector<1x256xi1> to vector<1x256xi1>
    %236 = vector.broadcast %235 : vector<1x256xi1> to vector<32x256xi1>
    %237 = arith.select %236, %233, %234 : vector<32x256xi1>, vector<32x256xbf16>
    %c448_162 = arith.constant 448 : index
    %c0_163 = arith.constant 0 : index
    %238 = vector.load %arg10[%c448_162, %c0_163] : memref<800x256xbf16, #tpu.memory_space<vmem>>, vector<32x256xbf16>
    tpu.vector_store %arg10[%c448_162, %c0_163], %237 {strides = array<i32>} : memref<800x256xbf16, #tpu.memory_space<vmem>>, vector<32x256xbf16>,
    %c0_164 = arith.constant 0 : index
    %c48_165 = arith.constant 48 : index
    %239 = vector.load %arg11[%c0_164, %c48_165] : memref<32x324xbf16, #tpu.memory_space<vmem>>, vector<32x256xbf16>
    %cst_166 = arith.constant 0.000000e+00 : bf16
    %240 = vector.broadcast %cst_166 : bf16 to vector<32x256xbf16>
    %241 = vector.shape_cast %4 : vector<1x256xi1> to vector<1x256xi1>
    %242 = vector.broadcast %241 : vector<1x256xi1> to vector<32x256xi1>
    %243 = arith.select %242, %239, %240 : vector<32x256xi1>, vector<32x256xbf16>
    %c480_167 = arith.constant 480 : index
    %c0_168 = arith.constant 0 : index
    %244 = vector.load %arg10[%c480_167, %c0_168] : memref<800x256xbf16, #tpu.memory_space<vmem>>, vector<32x256xbf16>
    tpu.vector_store %arg10[%c480_167, %c0_168], %243 {strides = array<i32>} : memref<800x256xbf16, #tpu.memory_space<vmem>>, vector<32x256xbf16>,
    %c0_169 = arith.constant 0 : index
    %c49_170 = arith.constant 49 : index
    %245 = vector.load %arg11[%c0_169, %c49_170] : memref<32x324xbf16, #tpu.memory_space<vmem>>, vector<32x256xbf16>
    %cst_171 = arith.constant 0.000000e+00 : bf16
    %246 = vector.broadcast %cst_171 : bf16 to vector<32x256xbf16>
    %247 = vector.shape_cast %6 : vector<1x256xi1> to vector<1x256xi1>
    %248 = vector.broadcast %247 : vector<1x256xi1> to vector<32x256xi1>
    %249 = arith.select %248, %245, %246 : vector<32x256xi1>, vector<32x256xbf16>
    %c512_172 = arith.constant 512 : index
    %c0_173 = arith.constant 0 : index
    %250 = vector.load %arg10[%c512_172, %c0_173] : memref<800x256xbf16, #tpu.memory_space<vmem>>, vector<32x256xbf16>
    tpu.vector_store %arg10[%c512_172, %c0_173], %249 {strides = array<i32>} : memref<800x256xbf16, #tpu.memory_space<vmem>>, vector<32x256xbf16>,
    %c0_174 = arith.constant 0 : index
    %c50_175 = arith.constant 50 : index
    %251 = vector.load %arg11[%c0_174, %c50_175] : memref<32x324xbf16, #tpu.memory_space<vmem>>, vector<32x256xbf16>
    %c544_176 = arith.constant 544 : index
    %c0_177 = arith.constant 0 : index
    %252 = vector.load %arg10[%c544_176, %c0_177] : memref<800x256xbf16, #tpu.memory_space<vmem>>, vector<32x256xbf16>
    tpu.vector_store %arg10[%c544_176, %c0_177], %251 {strides = array<i32>} : memref<800x256xbf16, #tpu.memory_space<vmem>>, vector<32x256xbf16>,
    %c0_178 = arith.constant 0 : index
    %c51_179 = arith.constant 51 : index
    %253 = vector.load %arg11[%c0_178, %c51_179] : memref<32x324xbf16, #tpu.memory_space<vmem>>, vector<32x256xbf16>
    %cst_180 = arith.constant 0.000000e+00 : bf16
    %254 = vector.broadcast %cst_180 : bf16 to vector<32x256xbf16>
    %255 = vector.shape_cast %8 : vector<1x256xi1> to vector<1x256xi1>
    %256 = vector.broadcast %255 : vector<1x256xi1> to vector<32x256xi1>
    %257 = arith.select %256, %253, %254 : vector<32x256xi1>, vector<32x256xbf16>
    %c576_181 = arith.constant 576 : index
    %c0_182 = arith.constant 0 : index
    %258 = vector.load %arg10[%c576_181, %c0_182] : memref<800x256xbf16, #tpu.memory_space<vmem>>, vector<32x256xbf16>
    tpu.vector_store %arg10[%c576_181, %c0_182], %257 {strides = array<i32>} : memref<800x256xbf16, #tpu.memory_space<vmem>>, vector<32x256xbf16>,
    %c0_183 = arith.constant 0 : index
    %c52_184 = arith.constant 52 : index
    %259 = vector.load %arg11[%c0_183, %c52_184] : memref<32x324xbf16, #tpu.memory_space<vmem>>, vector<32x256xbf16>
    %cst_185 = arith.constant 0.000000e+00 : bf16
    %260 = vector.broadcast %cst_185 : bf16 to vector<32x256xbf16>
    %261 = vector.shape_cast %10 : vector<1x256xi1> to vector<1x256xi1>
    %262 = vector.broadcast %261 : vector<1x256xi1> to vector<32x256xi1>
    %263 = arith.select %262, %259, %260 : vector<32x256xi1>, vector<32x256xbf16>
    %c608_186 = arith.constant 608 : index
    %c0_187 = arith.constant 0 : index
    %264 = vector.load %arg10[%c608_186, %c0_187] : memref<800x256xbf16, #tpu.memory_space<vmem>>, vector<32x256xbf16>
    tpu.vector_store %arg10[%c608_186, %c0_187], %263 {strides = array<i32>} : memref<800x256xbf16, #tpu.memory_space<vmem>>, vector<32x256xbf16>,
    %c0_188 = arith.constant 0 : index
    %c64_189 = arith.constant 64 : index
    %265 = vector.load %arg11[%c0_188, %c64_189] : memref<32x324xbf16, #tpu.memory_space<vmem>>, vector<32x256xbf16>
    %cst_190 = arith.constant 0.000000e+00 : bf16
    %266 = vector.broadcast %cst_190 : bf16 to vector<32x256xbf16>
    %267 = vector.shape_cast %4 : vector<1x256xi1> to vector<1x256xi1>
    %268 = vector.broadcast %267 : vector<1x256xi1> to vector<32x256xi1>
    %269 = arith.select %268, %265, %266 : vector<32x256xi1>, vector<32x256xbf16>
    %c640_191 = arith.constant 640 : index
    %c0_192 = arith.constant 0 : index
    %270 = vector.load %arg10[%c640_191, %c0_192] : memref<800x256xbf16, #tpu.memory_space<vmem>>, vector<32x256xbf16>
    tpu.vector_store %arg10[%c640_191, %c0_192], %269 {strides = array<i32>} : memref<800x256xbf16, #tpu.memory_space<vmem>>, vector<32x256xbf16>,
    %c0_193 = arith.constant 0 : index
    %c65_194 = arith.constant 65 : index
    %271 = vector.load %arg11[%c0_193, %c65_194] : memref<32x324xbf16, #tpu.memory_space<vmem>>, vector<32x256xbf16>
    %cst_195 = arith.constant 0.000000e+00 : bf16
    %272 = vector.broadcast %cst_195 : bf16 to vector<32x256xbf16>
    %273 = vector.shape_cast %6 : vector<1x256xi1> to vector<1x256xi1>
    %274 = vector.broadcast %273 : vector<1x256xi1> to vector<32x256xi1>
    %275 = arith.select %274, %271, %272 : vector<32x256xi1>, vector<32x256xbf16>
    %c672_196 = arith.constant 672 : index
    %c0_197 = arith.constant 0 : index
    %276 = vector.load %arg10[%c672_196, %c0_197] : memref<800x256xbf16, #tpu.memory_space<vmem>>, vector<32x256xbf16>
    tpu.vector_store %arg10[%c672_196, %c0_197], %275 {strides = array<i32>} : memref<800x256xbf16, #tpu.memory_space<vmem>>, vector<32x256xbf16>,
    %c0_198 = arith.constant 0 : index
    %c66_199 = arith.constant 66 : index
    %277 = vector.load %arg11[%c0_198, %c66_199] : memref<32x324xbf16, #tpu.memory_space<vmem>>, vector<32x256xbf16>
    %c704_200 = arith.constant 704 : index
    %c0_201 = arith.constant 0 : index
    %278 = vector.load %arg10[%c704_200, %c0_201] : memref<800x256xbf16, #tpu.memory_space<vmem>>, vector<32x256xbf16>
    tpu.vector_store %arg10[%c704_200, %c0_201], %277 {strides = array<i32>} : memref<800x256xbf16, #tpu.memory_space<vmem>>, vector<32x256xbf16>,
    %c0_202 = arith.constant 0 : index
    %c67_203 = arith.constant 67 : index
    %279 = vector.load %arg11[%c0_202, %c67_203] : memref<32x324xbf16, #tpu.memory_space<vmem>>, vector<32x256xbf16>
    %cst_204 = arith.constant 0.000000e+00 : bf16
    %280 = vector.broadcast %cst_204 : bf16 to vector<32x256xbf16>
    %281 = vector.shape_cast %8 : vector<1x256xi1> to vector<1x256xi1>
    %282 = vector.broadcast %281 : vector<1x256xi1> to vector<32x256xi1>
    %283 = arith.select %282, %279, %280 : vector<32x256xi1>, vector<32x256xbf16>
    %c736_205 = arith.constant 736 : index
    %c0_206 = arith.constant 0 : index
    %284 = vector.load %arg10[%c736_205, %c0_206] : memref<800x256xbf16, #tpu.memory_space<vmem>>, vector<32x256xbf16>
    tpu.vector_store %arg10[%c736_205, %c0_206], %283 {strides = array<i32>} : memref<800x256xbf16, #tpu.memory_space<vmem>>, vector<32x256xbf16>,
    %c0_207 = arith.constant 0 : index
    %c68_208 = arith.constant 68 : index
    %285 = vector.load %arg11[%c0_207, %c68_208] : memref<32x324xbf16, #tpu.memory_space<vmem>>, vector<32x256xbf16>
    %cst_209 = arith.constant 0.000000e+00 : bf16
    %286 = vector.broadcast %cst_209 : bf16 to vector<32x256xbf16>
    %287 = vector.shape_cast %10 : vector<1x256xi1> to vector<1x256xi1>
    %288 = vector.broadcast %287 : vector<1x256xi1> to vector<32x256xi1>
    %289 = arith.select %288, %285, %286 : vector<32x256xi1>, vector<32x256xbf16>
    %c768_210 = arith.constant 768 : index
    %c0_211 = arith.constant 0 : index
    %290 = vector.load %arg10[%c768_210, %c0_211] : memref<800x256xbf16, #tpu.memory_space<vmem>>, vector<32x256xbf16>
    tpu.vector_store %arg10[%c768_210, %c0_211], %289 {strides = array<i32>} : memref<800x256xbf16, #tpu.memory_space<vmem>>, vector<32x256xbf16>,
    %c0_212 = arith.constant 0 : index
    %c0_213 = arith.constant 0 : index
    %291 = vector.load %arg4[%c0_212, %c0_213] : memref<64x800xbf16, #tpu.memory_space<vmem>>, vector<64x800xbf16>
    %c0_214 = arith.constant 0 : index
    %c0_215 = arith.constant 0 : index
    %292 = vector.load %arg10[%c0_214, %c0_215] : memref<800x256xbf16, #tpu.memory_space<vmem>>, vector<800x256xbf16>
    %cst_216 = arith.constant dense<0.000000e+00> : vector<64x256xf32>
    %293 = tpu.matmul %291, %292, %cst_216 {dimension_numbers = #tpu.dot_dimension_numbers<[1], [0], [0], [1], [0, 0, 1, 1], [], []>} : vector<64x800xbf16>, vector<800x256xbf16>, vector<64x256xf32> -> vector<64x256xf32>
    %c0_217 = arith.constant 0 : index
    %c0_218 = arith.constant 0 : index
    %294 = vector.load %arg5[%c0_217, %c0_218] : memref<64x1xf32, #tpu.memory_space<vmem>>, vector<64x1xf32>
    %295 = vector.broadcast %294 : vector<64x1xf32> to vector<64x256xf32>
    %296 = arith.addf %293, %295 : vector<64x256xf32>
    %cst_219 = arith.constant 0.000000e+00 : f32
    %297 = vector.broadcast %cst_219 : f32 to vector<64x256xf32>
    %298 = arith.maximumf %296, %297 : vector<64x256xf32>
    %299 = vector.extract_strided_slice %298 {offsets = [0, 0], sizes = [32, 256], strides = [1, 1]} : vector<64x256xf32> to vector<32x256xf32>
    %300 = vector.extract_strided_slice %298 {offsets = [32, 0], sizes = [32, 256], strides = [1, 1]} : vector<64x256xf32> to vector<32x256xf32>
    %301 = arith.mulf %299, %300 : vector<32x256xf32>
    %302 = arith.addf %301, %158 : vector<32x256xf32>
    %303 = arith.truncf %302 : vector<32x256xf32> to vector<32x256xbf16>
    %c0_220 = arith.constant 0 : index
    %c34_221 = arith.constant 34 : index
    %304 = vector.load %arg11[%c0_220, %c34_221] : memref<32x324xbf16, #tpu.memory_space<vmem>>, vector<32x256xbf16>
    tpu.vector_store %arg11[%c0_220, %c34_221], %303 {strides = array<i32>} : memref<32x324xbf16, #tpu.memory_space<vmem>>, vector<32x256xbf16>,
    %c0_222 = arith.constant 0 : index
    %c17_223 = arith.constant 17 : index
    %305 = vector.load %arg11[%c0_222, %c17_223] : memref<32x324xbf16, #tpu.memory_space<vmem>>, vector<32x256xbf16>
    %cst_224 = arith.constant 0.000000e+00 : bf16
    %306 = vector.broadcast %cst_224 : bf16 to vector<32x256xbf16>
    %307 = vector.shape_cast %6 : vector<1x256xi1> to vector<1x256xi1>
    %308 = vector.broadcast %307 : vector<1x256xi1> to vector<32x256xi1>
    %309 = arith.select %308, %305, %306 : vector<32x256xi1>, vector<32x256xbf16>
    %c0_225 = arith.constant 0 : index
    %c0_226 = arith.constant 0 : index
    %310 = vector.load %arg10[%c0_225, %c0_226] : memref<800x256xbf16, #tpu.memory_space<vmem>>, vector<32x256xbf16>
    tpu.vector_store %arg10[%c0_225, %c0_226], %309 {strides = array<i32>} : memref<800x256xbf16, #tpu.memory_space<vmem>>, vector<32x256xbf16>,
    %c0_227 = arith.constant 0 : index
    %c18_228 = arith.constant 18 : index
    %311 = vector.load %arg11[%c0_227, %c18_228] : memref<32x324xbf16, #tpu.memory_space<vmem>>, vector<32x256xbf16>
    %c32_229 = arith.constant 32 : index
    %c0_230 = arith.constant 0 : index
    %312 = vector.load %arg10[%c32_229, %c0_230] : memref<800x256xbf16, #tpu.memory_space<vmem>>, vector<32x256xbf16>
    tpu.vector_store %arg10[%c32_229, %c0_230], %311 {strides = array<i32>} : memref<800x256xbf16, #tpu.memory_space<vmem>>, vector<32x256xbf16>,
    %c0_231 = arith.constant 0 : index
    %c19_232 = arith.constant 19 : index
    %313 = vector.load %arg11[%c0_231, %c19_232] : memref<32x324xbf16, #tpu.memory_space<vmem>>, vector<32x256xbf16>
    %cst_233 = arith.constant 0.000000e+00 : bf16
    %314 = vector.broadcast %cst_233 : bf16 to vector<32x256xbf16>
    %315 = vector.shape_cast %8 : vector<1x256xi1> to vector<1x256xi1>
    %316 = vector.broadcast %315 : vector<1x256xi1> to vector<32x256xi1>
    %317 = arith.select %316, %313, %314 : vector<32x256xi1>, vector<32x256xbf16>
    %c64_234 = arith.constant 64 : index
    %c0_235 = arith.constant 0 : index
    %318 = vector.load %arg10[%c64_234, %c0_235] : memref<800x256xbf16, #tpu.memory_space<vmem>>, vector<32x256xbf16>
    tpu.vector_store %arg10[%c64_234, %c0_235], %317 {strides = array<i32>} : memref<800x256xbf16, #tpu.memory_space<vmem>>, vector<32x256xbf16>,
    %c0_236 = arith.constant 0 : index
    %c33_237 = arith.constant 33 : index
    %319 = vector.load %arg11[%c0_236, %c33_237] : memref<32x324xbf16, #tpu.memory_space<vmem>>, vector<32x256xbf16>
    %cst_238 = arith.constant 0.000000e+00 : bf16
    %320 = vector.broadcast %cst_238 : bf16 to vector<32x256xbf16>
    %321 = vector.shape_cast %6 : vector<1x256xi1> to vector<1x256xi1>
    %322 = vector.broadcast %321 : vector<1x256xi1> to vector<32x256xi1>
    %323 = arith.select %322, %319, %320 : vector<32x256xi1>, vector<32x256xbf16>
    %c96_239 = arith.constant 96 : index
    %c0_240 = arith.constant 0 : index
    %324 = vector.load %arg10[%c96_239, %c0_240] : memref<800x256xbf16, #tpu.memory_space<vmem>>, vector<32x256xbf16>
    tpu.vector_store %arg10[%c96_239, %c0_240], %323 {strides = array<i32>} : memref<800x256xbf16, #tpu.memory_space<vmem>>, vector<32x256xbf16>,
    %c0_241 = arith.constant 0 : index
    %c34_242 = arith.constant 34 : index
    %325 = vector.load %arg11[%c0_241, %c34_242] : memref<32x324xbf16, #tpu.memory_space<vmem>>, vector<32x256xbf16>
    %c128_243 = arith.constant 128 : index
    %c0_244 = arith.constant 0 : index
    %326 = vector.load %arg10[%c128_243, %c0_244] : memref<800x256xbf16, #tpu.memory_space<vmem>>, vector<32x256xbf16>
    tpu.vector_store %arg10[%c128_243, %c0_244], %325 {strides = array<i32>} : memref<800x256xbf16, #tpu.memory_space<vmem>>, vector<32x256xbf16>,
    %c0_245 = arith.constant 0 : index
    %c35_246 = arith.constant 35 : index
    %327 = vector.load %arg11[%c0_245, %c35_246] : memref<32x324xbf16, #tpu.memory_space<vmem>>, vector<32x256xbf16>
    %cst_247 = arith.constant 0.000000e+00 : bf16
    %328 = vector.broadcast %cst_247 : bf16 to vector<32x256xbf16>
    %329 = vector.shape_cast %8 : vector<1x256xi1> to vector<1x256xi1>
    %330 = vector.broadcast %329 : vector<1x256xi1> to vector<32x256xi1>
    %331 = arith.select %330, %327, %328 : vector<32x256xi1>, vector<32x256xbf16>
    %c160_248 = arith.constant 160 : index
    %c0_249 = arith.constant 0 : index
    %332 = vector.load %arg10[%c160_248, %c0_249] : memref<800x256xbf16, #tpu.memory_space<vmem>>, vector<32x256xbf16>
    tpu.vector_store %arg10[%c160_248, %c0_249], %331 {strides = array<i32>} : memref<800x256xbf16, #tpu.memory_space<vmem>>, vector<32x256xbf16>,
    %c0_250 = arith.constant 0 : index
    %c49_251 = arith.constant 49 : index
    %333 = vector.load %arg11[%c0_250, %c49_251] : memref<32x324xbf16, #tpu.memory_space<vmem>>, vector<32x256xbf16>
    %cst_252 = arith.constant 0.000000e+00 : bf16
    %334 = vector.broadcast %cst_252 : bf16 to vector<32x256xbf16>
    %335 = vector.shape_cast %6 : vector<1x256xi1> to vector<1x256xi1>
    %336 = vector.broadcast %335 : vector<1x256xi1> to vector<32x256xi1>
    %337 = arith.select %336, %333, %334 : vector<32x256xi1>, vector<32x256xbf16>
    %c192_253 = arith.constant 192 : index
    %c0_254 = arith.constant 0 : index
    %338 = vector.load %arg10[%c192_253, %c0_254] : memref<800x256xbf16, #tpu.memory_space<vmem>>, vector<32x256xbf16>
    tpu.vector_store %arg10[%c192_253, %c0_254], %337 {strides = array<i32>} : memref<800x256xbf16, #tpu.memory_space<vmem>>, vector<32x256xbf16>,
    %c0_255 = arith.constant 0 : index
    %c50_256 = arith.constant 50 : index
    %339 = vector.load %arg11[%c0_255, %c50_256] : memref<32x324xbf16, #tpu.memory_space<vmem>>, vector<32x256xbf16>
    %c224_257 = arith.constant 224 : index
    %c0_258 = arith.constant 0 : index
    %340 = vector.load %arg10[%c224_257, %c0_258] : memref<800x256xbf16, #tpu.memory_space<vmem>>, vector<32x256xbf16>
    tpu.vector_store %arg10[%c224_257, %c0_258], %339 {strides = array<i32>} : memref<800x256xbf16, #tpu.memory_space<vmem>>, vector<32x256xbf16>,
    %c0_259 = arith.constant 0 : index
    %c51_260 = arith.constant 51 : index
    %341 = vector.load %arg11[%c0_259, %c51_260] : memref<32x324xbf16, #tpu.memory_space<vmem>>, vector<32x256xbf16>
    %cst_261 = arith.constant 0.000000e+00 : bf16
    %342 = vector.broadcast %cst_261 : bf16 to vector<32x256xbf16>
    %343 = vector.shape_cast %8 : vector<1x256xi1> to vector<1x256xi1>
    %344 = vector.broadcast %343 : vector<1x256xi1> to vector<32x256xi1>
    %345 = arith.select %344, %341, %342 : vector<32x256xi1>, vector<32x256xbf16>
    %c256_262 = arith.constant 256 : index
    %c0_263 = arith.constant 0 : index
    %346 = vector.load %arg10[%c256_262, %c0_263] : memref<800x256xbf16, #tpu.memory_space<vmem>>, vector<32x256xbf16>
    tpu.vector_store %arg10[%c256_262, %c0_263], %345 {strides = array<i32>} : memref<800x256xbf16, #tpu.memory_space<vmem>>, vector<32x256xbf16>,
    %c0_264 = arith.constant 0 : index
    %c0_265 = arith.constant 0 : index
    %347 = vector.load %arg6[%c0_264, %c0_265] : memref<32x288xbf16, #tpu.memory_space<vmem>>, vector<32x288xbf16>
    %c0_266 = arith.constant 0 : index
    %c0_267 = arith.constant 0 : index
    %348 = vector.load %arg10[%c0_266, %c0_267] : memref<800x256xbf16, #tpu.memory_space<vmem>>, vector<288x256xbf16>
    %cst_268 = arith.constant dense<0.000000e+00> : vector<32x256xf32>
    %349 = tpu.matmul %347, %348, %cst_268 {dimension_numbers = #tpu.dot_dimension_numbers<[1], [0], [0], [1], [0, 0, 1, 1], [], []>} : vector<32x288xbf16>, vector<288x256xbf16>, vector<32x256xf32> -> vector<32x256xf32>
    %c0_269 = arith.constant 0 : index
    %c0_270 = arith.constant 0 : index
    %350 = vector.load %arg7[%c0_269, %c0_270] : memref<32x1xf32, #tpu.memory_space<vmem>>, vector<32x1xf32>
    %351 = vector.broadcast %350 : vector<32x1xf32> to vector<32x256xf32>
    %352 = arith.mulf %349, %351 : vector<32x256xf32>
    %c0_271 = arith.constant 0 : index
    %c0_272 = arith.constant 0 : index
    %353 = vector.load %arg8[%c0_271, %c0_272] : memref<32x1xf32, #tpu.memory_space<vmem>>, vector<32x1xf32>
    %354 = vector.broadcast %353 : vector<32x1xf32> to vector<32x256xf32>
    %355 = arith.addf %352, %354 : vector<32x256xf32>
    %356 = arith.addf %15, %355 : vector<32x256xf32>
    %cst_273 = arith.constant 0.000000e+00 : f32
    %357 = vector.broadcast %cst_273 : f32 to vector<32x256xf32>
    %358 = arith.maximumf %356, %357 : vector<32x256xf32>
    %c0_274 = arith.constant 0 : index
    %c0_275 = arith.constant 0 : index
    %c0_276 = arith.constant 0 : index
    %359 = vector.load %arg9[%c0_274, %c0_275, %c0_276] : memref<1x32x256xf32, #tpu.memory_space<vmem>>, vector<1x32x256xf32>
    %360 = vector.shape_cast %359 : vector<1x32x256xf32> to vector<32x256xf32>
    %361 = vector.shape_cast %358 : vector<32x256xf32> to vector<1x32x256xf32>
    tpu.vector_store %arg9[%c0_274, %c0_275, %c0_276], %361 {strides = array<i32>} : memref<1x32x256xf32, #tpu.memory_space<vmem>>, vector<1x32x256xf32>,
    return
  }
  func.func @transform_0(%arg0: i32) -> (i32, i32, i32) {
    %c0_i32 = arith.constant 0 : i32
    %c0_i32_0 = arith.constant 0 : i32
    %c0_i32_1 = arith.constant 0 : i32
    return %arg0, %c0_i32, %c0_i32_0 : i32, i32, i32
  }
  func.func @transform_1(%arg0: i32) -> (i32, i32) {
    %c0_i32 = arith.constant 0 : i32
    %c0_i32_0 = arith.constant 0 : i32
    %c0_i32_1 = arith.constant 0 : i32
    return %c0_i32, %c0_i32_0 : i32, i32
  }
  func.func @transform_2(%arg0: i32) -> (i32, i32) {
    %c0_i32 = arith.constant 0 : i32
    %c0_i32_0 = arith.constant 0 : i32
    %c0_i32_1 = arith.constant 0 : i32
    return %c0_i32, %c0_i32_0 : i32, i32
  }
  func.func @transform_3(%arg0: i32) -> (i32, i32) {
    %c0_i32 = arith.constant 0 : i32
    %c0_i32_0 = arith.constant 0 : i32
    %c0_i32_1 = arith.constant 0 : i32
    return %c0_i32, %c0_i32_0 : i32, i32
  }
  func.func @transform_4(%arg0: i32) -> (i32, i32) {
    %c0_i32 = arith.constant 0 : i32
    %c0_i32_0 = arith.constant 0 : i32
    %c0_i32_1 = arith.constant 0 : i32
    return %c0_i32, %c0_i32_0 : i32, i32
  }
  func.func @transform_5(%arg0: i32) -> (i32, i32) {
    %c0_i32 = arith.constant 0 : i32
    %c0_i32_0 = arith.constant 0 : i32
    %c0_i32_1 = arith.constant 0 : i32
    return %c0_i32, %c0_i32_0 : i32, i32
  }
  func.func @transform_6(%arg0: i32) -> (i32, i32) {
    %c0_i32 = arith.constant 0 : i32
    %c0_i32_0 = arith.constant 0 : i32
    %c0_i32_1 = arith.constant 0 : i32
    return %c0_i32, %c0_i32_0 : i32, i32
  }
  func.func @transform_7(%arg0: i32) -> (i32, i32) {
    %c0_i32 = arith.constant 0 : i32
    %c0_i32_0 = arith.constant 0 : i32
    %c0_i32_1 = arith.constant 0 : i32
    return %c0_i32, %c0_i32_0 : i32, i32
  }
  func.func @transform_8(%arg0: i32) -> (i32, i32, i32) {
    %c0_i32 = arith.constant 0 : i32
    %c0_i32_0 = arith.constant 0 : i32
    %c0_i32_1 = arith.constant 0 : i32
    return %arg0, %c0_i32, %c0_i32_0 : i32, i32, i32
  }
}

</mosaic_0001>

<bundles_post_ra>
// kernel: mfam0_forward.1
= control target key start
LH: loop header
LB: loop body
LE: loop exit
PB: predicated region body
PF: predicated region fallthrough
CT: control target
= control target key end

     0   :  { %s5126_s27 = smov 0   ;;  %s7705_s0 = inlined_call_operand.vmem [shape: f32[2,32,256], index: 0, kind: input, shape index: {}]   ;;  %s7706_s1 = inlined_call_operand.vmem [shape: bf16[64,800], index: 1, kind: input, shape index: {}]   ;;  %s7707_s2 = inlined_call_operand.vmem [shape: f32[64,1], index: 2, kind: input, shape index: {}]   ;;  %s7708_s3 = inlined_call_operand.vmem [shape: bf16[64,800], index: 3, kind: input, shape index: {}]   ;;  %s7709_s4 = inlined_call_operand.vmem [shape: f32[64,1], index: 4, kind: input, shape index: {}]   ;;  %s7710_s5 = inlined_call_operand.vmem [shape: bf16[32,288], index: 5, kind: input, shape index: {}]   ;;  %s7711_s6 = inlined_call_operand.vmem [shape: f32[32,1], index: 6, kind: input, shape index: {}]   ;;  %s7712_s7 = inlined_call_operand.vmem [shape: f32[32,1], index: 7, kind: input, shape index: {}]   ;;  %s7713_s8 = inlined_call_operand.vmem [shape: f32[2,32,256], index: 8, kind: output, shape index: {}]  }
   0x1 LB: > { %s4654_s28 = sadd.s32 4294967295, %s5035_s27   ;;  %p4658_p0 = scmp.ge.s32.totalorder %s5035_s27, 1  ;;  %s5035_s27 = sphi %s5126_s27, %s18_s27  }
   0x2   : > { %p262_p1 = scmp.lt.s32.totalorder %s5035_s27, 3 }
   0x4   : > { %p263_p2 = pnand %p4658_p0, %p262_p1 }
   0x6   : > { %266 = sbr.rel (%p263_p2) target bundleno = 2212 (0x8a4), region = 52 }
   0xd   : > { %p296_p3 = scmp.lt.s32.totalorder %s4654_s28, 1  ;;  %v309_v0 = vlaneseq  ;;  %vm7874_vm0 = vcmask 277504   ;;  %v7730_v1 = vmov 0   ;;  %vm325_vm1 = vcmask 556304   ;;  %s5038_s11 = smov 34  }
   0xe   : > { %324 = vst.msk [vmem:[#allocation3 + $0x18] sm:$0xff] %vm7874_vm0, %v7730_v1  ;;  %323 = vst.msk [vmem:[#allocation3] sm:$0xff] %vm7874_vm0, %v7730_v1  ;;  %2194 = vmatprep.mubr.bf16.mxu1 %v7730_v1  ;;  %4932 = vset.pattern.permute.xlu1 %v7730_v1  ;;  %s5039_s12 = smov 1   ;;  %s5040_s13 = smov 3   ;;  %vm7875_vm14 = vcmask 1047824  }
   0xf   : > { %s8284_s28 = smov (!%p296_p3, %s4654_s28), 1  ;;  %v310_v2 = vand.u32 127, %v309_v0  ;;  %327 = vst.msk [vmem:[#allocation3 + $0x28] sm:$0xff] %vm325_vm1, %v7730_v1  ;;  %326 = vst.msk [vmem:[#allocation3 + $0x10] sm:$0xff] %vm325_vm1, %v7730_v1  ;;  %4931 = vset.pattern.permute.xlu0 %v7730_v1  ;;  %v379_v5 = vshrl.u32 %v309_v0, 7  ;;  %s5041_s14 = smov 4  }
  0x10   : > { %s7792_s29 = sshll.u32 %s8284_s28, 6  ;;  %s5042_s15 = smov 16  }
  0x11   : > { %v311_v3 = vadd.s32 128, %v310_v2  ;;  %v312_v4 = vand.u32 15, %v310_v2  ;;  %s5151_s10 = scalar_lea.vmem %s7705_s0, %s7792_s29  ;;  %v384_v18 = vsub.s32 4, %v379_v5  ;;  %v380_v21 = vsub.s32 0, %v379_v5  ;;  %s5043_s16 = smov 17  }
  0x12   : > { %v332_v6 = vld [vmem:[%s5151_s10 + $0x20] sm:$0xff]  ;;  %v334_v7 = vld [vmem:[%s5151_s10 + $0x30] sm:$0xff]  ;;  %v333_v12 = vld [vmem:[%s5151_s10 + $0x28] sm:$0xff]  ;;  %s5044_s17 = smov 19   ;;  %s5045_s18 = smov 20  }
  0x13   : > { %v328_v8 = vld [vmem:[%s5151_s10] sm:$0xff]  ;;  %v313_v9 = vand.u32 15, %v311_v3  ;;  %vm316_vm2 = vcmp.ge.s32.totalorder %v312_v4, 1  ;;  %v338_v10 = vpack.c.bf16 %v334_v7, %v332_v6  ;;  %v330_v11 = vld [vmem:[%s5151_s10 + $0x10] sm:$0xff]  ;;  %v335_v13 = vld [vmem:[%s5151_s10 + $0x38] sm:$0xff]  ;;  %vm318_vm4 = vcmp.lt.s32.totalorder %v312_v4, 15 }
  0x14   : > { %v336_v14 = vpack.c.bf16 %v330_v11, %v328_v8  ;;  %v329_v15 = vld [vmem:[%s5151_s10 + $0x8] sm:$0xff]  ;;  %v331_v16 = vld [vmem:[%s5151_s10 + $0x18] sm:$0xff]  ;;  %v339_v17 = vpack.c.bf16 %v335_v13, %v333_v12  ;;  %vm320_vm7 = vcmp.lt.s32.totalorder %v312_v4, 14  ;;  %vm314_vm11 = vcmp.ge.s32.totalorder %v312_v4, 2  ;;  %s5046_s19 = smov 32   ;;  %s5047_s20 = smov 33  }
  0x15   : > { %vm317_vm3 = vcmp.ge.s32.totalorder %v313_v9, 1  ;;  %vm319_vm5 = vcmp.lt.s32.totalorder %v313_v9, 15  ;;  %348 = vrot.lane.b32.xlu1 %v338_v10, %s5038_s11  ;;  %vm321_vm8 = vcmp.lt.s32.totalorder %v313_v9, 14  ;;  %v337_v19 = vpack.c.bf16 %v331_v16, %v329_v15  ;;  %s5048_s21 = smov 35   ;;  %s5049_s22 = smov 36  }
  0x16   : > { %vm406_vm6 = vmpackc.low %vm317_vm3, %vm316_vm2  ;;  %344 = vrot.lane.b32.xlu0 %v336_v14, %s5038_s11  ;;  %vm315_vm12 = vcmp.ge.s32.totalorder %v313_v9, 2  ;;  %s5050_s23 = smov 48   ;;  %s5051_s24 = smov 126  }
  0x17   : > { %v407_v20 = vsel %vm406_vm6, 65537, %v7730_v1  ;;  %vm509_vm9 = vmpackc.low %vm319_vm5, %vm318_vm4  ;;  %s5052_s25 = smov 110   ;;  %s5053_s26 = smov 127  }
  0x18   : > { %vm575_vm10 = vmpackc.low %vm321_vm8, %vm320_vm7  ;;  %v5166_v22 = vrot.slane %v407_v20, %v384_v18  ;;  %v5169_v23 = vrot.slane %v407_v20, %v380_v21  ;;  %v510_v24 = vsel %vm509_vm9, 65537, %v7730_v1  ;;  %s5054_s30 = smov 125   ;;  %s5055_s9 = smov 124  }
  0x19   : > { %350 = vrot.lane.b32.xlu1 %v339_v17, %s5038_s11  ;;  %vm376_vm13 = vmpackc.low %vm315_vm12, %vm314_vm11  ;;  %v5173_v25 = vrot.slane %v510_v24, %v384_v18  ;;  %v5176_v26 = vrot.slane %v510_v24, %v380_v21  ;;  %v576_v27 = vsel %vm575_vm10, 65537, %v7730_v1  ;;  %vm420_vm12 = vcmask 7168   ;;  %s7795_s29 = smov 79  }
  0x1a   : > { %346 = vrot.lane.b32.xlu0 %v337_v19, %s5038_s11  ;;  %v5180_v28 = vrot.slane %v576_v27, %v384_v18  ;;  %v5183_v29 = vrot.slane %v576_v27, %v380_v21  ;;  %v377_v30 = vsel %vm376_vm13, 65537, %v7730_v1  ;;  %vm523_vm13 = vcmask 23552  }
  0x1b   : > { %v5187_v31 = vrot.slane %v377_v30, %v384_v18  ;;  %v5190_v32 = vrot.slane %v377_v30, %v380_v21 }
  0x1d   : > { %418 = vrot.lane.b32.xlu1 %v5166_v22, %s5039_s12  ;;  %vm387_vm15 = vcmp.ne.s16.totalorder %v5187_v31, 0  ;;  %vm386_vm1 = vcmp.ne.s16.totalorder %v5190_v32, 0 }
  0x1e   : > { %416 = vrot.lane.b32.xlu0 %v5169_v23, %s5039_s12  ;;  %s5056_s12 = smov 112  }
  0x21   : > { %521 = vrot.lane.b32.xlu1 %v5173_v25, %s5040_s13 }
  0x22   : > { %519 = vrot.lane.b32.xlu0 %v5176_v26, %s5040_s13  ;;  %s5057_s13 = smov 111  }
  0x25   : > { %587 = vrot.lane.b32.xlu1 %v5180_v28, %s5041_s14 }
  0x26   : > { %585 = vrot.lane.b32.xlu0 %v5183_v29, %s5041_s14  ;;  %s5058_s14 = smov 109  }
  0x29   : > { %639 = vrot.lane.b32.xlu1 %v5187_v31, %s5042_s15 }
  0x2a   : > { %637 = vrot.lane.b32.xlu0 %v5190_v32, %s5042_s15  ;;  %s5059_s15 = smov 49  }
  0x2d   : > { %691 = vrot.lane.b32.xlu1 %v5166_v22, %s5043_s16 }
  0x2e   : > { %689 = vrot.lane.b32.xlu0 %v5169_v23, %s5043_s16  ;;  %s5060_s16 = smov 108  }
  0x31   : > { %780 = vrot.lane.b32.xlu1 %v5173_v25, %s5044_s17 }
  0x32   : > { %778 = vrot.lane.b32.xlu0 %v5176_v26, %s5044_s17  ;;  %s7801_s17 = smov 93  }
  0x35   : > { %830 = vrot.lane.b32.xlu1 %v5183_v29, %s5045_s18 }
  0x36   : > { %832 = vrot.lane.b32.xlu0 %v5180_v28, %s5045_s18  ;;  %s5068_s18 = smov 65  }
  0x39   : > { %882 = vrot.lane.b32.xlu1 %v5190_v32, %s5046_s19 }
  0x3a   : > { %884 = vrot.lane.b32.xlu0 %v5187_v31, %s5046_s19  ;;  %s5061_s19 = smov 96  }
  0x3d   : > { %934 = vrot.lane.b32.xlu1 %v5169_v23, %s5047_s20 }
  0x3e   : > { %936 = vrot.lane.b32.xlu0 %v5166_v22, %s5047_s20  ;;  %s5062_s20 = smov 51  }
  0x41   : > { %1023 = vrot.lane.b32.xlu1 %v5176_v26, %s5048_s21 }
  0x42   : > { %1025 = vrot.lane.b32.xlu0 %v5173_v25, %s5048_s21  ;;  %s7850_s21 = smov 95  }
  0x45   : > { %1075 = vrot.lane.b32.xlu1 %v5183_v29, %s5049_s22 }
  0x46   : > { %1077 = vrot.lane.b32.xlu0 %v5180_v28, %s5049_s22  ;;  %s5064_s22 = smov 52  }
  0x49   : > { %1127 = vrot.lane.b32.xlu1 %v5190_v32, %s5050_s23 }
  0x4a   : > { %1129 = vrot.lane.b32.xlu0 %v5187_v31, %s5050_s23  ;;  %s7848_s23 = smov 94  }
  0x87   : > { %v349_v33 = vpop.permute.xlu1 %348 }
  0x88   : > { %365 = vst.msk [vmem:[#allocation3 + $0x18] sm:$0xff] %vm7875_vm14, %v349_v33  ;;  %v345_v34 = vpop.permute.xlu0 %344 }
  0x89   : > { %362 = vst.msk [vmem:[#allocation3] sm:$0xff] %vm7875_vm14, %v345_v34 }
  0x8b   : > { %v351_v35 = vpop.permute.xlu1 %350 }
  0x8c   : > { %v5214_v36 = vsel %vm7874_vm0, %v349_v33, %v351_v35  ;;  %367 = vst.msk [vmem:[#allocation3 + $0x28] sm:$0xff] %vm7874_vm0, %v351_v35  ;;  %v347_v37 = vpop.permute.xlu0 %346 }
  0x8d   : > { %366 = vst [vmem:[#allocation3 + $0x20] sm:$0xff] %v5214_v36  ;;  %v5219_v38 = vsel %vm7874_vm0, %v345_v34, %v347_v37  ;;  %364 = vst.msk [vmem:[#allocation3 + $0x10] sm:$0xff] %vm7874_vm0, %v347_v37 }
  0x8e   : > { %363 = vst [vmem:[#allocation3 + $0x8] sm:$0xff] %v5219_v38  ;;  %4739 = vmatprep.subr.msk.bf16.mxu0 %vm387_vm15, %v5219_v38 }
  0x8f   : > { %v5229_v40 = vld [vmem:[#allocation3 + $0x18] sm:$0xff]  ;;  %v5257_v46 = vpop.permute.xlu1 %418 }
  0x90   : > { %v5227_v39 = vld [vmem:[#allocation3] sm:$0xff]  ;;  %v390_v43 = vsel %vm386_vm1, %v5229_v40, 0  ;;  %v5250_v45 = vpop.permute.xlu0 %416  ;;  %vm424_vm3 = vcmp.ne.s16.totalorder %v5257_v46, 0 }
  0x91   : > { %474 = vrot.lane.b32.xlu0 %v5227_v39, %s5051_s24  ;;  %v388_v41 = vsel %vm386_vm1, %v5227_v39, 0  ;;  %vm422_vm2 = vcmp.ne.s16.totalorder %v5250_v45, 0  ;;  %v5368_v11 = vsel %vm420_vm12, %v5250_v45, %v5257_v46 }
  0x92   : > { %1944 = vmatpush1.bf16.msra.mxu0 %v388_v41  ;;  %v425_v47 = vsel %vm422_vm2, %v5227_v39, 0  ;;  %v428_v51 = vsel %vm422_vm2, %v5229_v40, 0  ;;  %7908 = vst [vmem:[#allocation6_spill] sm:$0xff] %v5368_v11 }
  0x93   : > { %v5236_v42 = vld [vmem:[#allocation3 + $0x28] sm:$0xff]  ;;  %4740 = vmatprep.subr.msk.bf16.mxu0 %vm387_vm15, %v5214_v36  ;;  %v5283_v52 = vpop.permute.xlu1 %521 }
  0x94   : > { %v5244_v44 = vld [vmem:[#allocation3 + $0x10] sm:$0xff]  ;;  %v430_v49 = vsel %vm424_vm3, %v5236_v42, 0  ;;  %v5274_v50 = vpop.permute.xlu0 %519  ;;  %vm7839_vm5 = vcmp.ne.s16.totalorder %v5283_v52, 0 }
  0x95   : > { %484 = vrot.lane.b32.xlu0 %v5236_v42, %s5051_s24  ;;  %478 = vrot.lane.b32.xlu1 %v5244_v44, %s5051_s24  ;;  %v427_v48 = vsel %vm424_vm3, %v5244_v44, 0  ;;  %vm525_vm4 = vcmp.ne.s16.totalorder %v5274_v50, 0  ;;  %v530_v55 = vsel %vm7839_vm5, %v5244_v44, 0  ;;  %v533_v56 = vsel %vm7839_vm5, %v5236_v42, 0 }
  0x96   : > { %1946 = vmatpush1.bf16.msra.mxu0 %v390_v43  ;;  %v528_v53 = vsel %vm525_vm4, %v5227_v39, 0  ;;  %v531_v58 = vsel %vm525_vm4, %v5229_v40, 0  ;;  %v5379_v13 = vsel %vm523_vm13, %v5274_v50, %v5283_v52  ;;  %vm7843_vm5 = vcmask 646144  }
  0x97   : > { %v5303_v57 = vpop.permute.xlu1 %587  ;;  %7909 = vst [vmem:[#allocation7_spill] sm:$0xff] %v5379_v13  ;;  %vm7718_vm12 = vcmp.ne.s16.totalorder %v5379_v13, 0 }
  0x98   : > { %v5292_v54 = vpop.permute.xlu0 %585  ;;  %vm7780_vm7 = vcmp.ne.s16.totalorder %v5303_v57, 0  ;;  %v529_v17 = vsel %vm7718_vm12, %v5219_v38, 0  ;;  %v532_v19 = vsel %vm7718_vm12, %v5214_v36, 0  ;;  %vm782_vm12 = vcmask 154624  }
  0x99   : > { %747 = vrot.lane.b32.xlu0 %v5227_v39, %s5052_s25  ;;  %480 = vrot.lane.b32.xlu1 %v5229_v40, %s5051_s24  ;;  %vm7838_vm6 = vcmp.ne.s16.totalorder %v5292_v54, 0  ;;  %v596_v61 = vsel %vm7780_vm7, %v5244_v44, 0  ;;  %v599_v62 = vsel %vm7780_vm7, %v5236_v42, 0  ;;  %vm7786_vm7 = vcmask 1031168  }
  0x9a   : > { %v594_v59 = vsel %vm7838_vm6, %v5227_v39, 0  ;;  %v597_v0 = vsel %vm7838_vm6, %v5229_v40, 0 }
  0x9b   : > { %v5325_v63 = vpop.permute.xlu1 %639 }
  0x9c   : > { %v5314_v60 = vpop.permute.xlu0 %637  ;;  %vm7714_vm9 = vcmp.ne.s16.totalorder %v5325_v63, 0 }
  0x9d   : > { %751 = vrot.lane.b32.xlu1 %v5244_v44, %s5052_s25  ;;  %437 = vrot.lane.b32.xlu0 %v425_v47, %s5053_s26  ;;  %vm7728_vm8 = vcmp.ne.s16.totalorder %v5314_v60, 0  ;;  %v648_v4 = vsel %vm7714_vm9, %v5244_v44, 0  ;;  %v651_v5 = vsel %vm7714_vm9, %v5236_v42, 0  ;;  %vm7717_vm9 = vcmp.ne.s16.totalorder %v5368_v11, 0 }
  0x9e   : > { %v646_v2 = vsel %vm7728_vm8, %v5227_v39, 0  ;;  %v649_v7 = vsel %vm7728_vm8, %v5229_v40, 0  ;;  %v426_v14 = vsel %vm7717_vm9, %v5219_v38, 0  ;;  %v429_v16 = vsel %vm7717_vm9, %v5214_v36, 0 }
  0x9f   : > { %v5347_v6 = vpop.permute.xlu1 %691 }
  0xa0   : > { %v5336_v3 = vpop.permute.xlu0 %689  ;;  %7907 = vst [vmem:[#allocation5_spill] sm:$0xff] %v5347_v6  ;;  %vm7715_vm11 = vcmp.ne.s16.totalorder %v5347_v6, 0 }
  0xa1   : > { %441 = vrot.lane.b32.xlu1 %v427_v48, %s5053_s26  ;;  %447 = vrot.lane.b32.xlu0 %v430_v49, %s5053_s26  ;;  %7906 = vst [vmem:[#allocation4_spill] sm:$0xff] %v5336_v3  ;;  %vm7716_vm10 = vcmp.ne.s16.totalorder %v5336_v3, 0  ;;  %v700_v9 = vsel %vm7715_vm11, %v5244_v44, 0  ;;  %v703_v10 = vsel %vm7715_vm11, %v5236_v42, 0  ;;  %vm589_vm11 = vcmask 31744  }
  0xa2   : > { %v698_v8 = vsel %vm7716_vm10, %v5227_v39, 0  ;;  %v701_v12 = vsel %vm7716_vm10, %v5229_v40, 0  ;;  %v5390_v15 = vsel %vm589_vm11, %v5292_v54, %v5303_v57  ;;  %vm641_vm10 = vcmask 130048  }
  0xa3   : > { %7910 = vst [vmem:[#allocation8_spill] sm:$0xff] %v5390_v15  ;;  %vm7721_vm13 = vcmp.ne.s16.totalorder %v5390_v15, 0  ;;  %v5403_v18 = vsel %vm641_vm10, %v5314_v60, %v5325_v63  ;;  %vm693_vm11 = vcmask 138240   ;;  %v5427_v30 = vpop.permute.xlu1 %780 }
  0xa4   : > { %7911 = vst [vmem:[#allocation9_spill] sm:$0xff] %v5403_v18  ;;  %v595_v20 = vsel %vm7721_vm13, %v5219_v38, 0  ;;  %vm7719_vm9 = vcmp.ne.s16.totalorder %v5403_v18, 0  ;;  %v5416_v21 = vsel %vm693_vm11, %v5336_v3, %v5347_v6  ;;  %v598_v24 = vsel %vm7721_vm13, %v5214_v36, 0  ;;  %7913 = vst [vmem:[#allocation11_spill] sm:$0xff] %v5427_v30  ;;  %v5429_v33 = vpop.permute.xlu0 %778 }
  0xa5   : > { %443 = vrot.lane.b32.xlu1 %v428_v51, %s5053_s26  ;;  %476 = vrot.lane.b32.xlu0 %v5219_v38, %s5051_s24  ;;  %7912 = vst [vmem:[#allocation10_spill] sm:$0xff] %v5416_v21  ;;  %v647_v27 = vsel %vm7719_vm9, %v5219_v38, 0  ;;  %vm7720_vm10 = vcmp.ne.s16.totalorder %v5416_v21, 0  ;;  %7914 = vst [vmem:[#allocation12_spill] sm:$0xff] %v5429_v33  ;;  %v650_v34 = vsel %vm7719_vm9, %v5214_v36, 0  ;;  %v5441_v37 = vsel %vm782_vm12, %v5429_v33, %v5427_v30 }
  0xa6   : > { %v699_v35 = vsel %vm7720_vm10, %v5219_v38, 0  ;;  %7915 = vst [vmem:[#allocation13_spill] sm:$0xff] %v5441_v37  ;;  %v702_v41 = vsel %vm7720_vm10, %v5214_v36, 0  ;;  %vm7722_vm11 = vcmp.ne.s16.totalorder %v5441_v37, 0  ;;  %vm7723_vm12 = vcmp.ne.s16.totalorder %v5427_v30, 0 }
  0xa7   : > { %v788_v47 = vsel %vm7722_vm11, %v5219_v38, 0  ;;  %vm7724_vm9 = vcmp.ne.s16.totalorder %v5429_v33, 0  ;;  %v5457_v48 = vpop.permute.xlu1 %830  ;;  %v789_v51 = vsel %vm7723_vm12, %v5244_v44, 0  ;;  %vm834_vm10 = vcmask 162816  }
  0xa8   : > { %v5447_v43 = vpop.permute.xlu0 %832  ;;  %7917 = vst [vmem:[#allocation15_spill] sm:$0xff] %v5457_v48 }
  0xa9   : > { %482 = vrot.lane.b32.xlu1 %v5214_v36, %s5051_s24  ;;  %540 = vrot.lane.b32.xlu0 %v528_v53, %s5054_s30  ;;  %7916 = vst [vmem:[#allocation14_spill] sm:$0xff] %v5447_v43  ;;  %v787_v53 = vsel %vm7724_vm9, %v5227_v39, 0 }
  0xac   : > { %v5462_v49 = vpop.permute.xlu0 %884 }
  0xad   : > { %544 = vrot.lane.b32.xlu1 %v530_v55, %s5054_s30  ;;  %550 = vrot.lane.b32.xlu0 %v533_v56, %s5054_s30  ;;  %7918 = vst [vmem:[#allocation16_spill] sm:$0xff] %v5462_v49  ;;  %v5472_v55 = vpop.permute.xlu1 %882 }
  0xae   : > { %7919 = vst [vmem:[#allocation17_spill] sm:$0xff] %v5472_v55 }
  0xb0   : > { %v5474_v56 = vpop.permute.xlu0 %936 }
  0xb1   : > { %546 = vrot.lane.b32.xlu1 %v531_v58, %s5054_s30  ;;  %606 = vrot.lane.b32.xlu0 %v594_v59, %s5055_s9  ;;  %7920 = vst [vmem:[#allocation18_spill] sm:$0xff] %v5474_v56  ;;  %v5480_v58 = vsel %vm834_vm10, %v5457_v48, %v5447_v43  ;;  %v791_v59 = vsel %vm7722_vm11, %v5214_v36, 0  ;;  %vm7727_vm10 = vcmp.ne.s16.totalorder %v5457_v48, 0  ;;  %vm7726_vm11 = vcmp.ne.s16.totalorder %v5447_v43, 0 }
  0xb2   : > { %7921 = vst [vmem:[#allocation19_spill] sm:$0xff] %v5480_v58  ;;  %vm7725_vm13 = vcmp.ne.s16.totalorder %v5480_v58, 0 }
  0xb5   : > { %610 = vrot.lane.b32.xlu1 %v596_v61, %s5055_s9  ;;  %616 = vrot.lane.b32.xlu0 %v599_v62, %s5055_s9  ;;  %v792_v61 = vsel %vm7723_vm12, %v5236_v42, 0  ;;  %v5489_v62 = vpop.permute.xlu1 %934  ;;  %vm886_vm12 = vcmask 261120  }
  0xb6   : > { %7922 = vst [vmem:[#allocation20_spill] sm:$0xff] %v5489_v62 }
  0xb9   : > { %612 = vrot.lane.b32.xlu1 %v597_v0, %s5055_s9  ;;  %658 = vrot.lane.b32.xlu0 %v646_v2, %s5056_s12  ;;  %v5493_v0 = vpop.permute.xlu0 %1025  ;;  %v790_v2 = vsel %vm7724_vm9, %v5229_v40, 0 }
  0xba   : > { %7923 = vst [vmem:[#allocation21_spill] sm:$0xff] %v5493_v0 }
  0xbd   : > { %662 = vrot.lane.b32.xlu1 %v648_v4, %s5056_s12  ;;  %668 = vrot.lane.b32.xlu0 %v651_v5, %s5056_s12  ;;  %v840_v4 = vsel %vm7725_vm13, %v5219_v38, 0  ;;  %v5505_v5 = vpop.permute.xlu1 %1023 }
  0xbe   : > { %7924 = vst [vmem:[#allocation22_spill] sm:$0xff] %v5505_v5 }
  0xc1   : > { %664 = vrot.lane.b32.xlu1 %v649_v7, %s5056_s12  ;;  %710 = vrot.lane.b32.xlu0 %v698_v8, %s5057_s13  ;;  %v841_v7 = vsel %vm7726_vm11, %v5244_v44, 0  ;;  %v839_v8 = vsel %vm7727_vm10, %v5227_v39, 0 }
  0xc5   : > { %714 = vrot.lane.b32.xlu1 %v700_v9, %s5057_s13  ;;  %720 = vrot.lane.b32.xlu0 %v703_v10, %s5057_s13  ;;  %v4935_v9 = vld [vmem:[%s7706_s1 + $0x4] ss:$28 sps:$4 sm:$0xff]   ;;  %v5516_v10 = vpop.permute.xlu0 %1077 }
  0xc6   : > { %1975 = vmatprep.mubr.bf16.mxu0 %v4935_v9 }
  0xc9   : > { %716 = vrot.lane.b32.xlu1 %v701_v12, %s5057_s13  ;;  %749 = vrot.lane.b32.xlu0 %v5219_v38, %s5052_s25  ;;  %v5523_v12 = vsel %vm886_vm12, %v5472_v55, %v5462_v49 }
  0xca   : > { %7925 = vst [vmem:[#allocation23_spill] sm:$0xff] %v5523_v12  ;;  %vm7729_vm9 = vcmp.ne.s16.totalorder %v5523_v12, 0 }
  0xcd   : > { %755 = vrot.lane.b32.xlu1 %v5214_v36, %s5052_s25  ;;  %439 = vrot.lane.b32.xlu0 %v426_v14, %s5053_s26  ;;  %v843_v14 = vsel %vm7725_vm13, %v5214_v36, 0  ;;  %vm7768_vm13 = vcmp.ne.s16.totalorder %v5472_v55, 0 }
  0xce   : > { %v894_v9 = vsel %vm7768_vm13, %v5229_v40, 0 }
  0xd1   : > { %445 = vrot.lane.b32.xlu1 %v429_v16, %s5053_s26  ;;  %542 = vrot.lane.b32.xlu0 %v529_v17, %s5054_s30  ;;  %v844_v16 = vsel %vm7726_vm11, %v5236_v42, 0  ;;  %v5532_v17 = vpop.permute.xlu1 %1075  ;;  %vm7759_vm11 = vcmp.ne.s16.totalorder %v5462_v49, 0 }
  0xd5   : > { %548 = vrot.lane.b32.xlu1 %v532_v19, %s5054_s30  ;;  %608 = vrot.lane.b32.xlu0 %v595_v20, %s5055_s9  ;;  %v5536_v19 = vpop.permute.xlu0 %1129  ;;  %v842_v20 = vsel %vm7727_vm10, %v5229_v40, 0  ;;  %vm938_vm10 = vcmask 269312  }
  0xd9   : > { %614 = vrot.lane.b32.xlu1 %v598_v24, %s5055_s9  ;;  %660 = vrot.lane.b32.xlu0 %v647_v27, %s5056_s12  ;;  %v892_v24 = vsel %vm7729_vm9, %v5219_v38, 0  ;;  %v5548_v27 = vpop.permute.xlu1 %1127 }
  0xdd   : > { %666 = vrot.lane.b32.xlu1 %v650_v34, %s5056_s12  ;;  %712 = vrot.lane.b32.xlu0 %v699_v35, %s5057_s13  ;;  %v893_v35 = vsel %vm7759_vm11, %v5244_v44, 0 }
  0xe1   : > { %718 = vrot.lane.b32.xlu1 %v702_v41, %s5057_s13  ;;  %757 = vrot.lane.b32.xlu0 %v5236_v42, %s5052_s25  ;;  %v891_v41 = vsel %vm7768_vm13, %v5227_v39, 0 }
  0xe5   : > { %753 = vrot.lane.b32.xlu1 %v5229_v40, %s5052_s25  ;;  %801 = vrot.lane.b32.xlu0 %v788_v47, %s5058_s14 }
  0xe9   : > { %803 = vrot.lane.b32.xlu1 %v789_v51, %s5058_s14  ;;  %799 = vrot.lane.b32.xlu0 %v787_v53, %s5058_s14  ;;  %v5568_v53 = vsel %vm938_vm10, %v5489_v62, %v5474_v56  ;;  %vm7750_vm10 = vcmp.ne.s16.totalorder %v5489_v62, 0 }
  0xea   : > { %7926 = vst [vmem:[#allocation24_spill] sm:$0xff] %v5568_v53  ;;  %vm7738_vm8 = vcmp.ne.s16.totalorder %v5568_v53, 0  ;;  %v946_v12 = vsel %vm7750_vm10, %v5229_v40, 0 }
  0xed   : > { %1179 = vrot.lane.b32.xlu1 %v5169_v23, %s5059_s15  ;;  %1181 = vrot.lane.b32.xlu0 %v5166_v22, %s5059_s15  ;;  %s7835_s15 = smov 64  }
  0xf1   : > { %807 = vrot.lane.b32.xlu1 %v791_v59, %s5058_s14  ;;  %809 = vrot.lane.b32.xlu0 %v792_v61, %s5058_s14 }
  0xf5   : > { %805 = vrot.lane.b32.xlu1 %v790_v2, %s5058_s14  ;;  %853 = vrot.lane.b32.xlu0 %v840_v4, %s5060_s16  ;;  %v895_v2 = vsel %vm7729_vm9, %v5214_v36, 0  ;;  %v896_v4 = vsel %vm7759_vm11, %v5236_v42, 0  ;;  %vm7743_vm9 = vcmp.ne.s16.totalorder %v5474_v56, 0  ;;  %vm1079_vm11 = vcmask 293888  }
  0xf6   : > { %v5698_v43 = vsel %vm1079_vm11, %v5532_v17, %v5516_v10  ;;  %vm7783_vm11 = vcmask 1039360  }
  0xf7   : > { %vm7784_vm13 = vcmp.ne.s16.totalorder %v5698_v43, 0 }
  0xf9   : > { %855 = vrot.lane.b32.xlu1 %v841_v7, %s5060_s16  ;;  %851 = vrot.lane.b32.xlu0 %v839_v8, %s5060_s16 }
  0xfd   : > { %859 = vrot.lane.b32.xlu1 %v843_v14, %s5060_s16  ;;  %861 = vrot.lane.b32.xlu0 %v844_v16, %s5060_s16  ;;  %v944_v14 = vsel %vm7738_vm8, %v5219_v38, 0 }
 0x101   : > { %857 = vrot.lane.b32.xlu1 %v842_v20, %s5060_s16  ;;  %905 = vrot.lane.b32.xlu0 %v892_v24, %s5061_s19  ;;  %v945_v24 = vsel %vm7743_vm9, %v5244_v44, 0 }
 0x103   : > { %v5550_v34 = vpop.permute.xlu0 %474 }
 0x105   : > { %907 = vrot.lane.b32.xlu1 %v893_v35, %s5061_s19  ;;  %903 = vrot.lane.b32.xlu0 %v891_v41, %s5061_s19  ;;  %v943_v35 = vsel %vm7750_vm10, %v5227_v39, 0  ;;  %vm7776_vm10 = vcmp.ne.s16.totalorder %v5493_v0, 0 }
 0x106   : > { %v1034_v62 = vsel %vm7776_vm10, %v5244_v44, 0 }
 0x107   : > { %v5560_v47 = vpop.permute.xlu1 %478  ;;  %v5562_v51 = vpop.permute.xlu0 %484 }
 0x109   : > { %1268 = vrot.lane.b32.xlu1 %v5176_v26, %s5062_s20  ;;  %1270 = vrot.lane.b32.xlu0 %v5173_v25, %s5062_s20  ;;  %s7799_s20 = smov 92  }
 0x10b   : > { %v5570_v59 = vpop.permute.xlu1 %480  ;;  %v5572_v61 = vpop.permute.xlu0 %747 }
 0x10d   : > { %911 = vrot.lane.b32.xlu1 %v895_v2, %s5061_s19  ;;  %913 = vrot.lane.b32.xlu0 %v896_v4, %s5061_s19 }
 0x10f   : > { %v5583_v7 = vpop.permute.xlu1 %751  ;;  %v5585_v8 = vpop.permute.xlu0 %437 }
 0x111   : > { %909 = vrot.lane.b32.xlu1 %v894_v9, %s5061_s19  ;;  %957 = vrot.lane.b32.xlu0 %v944_v14, %s7850_s21  ;;  %v947_v14 = vsel %vm7738_vm8, %v5214_v36, 0  ;;  %vm1027_vm8 = vcmask 285696  }
 0x113   : > { %v5597_v16 = vpop.permute.xlu1 %441  ;;  %v5599_v20 = vpop.permute.xlu0 %447 }
 0x115   : > { %959 = vrot.lane.b32.xlu1 %v945_v24, %s7850_s21  ;;  %955 = vrot.lane.b32.xlu0 %v943_v35, %s7850_s21  ;;  %v948_v24 = vsel %vm7743_vm9, %v5236_v42, 0 }
 0x117   : > { %v5609_v41 = vpop.permute.xlu1 %443  ;;  %v5611_v2 = vpop.permute.xlu0 %476 }
 0x119   : > { %1320 = vrot.lane.b32.xlu1 %v5183_v29, %s5064_s22  ;;  %1322 = vrot.lane.b32.xlu0 %v5180_v28, %s5064_s22  ;;  %s7797_s22 = smov 80  }
 0x11b   : > { %v5615_v4 = vpop.permute.xlu1 %482  ;;  %v5617_v9 = vpop.permute.xlu0 %540 }
 0x11d   : > { %963 = vrot.lane.b32.xlu1 %v947_v14, %s7850_s21  ;;  %965 = vrot.lane.b32.xlu0 %v948_v24, %s7850_s21 }
 0x11f   : > { %v5627_v35 = vpop.permute.xlu1 %544  ;;  %v5629_v1 = vpop.permute.xlu0 %550 }
 0x121   : > { %961 = vrot.lane.b32.xlu1 %v946_v12, %s7850_s21  ;;  %994 = vrot.lane.b32.xlu0 %v5219_v38, %s7848_s23  ;;  %v5655_v12 = vsel %vm1027_vm8, %v5505_v5, %v5493_v0  ;;  %vm7777_vm8 = vcmp.ne.s16.totalorder %v5505_v5, 0  ;;  %s8102_s21 = smov 62  }
 0x122   : > { %7927 = vst [vmem:[#allocation25_spill] sm:$0xff] %v5655_v12  ;;  %vm7775_vm9 = vcmp.ne.s16.totalorder %v5655_v12, 0  ;;  %v1032_v49 = vsel %vm7777_vm8, %v5227_v39, 0  ;;  %v1035_v33 = vsel %vm7777_vm8, %v5229_v40, 0  ;;  %v1085_v12 = vsel %vm7784_vm13, %v5219_v38, 0 }
 0x123   : > { %v5637_v53 = vpop.permute.xlu1 %546  ;;  %v5639_v58 = vpop.permute.xlu0 %606  ;;  %v1033_v13 = vsel %vm7775_vm9, %v5219_v38, 0  ;;  %vm1131_vm8 = vcmask 392192  }
 0x125   : > { %996 = vrot.lane.b32.xlu1 %v5244_v44, %s7848_s23  ;;  %992 = vrot.lane.b32.xlu0 %v5227_v39, %s7848_s23 }
 0x127   : > { %v5645_v14 = vpop.permute.xlu1 %610  ;;  %v5647_v24 = vpop.permute.xlu0 %616 }
 0x129   : > { %1372 = vrot.lane.b32.xlu1 %v5190_v32, %s7835_s15  ;;  %1374 = vrot.lane.b32.xlu0 %v5187_v31, %s7835_s15 }
 0x12b   : > { %v5657_v37 = vpop.permute.xlu1 %612  ;;  %v5659_v21 = vpop.permute.xlu0 %658 }
 0x12d   : > { %1000 = vrot.lane.b32.xlu1 %v5214_v36, %s7848_s23  ;;  %1002 = vrot.lane.b32.xlu0 %v5236_v42, %s7848_s23 }
 0x12f   : > { %v5666_v18 = vpop.permute.xlu1 %662  ;;  %v5668_v15 = vpop.permute.xlu0 %668 }
 0x131   : > { %998 = vrot.lane.b32.xlu1 %v5229_v40, %s7848_s23  ;;  %1046 = vrot.lane.b32.xlu0 %v1033_v13, %s7801_s17  ;;  %s8123_s23 = smov 60  }
 0x133   : > { %v5678_v11 = vpop.permute.xlu1 %664  ;;  %v5680_v56 = vpop.permute.xlu0 %710 }
 0x135   : > { %1048 = vrot.lane.b32.xlu1 %v1034_v62, %s7801_s17  ;;  %1044 = vrot.lane.b32.xlu0 %v1032_v49, %s7801_s17  ;;  %v1036_v49 = vsel %vm7775_vm9, %v5214_v36, 0  ;;  %v1037_v62 = vsel %vm7776_vm10, %v5236_v42, 0  ;;  %vm7821_vm9 = vcmp.ne.s16.totalorder %v5532_v17, 0  ;;  %vm7785_vm10 = vcmp.ne.s16.totalorder %v5516_v10, 0 }
 0x137   : > { %v5690_v55 = vpop.permute.xlu1 %714  ;;  %v5692_v13 = vpop.permute.xlu0 %720 }
 0x139   : > { %1423 = vrot.lane.b32.xlu1 %v5169_v23, %s5068_s18  ;;  %1425 = vrot.lane.b32.xlu0 %v5166_v22, %s5068_s18  ;;  %s5071_s18 = smov 67  }
 0x13b   : > { %v5700_v48 = vpop.permute.xlu1 %716  ;;  %v5702_v30 = vpop.permute.xlu0 %749 }
 0x13d   : > { %1052 = vrot.lane.b32.xlu1 %v1036_v49, %s7801_s17  ;;  %1054 = vrot.lane.b32.xlu0 %v1037_v62, %s7801_s17 }
 0x13f   : > { %v5713_v22 = vpop.permute.xlu1 %755  ;;  %v440_v23 = vpop.permute.xlu0 %439 }
 0x140   : > { %v451_v0 = vsel %vm7783_vm11, %v440_v23, %v5597_v16  ;;  %v450_v49 = vsel %vm7783_vm11, %v5585_v8, %v440_v23  ;;  %v1086_v16 = vsel %vm7785_vm10, %v5244_v44, 0  ;;  %v1084_v8 = vsel %vm7821_vm9, %v5227_v39, 0 }
 0x141   : > { %1050 = vrot.lane.b32.xlu1 %v1035_v33, %s7801_s17  ;;  %1098 = vrot.lane.b32.xlu0 %v1085_v12, %s7799_s20  ;;  %s7831_s17 = smov 62  }
 0x142   : > { %1947 = vmatprep.subr.bf16.mxu0 %v451_v0  ;;  %v5743_v0 = vsel %vm1131_vm8, %v5548_v27, %v5536_v19 }
 0x143   : > { %1948 = vmatpush1.bf16.msra.mxu0 %v450_v49  ;;  %v446_v62 = vpop.permute.xlu1 %445  ;;  %v543_v5 = vpop.permute.xlu0 %542  ;;  %v488_v49 = vsel %vm7786_vm7, %v5611_v2, %v5560_v47  ;;  %vm7788_vm8 = vcmp.ne.s16.totalorder %v5743_v0, 0  ;;  %v487_v47 = vsel %vm7786_vm7, %v5550_v34, %v5611_v2  ;;  %v489_v34 = vsel %vm7786_vm7, %v5570_v59, %v5615_v4 }
 0x144   : > { %v453_v33 = vsel %vm7783_vm11, %v446_v62, %v5599_v20  ;;  %v452_v12 = vsel %vm7783_vm11, %v5609_v41, %v446_v62  ;;  %v1088_v20 = vsel %vm7784_vm13, %v5214_v36, 0  ;;  %v1089_v41 = vsel %vm7785_vm10, %v5236_v42, 0 }
 0x145   : > { %1100 = vrot.lane.b32.xlu1 %v1086_v16, %s7799_s20  ;;  %1096 = vrot.lane.b32.xlu0 %v1084_v8, %s7799_s20  ;;  %v490_v16 = vsel %vm7786_vm7, %v5615_v4, %v5562_v51  ;;  %vm7787_vm11 = vcmask 1022976   ;;  %vm7789_vm13 = vcmp.ne.s16.totalorder %v5548_v27, 0  ;;  %vm7790_vm10 = vcmp.ne.s16.totalorder %v5536_v19, 0 }
 0x146   : > { %1949 = vmatprep.subr.bf16.mxu0 %v453_v33  ;;  %v1087_v33 = vsel %vm7821_vm9, %v5229_v40, 0  ;;  %v554_v2 = vsel %vm7787_vm11, %v543_v5, %v5627_v35  ;;  %v553_v59 = vsel %vm7787_vm11, %v5617_v9, %v543_v5  ;;  %vm7791_vm7 = vcmask 1014784  }
 0x147   : > { %1950 = vmatpush1.bf16.msra.mxu0 %v452_v12  ;;  %v549_v23 = vpop.permute.xlu1 %548  ;;  %v609_v6 = vpop.permute.xlu0 %608  ;;  %v1137_v12 = vsel %vm7788_vm8, %v5219_v38, 0  ;;  %vm7826_vm9 = vcmask 760832  }
 0x148   : > { %1951 = vmatprep.subr.bf16.mxu0 %v488_v49  ;;  %v556_v35 = vsel %vm7787_vm11, %v549_v23, %v5629_v1  ;;  %v620_v9 = vsel %vm7791_vm7, %v609_v6, %v5645_v14  ;;  %v1140_v1 = vsel %vm7788_vm8, %v5214_v36, 0  ;;  %vm1183_vm8 = vcmask 400384  }
 0x149   : > { %1104 = vrot.lane.b32.xlu1 %v1088_v20, %s7799_s20  ;;  %1106 = vrot.lane.b32.xlu0 %v1089_v41, %s7799_s20  ;;  %v1138_v20 = vsel %vm7790_vm10, %v5244_v44, 0  ;;  %v1136_v41 = vsel %vm7789_vm13, %v5227_v39, 0 }
 0x14b   : > { %1952 = vmatpush1.bf16.msra.mxu0 %v487_v47  ;;  %v615_v62 = vpop.permute.xlu1 %614  ;;  %v5763_v8 = vpop.permute.xlu0 %660 }
 0x14c   : > { %1953 = vmatprep.subr.bf16.mxu0 %v490_v16  ;;  %v555_v16 = vsel %vm7787_vm11, %v5637_v53, %v549_v23  ;;  %v622_v14 = vsel %vm7791_vm7, %v615_v62, %v5647_v24  ;;  %vm7793_vm11 = vcmask 916480  }
 0x14d   : > { %1102 = vrot.lane.b32.xlu1 %v1087_v33, %s7799_s20  ;;  %1150 = vrot.lane.b32.xlu0 %v1137_v12, %s7797_s22  ;;  %v1139_v12 = vsel %vm7789_vm13, %v5229_v40, 0  ;;  %v672_v24 = vsel %vm7793_vm11, %v5763_v8, %v5666_v18  ;;  %s7846_s20 = smov 61  }
 0x14f   : > { %1954 = vmatpush1.bf16.msra.mxu0 %v489_v34  ;;  %v5778_v51 = vpop.permute.xlu1 %666  ;;  %v5782_v49 = vpop.permute.xlu0 %712 }
 0x150   : > { %1955 = vmatprep.subr.bf16.mxu0 %v554_v2 }
 0x151   : > { %1152 = vrot.lane.b32.xlu1 %v1138_v20, %s7797_s22  ;;  %1148 = vrot.lane.b32.xlu0 %v1136_v41, %s7797_s22 }
 0x153   : > { %1956 = vmatpush1.bf16.msra.mxu0 %v553_v59  ;;  %v5794_v4 = vpop.permute.xlu1 %718  ;;  %v5798_v47 = vpop.permute.xlu0 %757 }
 0x154   : > { %1957 = vmatprep.subr.bf16.mxu0 %v556_v35 }
 0x155   : > { %1512 = vrot.lane.b32.xlu1 %v5176_v26, %s5071_s18  ;;  %1514 = vrot.lane.b32.xlu0 %v5173_v25, %s5071_s18  ;;  %v1141_v25 = vsel %vm7790_vm10, %v5236_v42, 0  ;;  %v619_v26 = vsel %vm7791_vm7, %v5639_v58, %v609_v6  ;;  %s5072_s18 = smov 68   ;;  %v621_v6 = vsel %vm7791_vm7, %v5657_v37, %v615_v62  ;;  %v674_v62 = vsel %vm7793_vm11, %v5778_v51, %v5668_v15 }
 0x157   : > { %1958 = vmatpush1.bf16.msra.mxu0 %v555_v16  ;;  %v5804_v5 = vpop.permute.xlu1 %753  ;;  %v5808_v33 = vpop.permute.xlu0 %801 }
 0x158   : > { %1959 = vmatprep.subr.bf16.mxu0 %v620_v9 }
 0x159   : > { %1156 = vrot.lane.b32.xlu1 %v1140_v1, %s7797_s22  ;;  %1158 = vrot.lane.b32.xlu0 %v1141_v25, %s7797_s22 }
 0x15b   : > { %1960 = vmatpush1.bf16.msra.mxu0 %v619_v26  ;;  %v5820_v53 = vpop.permute.xlu1 %803  ;;  %v5824_v23 = vpop.permute.xlu0 %799 }
 0x15c   : > { %1961 = vmatprep.subr.bf16.mxu0 %v622_v14 }
 0x15d   : > { %1154 = vrot.lane.b32.xlu1 %v1139_v12, %s7797_s22  ;;  %1564 = vrot.lane.b32.xlu0 %v5183_v29, %s5072_s18  ;;  %v671_v29 = vsel %vm7793_vm11, %v5659_v21, %v5763_v8  ;;  %s8024_s22 = smov 80  }
 0x15f   : > { %1962 = vmatpush1.bf16.msra.mxu0 %v621_v6  ;;  %v5833_v58 = vpop.permute.xlu1 %1179  ;;  %v5838_v34 = vpop.permute.xlu0 %1181 }
 0x160   : > { %7928 = vst [vmem:[#allocation26_spill] sm:$0xff] %v5833_v58  ;;  %7929 = vst [vmem:[#allocation27_spill] sm:$0xff] %v5838_v34  ;;  %1963 = vmatprep.subr.bf16.mxu0 %v672_v24  ;;  %v5842_v2 = vsel %vm1183_vm8, %v5833_v58, %v5838_v34  ;;  %vm7806_vm10 = vcmp.ne.s16.totalorder %v5838_v34, 0  ;;  %vm7805_vm7 = vcmp.ne.s16.totalorder %v5833_v58, 0  ;;  %vm7794_vm8 = vcmask 908288  }
 0x161   : > { %vm7804_vm13 = vcmp.ne.s16.totalorder %v5842_v2, 0  ;;  %1566 = vrot.lane.b32.xlu1 %v5180_v28, %s5072_s18  ;;  %v1190_v21 = vsel %vm7806_vm10, %v5244_v44, 0  ;;  %v1188_v15 = vsel %vm7805_vm7, %v5227_v39, 0  ;;  %v724_v20 = vsel %vm7794_vm8, %v5782_v49, %v5690_v55  ;;  %s7807_s18 = smov 78  }
 0x162   : > { %v1189_v18 = vsel %vm7804_vm13, %v5219_v38, 0  ;;  %v673_v38 = vsel %vm7793_vm11, %v5678_v11, %v5778_v51  ;;  %v1192_v11 = vsel %vm7804_vm13, %v5214_v36, 0  ;;  %v723_v39 = vsel %vm7794_vm8, %v5680_v56, %v5782_v49  ;;  %v5905_v49 = vld [vmem:[#allocation3 + $0x8] sm:$0xff] }
 0x163   : > { %1964 = vmatpush1.bf16.msra.mxu0 %v671_v29  ;;  %v5854_v37 = vpop.permute.xlu1 %807  ;;  %1202 = vrot.lane.b32.xlu0 %v1189_v18, %s7795_s29  ;;  %v5860_v28 = vpop.permute.xlu0 %809  ;;  %v1193_v51 = vsel %vm7806_vm10, %v5236_v42, 0  ;;  %v726_v59 = vsel %vm7794_vm8, %v5794_v4, %v5692_v13  ;;  %v1191_v56 = vsel %vm7805_vm7, %v5229_v40, 0  ;;  %vm7803_vm11 = vcmask 900096  }
 0x164   : > { %1965 = vmatprep.subr.bf16.mxu0 %v674_v62  ;;  %v725_v42 = vsel %vm7794_vm8, %v5700_v48, %v5794_v4  ;;  %v761_v35 = vsel %vm7803_vm11, %v5702_v30, %v5583_v7  ;;  %v760_v48 = vsel %vm7803_vm11, %v5572_v61, %v5702_v30  ;;  %v5919_v4 = vld [vmem:[#allocation3] sm:$0xff]  ;;  %v763_v7 = vsel %vm7803_vm11, %v5713_v22, %v5798_v47  ;;  %v5937_v61 = vld [vmem:[#allocation3 + $0x28] sm:$0xff]  ;;  %v4938_v62 = vld [vmem:[%s7706_s1 + $0x38] ss:$28 sps:$4 sm:$0xff]  }
 0x165   : > { %1204 = vrot.lane.b32.xlu1 %v1190_v21, %s7795_s29  ;;  %vm7809_vm8 = vcmask 891904   ;;  %v762_v30 = vsel %vm7803_vm11, %v5804_v5, %v5713_v22  ;;  %v4933_v47 = vld [vmem:[%s7706_s1] ss:$28 sps:$4 sm:$0xff]   ;;  %vm1272_vm11 = vcmask 416768   ;;  %vm7810_vm13 = vcmask 883712  }
 0x166   : > { %v813_v25 = vsel %vm7809_vm8, %v5808_v33, %v5820_v53  ;;  %v4936_v22 = vld [vmem:[%s7706_s1 + $0x3c] ss:$28 sps:$4 sm:$0xff]   ;;  %v812_v14 = vsel %vm7809_vm8, %v5824_v23, %v5808_v33  ;;  %v815_v12 = vsel %vm7809_vm8, %v5854_v37, %v5860_v28  ;;  %v5969_v33 = vld [vmem:[#allocation3 + $0x10] sm:$0xff] }
 0x167   : > { %1966 = vmatpush1.bf16.msra.mxu0 %v673_v38  ;;  %v5872_v8 = vpop.permute.xlu1 %805  ;;  %1200 = vrot.lane.b32.xlu0 %v1188_v15, %s7795_s29  ;;  %v5878_v41 = vpop.permute.xlu0 %853  ;;  %v5950_v5 = vld [vmem:[#allocation3 + $0x18] sm:$0xff]  ;;  %v4939_v38 = vld [vmem:[%s7706_s1 + $0x74] ss:$28 sps:$4 sm:$0xff]  }
 0x168   : > { %1967 = vmatprep.subr.bf16.mxu0 %v724_v20  ;;  %v814_v29 = vsel %vm7809_vm8, %v5872_v8, %v5854_v37  ;;  %vm7816_vm8 = vcmask 785408  }
 0x169   : > { %1208 = vrot.lane.b32.xlu1 %v1192_v11, %s7795_s29 }
 0x16b   : > { %1968 = vmatpush1.bf16.msra.mxu0 %v723_v39  ;;  %v5890_v55 = vpop.permute.xlu1 %855  ;;  %1210 = vrot.lane.b32.xlu0 %v1193_v51, %s7795_s29  ;;  %v5896_v36 = vpop.permute.xlu0 %851 }
 0x16c   : > { %1969 = vmatprep.subr.bf16.mxu0 %v726_v59  ;;  %v865_v21 = vsel %vm7810_vm13, %v5878_v41, %v5890_v55  ;;  %v864_v8 = vsel %vm7810_vm13, %v5896_v36, %v5878_v41  ;;  %v4941_v36 = vld [vmem:[%s7706_s1 + $0x70] ss:$28 sps:$4 sm:$0xff]  }
 0x16d   : > { %1206 = vrot.lane.b32.xlu1 %v1191_v56, %s7795_s29  ;;  %s7814_s29 = smov 77  }
 0x16f   : > { %1970 = vmatpush1.bf16.msra.mxu0 %v725_v42  ;;  %v5907_v13 = vpop.permute.xlu1 %859  ;;  %1239 = vrot.lane.b32.xlu0 %v5905_v49, %s7807_s18  ;;  %v862_v40 = vpop.permute.xlu0 %861 }
 0x170   : > { %1971 = vmatprep.subr.bf16.mxu0 %v761_v35  ;;  %v867_v39 = vsel %vm7810_vm13, %v5907_v13, %v862_v40 }
 0x171   : > { %1241 = vrot.lane.b32.xlu1 %v5244_v44, %s7807_s18  ;;  %v5930_v44 = vld [vmem:[#allocation3 + $0x20] sm:$0xff] }
 0x173   : > { %1972 = vmatpush1.bf16.msra.mxu0 %v760_v48  ;;  %v5921_v16 = vpop.permute.xlu1 %857  ;;  %1237 = vrot.lane.b32.xlu0 %v5919_v4, %s7807_s18  ;;  %v5928_v9 = vpop.permute.xlu0 %905 }
 0x174   : > { %1973 = vmatprep.subr.bf16.mxu0 %v763_v7  ;;  %v866_v55 = vsel %vm7810_vm13, %v5921_v16, %v5907_v13  ;;  %v4942_v13 = vld [vmem:[%s7706_s1 + $0xac] ss:$28 sps:$4 sm:$0xff]   ;;  %vm1324_vm13 = vcmask 424960  }
 0x175   : > { %1245 = vrot.lane.b32.xlu1 %v5930_v44, %s7807_s18 }
 0x177   : > { %1974 = vmatpush1.bf16.msra.mxu0 %v762_v30  ;;  %v908_v1 = vpop.permute.xlu1 %907  ;;  %1247 = vrot.lane.b32.xlu0 %v5937_v61, %s7807_s18  ;;  %v904_v26 = vpop.permute.xlu0 %903 }
 0x178   : > { %2016 = vmatprep.subr.bf16.mxu0 %v813_v25  ;;  %v917_v42 = vsel %vm7816_vm8, %v5928_v9, %v908_v1  ;;  %v916_v40 = vsel %vm7816_vm8, %v904_v26, %v5928_v9  ;;  %v4944_v25 = vld [vmem:[%s7706_s1 + $0xa8] ss:$28 sps:$4 sm:$0xff]  }
 0x179   : > { %1243 = vrot.lane.b32.xlu1 %v5950_v5, %s7807_s18  ;;  %s7840_s18 = smov 76  }
 0x17a   : > { %1976 = vmatmul.mubr.bf16.vlgmr.msra.gmra.mrb[0].mxu0 %v4933_v47 }
 0x17b   : > { %2017 = vmatpush1.bf16.msra.mxu0 %v812_v14  ;;  %v5957_v53 = vpop.permute.xlu1 %1268  ;;  %v5962_v6 = vpop.permute.xlu0 %1270  ;;  %1985 = vmatprep.mubr.bf16.mxu0 %v4936_v22 }
 0x17c   : > { %7930 = vst [vmem:[#allocation28_spill] sm:$0xff] %v5957_v53  ;;  %7931 = vst [vmem:[#allocation29_spill] sm:$0xff] %v5962_v6  ;;  %2018 = vmatprep.subr.bf16.mxu0 %v815_v12  ;;  %v5966_v24 = vsel %vm1272_vm11, %v5957_v53, %v5962_v6  ;;  %vm7813_vm7 = vcmp.ne.s16.totalorder %v5962_v6, 0  ;;  %vm7812_vm11 = vcmp.ne.s16.totalorder %v5957_v53, 0  ;;  %v4947_v12 = vld [vmem:[%s7706_s1 + $0xc] ss:$28 sps:$4 sm:$0xff]  }
 0x17d   : > { %vm7811_vm10 = vcmp.ne.s16.totalorder %v5966_v24, 0  ;;  %v1279_v23 = vsel %vm7813_vm7, %v5969_v33, 0  ;;  %v1277_v20 = vsel %vm7812_vm11, %v5919_v4, 0  ;;  %v1280_v41 = vsel %vm7812_vm11, %v5950_v5, 0 }
 0x17e   : > { %1293 = vrot.lane.b32.xlu1 %v1279_v23, %s7814_s29  ;;  %v1278_v18 = vsel %vm7811_vm10, %v5905_v49, 0  ;;  %v1281_v15 = vsel %vm7811_vm10, %v5930_v44, 0  ;;  %v1282_v59 = vsel %vm7813_vm7, %v5937_v61, 0  ;;  %vm7817_vm10 = vcmask 777216  }
 0x17f   : > { %2019 = vmatpush1.bf16.msra.mxu0 %v814_v29  ;;  %v912_v28 = vpop.permute.xlu1 %911  ;;  %1291 = vrot.lane.b32.xlu0 %v1278_v18, %s7814_s29  ;;  %v914_v37 = vpop.permute.xlu0 %913 }
 0x180   : > { %2020 = vmatprep.subr.bf16.mxu0 %v865_v21  ;;  %v919_v16 = vsel %vm7816_vm8, %v912_v28, %v914_v37 }
 0x182   : > { %1297 = vrot.lane.b32.xlu1 %v1281_v15, %s7814_s29  ;;  %1986 = vmatmul.mubr.bf16.gmra.mrb[4].mxu0 %v4938_v62 }
 0x183   : > { %2021 = vmatpush1.bf16.msra.mxu0 %v864_v8  ;;  %v910_v11 = vpop.permute.xlu1 %909  ;;  %1289 = vrot.lane.b32.xlu0 %v1277_v20, %s7814_s29  ;;  %v958_v51 = vpop.permute.xlu0 %957 }
 0x184   : > { %2022 = vmatprep.subr.bf16.mxu0 %v867_v39  ;;  %1995 = vmatprep.mubr.bf16.mxu0 %v4939_v38  ;;  %v918_v47 = vsel %vm7816_vm8, %v910_v11, %v912_v28  ;;  %vm7822_vm8 = vcmask 769024  }
 0x186   : > { %1295 = vrot.lane.b32.xlu1 %v1280_v41, %s7814_s29 }
 0x187   : > { %2023 = vmatpush1.bf16.msra.mxu0 %v866_v55  ;;  %v960_v56 = vpop.permute.xlu1 %959  ;;  %1299 = vrot.lane.b32.xlu0 %v1282_v59, %s7814_s29  ;;  %v956_v35 = vpop.permute.xlu0 %955  ;;  %s7833_s29 = smov 63  }
 0x188   : > { %2024 = vmatprep.subr.bf16.mxu0 %v917_v42  ;;  %v969_v22 = vsel %vm7817_vm10, %v958_v51, %v960_v56  ;;  %v968_v29 = vsel %vm7817_vm10, %v956_v35, %v958_v51 }
 0x18a   : > { %1996 = vmatmul.mubr.bf16.gmra.mrb[8].mxu0 %v4941_v36 }
 0x18b   : > { %2025 = vmatpush1.bf16.msra.mxu0 %v916_v40  ;;  %v6027_v48 = vpop.permute.xlu1 %1320  ;;  %v6030_v7 = vpop.permute.xlu0 %1322  ;;  %2005 = vmatprep.mubr.bf16.mxu0 %v4942_v13 }
 0x18c   : > { %2026 = vmatprep.subr.bf16.mxu0 %v919_v16  ;;  %v6034_v30 = vsel %vm1324_vm13, %v6027_v48, %v6030_v7  ;;  %vm7820_vm11 = vcmp.ne.s16.totalorder %v6030_v7, 0  ;;  %vm7818_vm13 = vcmp.ne.s16.totalorder %v6027_v48, 0 }
 0x18d   : > { %vm7819_vm7 = vcmp.ne.s16.totalorder %v6034_v30, 0  ;;  %v1331_v9 = vsel %vm7820_vm11, %v5969_v33, 0  ;;  %v1329_v18 = vsel %vm7818_vm13, %v5919_v4, 0  ;;  %v1332_v38 = vsel %vm7818_vm13, %v5950_v5, 0 }
 0x18e   : > { %1345 = vrot.lane.b32.xlu1 %v1331_v9, %s7840_s18  ;;  %v1330_v1 = vsel %vm7819_vm7, %v5905_v49, 0  ;;  %v1333_v23 = vsel %vm7819_vm7, %v5930_v44, 0  ;;  %v1334_v15 = vsel %vm7820_vm11, %v5937_v61, 0 }
 0x18f   : > { %2027 = vmatpush1.bf16.msra.mxu0 %v918_v47  ;;  %v964_v26 = vpop.permute.xlu1 %963  ;;  %1343 = vrot.lane.b32.xlu0 %v1330_v1, %s7840_s18  ;;  %v966_v14 = vpop.permute.xlu0 %965 }
 0x190   : > { %2028 = vmatprep.subr.bf16.mxu0 %v969_v22  ;;  %v971_v28 = vsel %vm7817_vm10, %v964_v26, %v966_v14 }
 0x192   : > { %1349 = vrot.lane.b32.xlu1 %v1333_v23, %s7840_s18  ;;  %2006 = vmatmul.mubr.bf16.gmra.mrb[12].mxu0 %v4944_v25 }
 0x193   : > { %2029 = vmatpush1.bf16.msra.mxu0 %v968_v29  ;;  %v962_v62 = vpop.permute.xlu1 %961  ;;  %1341 = vrot.lane.b32.xlu0 %v1329_v18, %s7840_s18  ;;  %v995_v21 = vpop.permute.xlu0 %994 }
 0x194   : > { %v970_v37 = vsel %vm7817_vm10, %v962_v62, %v964_v26  ;;  %2030 = vmatprep.subr.bf16.mxu0 %v971_v28  ;;  %2048 = vmatprep.mubr.bf16.mxu0 %v4947_v12  ;;  %vm7854_vm10 = vcmask 523264  }
 0x196   : > { %1347 = vrot.lane.b32.xlu1 %v1332_v38, %s7840_s18 }
 0x197   : > { %2031 = vmatpush1.bf16.msra.mxu0 %v970_v37  ;;  %v997_v8 = vpop.permute.xlu1 %996  ;;  %1351 = vrot.lane.b32.xlu0 %v1334_v15, %s7840_s18  ;;  %v993_v20 = vpop.permute.xlu0 %992  ;;  %s8035_s18 = smov 79  }
 0x198   : > { %v1005_v11 = vsel %vm7822_vm8, %v993_v20, %v995_v21  ;;  %v1006_v39 = vsel %vm7822_vm8, %v995_v21, %v997_v8 }
 0x199   : > { %2032 = vmatprep.subr.bf16.mxu0 %v1006_v39 }
 0x19b   : > { %2033 = vmatpush1.bf16.msra.mxu0 %v1005_v11  ;;  %v6076_v51 = vpop.permute.xlu1 %1372  ;;  %v6078_v41 = vpop.permute.xlu0 %1374 }
 0x19c   : > { %v6083_v55 = vsel %vm7854_vm10, %v6076_v51, %v6078_v41  ;;  %vm7825_vm13 = vcmp.ne.s16.totalorder %v6078_v41, 0  ;;  %vm7824_vm11 = vcmp.ne.s16.totalorder %v6076_v51, 0 }
 0x19d   : > { %vm7823_vm7 = vcmp.ne.s16.totalorder %v6083_v55, 0  ;;  %v1383_v59 = vsel %vm7825_vm13, %v5969_v33, 0  ;;  %v1381_v40 = vsel %vm7824_vm11, %v5919_v4, 0  ;;  %v1384_v1 = vsel %vm7824_vm11, %v5950_v5, 0 }
 0x19e   : > { %1397 = vrot.lane.b32.xlu1 %v1383_v59, %s7835_s15  ;;  %v1382_v36 = vsel %vm7823_vm7, %v5905_v49, 0  ;;  %v1385_v13 = vsel %vm7823_vm7, %v5930_v44, 0  ;;  %v1386_v25 = vsel %vm7825_vm13, %v5937_v61, 0 }
 0x19f   : > { %v1001_v56 = vpop.permute.xlu1 %1000  ;;  %1395 = vrot.lane.b32.xlu0 %v1382_v36, %s7835_s15  ;;  %v1003_v42 = vpop.permute.xlu0 %1002 }
 0x1a0   : > { %v1008_v35 = vsel %vm7822_vm8, %v1001_v56, %v1003_v42 }
 0x1a1   : > { %2034 = vmatprep.subr.bf16.mxu0 %v1008_v35 }
 0x1a2   : > { %1401 = vrot.lane.b32.xlu1 %v1385_v13, %s7835_s15 }
 0x1a3   : > { %v999_v16 = vpop.permute.xlu1 %998  ;;  %1393 = vrot.lane.b32.xlu0 %v1381_v40, %s7835_s15  ;;  %v1047_v9 = vpop.permute.xlu0 %1046 }
 0x1a4   : > { %v1007_v47 = vsel %vm7822_vm8, %v999_v16, %v1001_v56  ;;  %vm1427_vm8 = vcmask 531456  }
 0x1a5   : > { %2035 = vmatpush1.bf16.msra.mxu0 %v1007_v47 }
 0x1a6   : > { %1399 = vrot.lane.b32.xlu1 %v1384_v1, %s7835_s15 }
 0x1a7   : > { %v1049_v26 = vpop.permute.xlu1 %1048  ;;  %1403 = vrot.lane.b32.xlu0 %v1386_v25, %s7835_s15  ;;  %v1045_v22 = vpop.permute.xlu0 %1044  ;;  %s7844_s15 = smov 60  }
 0x1a8   : > { %v1057_v14 = vsel %vm7826_vm9, %v1045_v22, %v1047_v9  ;;  %v1058_v12 = vsel %vm7826_vm9, %v1047_v9, %v1049_v26 }
 0x1a9   : > { %2036 = vmatprep.subr.bf16.mxu0 %v1058_v12 }
 0x1aa   : > { %2037 = vmatpush1.bf16.msra.mxu0 %v1057_v14 }
 0x1ab   : > { %v6116_v23 = vpop.permute.xlu1 %1423  ;;  %v6118_v29 = vpop.permute.xlu0 %1425 }
 0x1ac   : > { %7932 = vst [vmem:[#allocation30_spill] sm:$0xff] %v6116_v23  ;;  %v6122_v18 = vsel %vm1427_vm8, %v6116_v23, %v6118_v29  ;;  %vm7830_vm7 = vcmp.ne.s16.totalorder %v6118_v29, 0  ;;  %vm7827_vm13 = vcmp.ne.s16.totalorder %v6116_v23, 0  ;;  %vm7828_vm8 = vcmask 752640  }
 0x1ad   : > { %7933 = vst [vmem:[#allocation31_spill] sm:$0xff] %v6122_v18  ;;  %vm7829_vm11 = vcmp.ne.s16.totalorder %v6122_v18, 0  ;;  %v1434_v62 = vsel %vm7830_vm7, %v5969_v33, 0  ;;  %v1432_v8 = vsel %vm7827_vm13, %v5919_v4, 0  ;;  %v1435_v59 = vsel %vm7827_vm13, %v5950_v5, 0 }
 0x1ae   : > { %1448 = vrot.lane.b32.xlu1 %v1434_v62, %s7833_s29  ;;  %v1433_v28 = vsel %vm7829_vm11, %v5905_v49, 0  ;;  %v1436_v15 = vsel %vm7829_vm11, %v5930_v44, 0  ;;  %v1437_v36 = vsel %vm7830_vm7, %v5937_v61, 0  ;;  %vm1516_vm13 = vcmask 547840  }
 0x1af   : > { %v1053_v21 = vpop.permute.xlu1 %1052  ;;  %1446 = vrot.lane.b32.xlu0 %v1433_v28, %s7833_s29  ;;  %v1055_v37 = vpop.permute.xlu0 %1054 }
 0x1b0   : > { %v1060_v38 = vsel %vm7826_vm9, %v1053_v21, %v1055_v37 }
 0x1b1   : > { %2038 = vmatprep.subr.bf16.mxu0 %v1060_v38 }
 0x1b2   : > { %1452 = vrot.lane.b32.xlu1 %v1436_v15, %s7833_s29 }
 0x1b3   : > { %v1051_v20 = vpop.permute.xlu1 %1050  ;;  %1444 = vrot.lane.b32.xlu0 %v1432_v8, %s7833_s29  ;;  %v1099_v11 = vpop.permute.xlu0 %1098 }
 0x1b4   : > { %v1059_v39 = vsel %vm7826_vm9, %v1051_v20, %v1053_v21  ;;  %vm7837_vm9 = vcmask 654336  }
 0x1b5   : > { %2039 = vmatpush1.bf16.msra.mxu0 %v1059_v39 }
 0x1b6   : > { %1450 = vrot.lane.b32.xlu1 %v1435_v59, %s7833_s29 }
 0x1b7   : > { %v1101_v56 = vpop.permute.xlu1 %1100  ;;  %1454 = vrot.lane.b32.xlu0 %v1437_v36, %s7833_s29  ;;  %v1097_v42 = vpop.permute.xlu0 %1096  ;;  %v4945_v36 = vld [vmem:[%s7706_s1 + $0x8] ss:$28 sps:$4 sm:$0xff]   ;;  %s8060_s29 = smov 76  }
 0x1b8   : > { %v1109_v35 = vsel %vm7828_vm8, %v1097_v42, %v1099_v11  ;;  %v1110_v13 = vsel %vm7828_vm8, %v1099_v11, %v1101_v56  ;;  %v4948_v42 = vld [vmem:[%s7706_s1 + $0x44] ss:$28 sps:$4 sm:$0xff]  }
 0x1b9   : > { %2040 = vmatprep.subr.bf16.mxu0 %v1110_v13 }
 0x1ba   : > { %1485 = vrot.lane.b32.xlu1 %v5969_v33, %s7831_s17  ;;  %2041 = vmatpush1.bf16.msra.mxu0 %v1109_v35 }
 0x1bb   : > { %v1105_v40 = vpop.permute.xlu1 %1104  ;;  %1483 = vrot.lane.b32.xlu0 %v5905_v49, %s7831_s17  ;;  %v1107_v16 = vpop.permute.xlu0 %1106 }
 0x1bc   : > { %v1112_v9 = vsel %vm7828_vm8, %v1105_v40, %v1107_v16 }
 0x1bd   : > { %2042 = vmatprep.subr.bf16.mxu0 %v1112_v9 }
 0x1be   : > { %1489 = vrot.lane.b32.xlu1 %v5930_v44, %s7831_s17 }
 0x1bf   : > { %v1103_v47 = vpop.permute.xlu1 %1102  ;;  %1481 = vrot.lane.b32.xlu0 %v5919_v4, %s7831_s17  ;;  %v1151_v1 = vpop.permute.xlu0 %1150 }
 0x1c0   : > { %v1111_v25 = vsel %vm7828_vm8, %v1103_v47, %v1105_v40 }
 0x1c1   : > { %2043 = vmatpush1.bf16.msra.mxu0 %v1111_v25 }
 0x1c2   : > { %1487 = vrot.lane.b32.xlu1 %v5950_v5, %s7831_s17 }
 0x1c3   : > { %v1153_v26 = vpop.permute.xlu1 %1152  ;;  %1491 = vrot.lane.b32.xlu0 %v5937_v61, %s7831_s17  ;;  %v1149_v22 = vpop.permute.xlu0 %1148  ;;  %s8072_s17 = smov 64  }
 0x1c4   : > { %v1161_v14 = vsel %vm7837_vm9, %v1149_v22, %v1151_v1  ;;  %v1162_v12 = vsel %vm7837_vm9, %v1151_v1, %v1153_v26 }
 0x1c5   : > { %2044 = vmatprep.subr.bf16.mxu0 %v1162_v12 }
 0x1c6   : > { %2045 = vmatpush1.bf16.msra.mxu0 %v1161_v14 }
 0x1c7   : > { %v6171_v62 = vpop.permute.xlu1 %1512  ;;  %v6173_v28 = vpop.permute.xlu0 %1514 }
 0x1c8   : > { %7934 = vst [vmem:[#allocation32_spill] sm:$0xff] %v6171_v62  ;;  %7935 = vst [vmem:[#allocation33_spill] sm:$0xff] %v6173_v28  ;;  %v6177_v21 = vsel %vm1516_vm13, %v6171_v62, %v6173_v28  ;;  %vm1520_vm8 = vcmp.ne.s16.totalorder %v6173_v28, 0  ;;  %vm7842_vm7 = vcmp.ne.s16.totalorder %v6171_v62, 0  ;;  %vm1568_vm13 = vcmask 556032  }
 0x1c9   : > { %7936 = vst [vmem:[#allocation34_spill] sm:$0xff] %v6177_v21  ;;  %vm1519_vm11 = vcmp.ne.s16.totalorder %v6177_v21, 0  ;;  %v1523_v37 = vsel %vm1520_vm8, %v5969_v33, 0  ;;  %v1521_v11 = vsel %vm7842_vm7, %v5919_v4, 0 }
 0x1ca   : > { %1537 = vrot.lane.b32.xlu1 %v1523_v37, %s7846_s20  ;;  %v1522_v38 = vsel %vm1519_vm11, %v5905_v49, 0  ;;  %v1525_v26 = vsel %vm1519_vm11, %v5930_v44, 0 }
 0x1cb   : > { %v1157_v15 = vpop.permute.xlu1 %1156  ;;  %1535 = vrot.lane.b32.xlu0 %v1522_v38, %s7846_s20  ;;  %v1159_v8 = vpop.permute.xlu0 %1158  ;;  %v1524_v38 = vsel %vm7842_vm7, %v5950_v5, 0  ;;  %vm7852_vm7 = vcmask 637952  }
 0x1cc   : > { %v1164_v20 = vsel %vm7837_vm9, %v1157_v15, %v1159_v8 }
 0x1cd   : > { %2046 = vmatprep.subr.bf16.mxu0 %v1164_v20 }
 0x1cf   : > { %v1155_v39 = vpop.permute.xlu1 %1154  ;;  %1533 = vrot.lane.b32.xlu0 %v1521_v11, %s7846_s20  ;;  %v6199_v56 = vpop.permute.xlu0 %1564  ;;  %v4953_v11 = vld [vmem:[%s7706_s1 + $0x78] ss:$28 sps:$4 sm:$0xff]  }
 0x1d0   : > { %v1163_v59 = vsel %vm7837_vm9, %v1155_v39, %v1157_v15  ;;  %7937 = vst [vmem:[#allocation35_spill] sm:$0xff] %v6199_v56  ;;  %v1526_v15 = vsel %vm1520_vm8, %v5937_v61, 0 }
 0x1d1   : > { %2047 = vmatpush1.bf16.msra.mxu0 %v1163_v59 }
 0x1d3   : > { %v6204_v35 = vpop.permute.xlu1 %1566 }
 0x1d4   : > { %7938 = vst [vmem:[#allocation36_spill] sm:$0xff] %v6204_v35  ;;  %v6208_v13 = vsel %vm1568_vm13, %v6199_v56, %v6204_v35  ;;  %vm1572_vm9 = vcmp.ne.s16.totalorder %v6204_v35, 0  ;;  %2049 = vmatmul.mubr.bf16.vlgmr.msra.gmra.mrb[0].mxu0 %v4945_v36  ;;  %vm1570_vm13 = vcmp.ne.s16.totalorder %v6199_v56, 0  ;;  %v4954_v36 = vld [vmem:[%s7706_s1 + $0xb4] ss:$28 sps:$4 sm:$0xff]  }
 0x1d5   : > { %7939 = vst [vmem:[#allocation37_spill] sm:$0xff] %v6208_v13  ;;  %vm1571_vm6 = vcmp.ne.s16.totalorder %v6208_v13, 0  ;;  %v1203_v40 = vpop.permute.xlu0 %1202  ;;  %v1575_v16 = vsel %vm1572_vm9, %v5969_v33, 0  ;;  %2058 = vmatprep.mubr.bf16.mxu0 %v4948_v42  ;;  %v4950_v33 = vld [vmem:[%s7706_s1 + $0x40] ss:$28 sps:$4 sm:$0xff]   ;;  %v1573_v14 = vsel %vm1570_vm13, %v5919_v4, 0 }
 0x1d6   : > { %1589 = vrot.lane.b32.xlu0 %v1575_v16, %s7844_s15  ;;  %v1574_v9 = vsel %vm1571_vm6, %v5905_v49, 0  ;;  %v4951_v49 = vld [vmem:[%s7706_s1 + $0x7c] ss:$28 sps:$4 sm:$0xff]   ;;  %v1578_v59 = vsel %vm1572_vm9, %v5937_v61, 0  ;;  %v1577_v42 = vsel %vm1571_vm6, %v5930_v44, 0 }
 0x1d7   : > { %v1205_v47 = vpop.permute.xlu1 %1204  ;;  %1587 = vrot.lane.b32.xlu1 %v1574_v9, %s7844_s15  ;;  %v4956_v44 = vld [vmem:[%s7706_s1 + $0xb0] ss:$28 sps:$4 sm:$0xff]  }
 0x1d8   : > { %v1214_v1 = vsel %vm7843_vm5, %v1203_v40, %v1205_v47  ;;  %v1576_v47 = vsel %vm1570_vm13, %v5950_v5, 0 }
 0x1d9   : > { %2089 = vmatprep.subr.bf16.mxu0 %v1214_v1  ;;  %v1201_v25 = vpop.permute.xlu0 %1200 }
 0x1da   : > { %v1213_v22 = vsel %vm7843_vm5, %v1201_v25, %v1203_v40  ;;  %1541 = vrot.lane.b32.xlu0 %v1525_v26, %s7846_s20  ;;  %v4959_v25 = vld [vmem:[%s7706_s1 + $0x14] ss:$28 sps:$4 sm:$0xff]  }
 0x1db   : > { %v1209_v12 = vpop.permute.xlu1 %1208  ;;  %1585 = vrot.lane.b32.xlu1 %v1573_v14, %s7844_s15  ;;  %2090 = vmatpush1.bf16.msra.mxu0 %v1213_v22 }
 0x1dc   : > { %2059 = vmatmul.mubr.bf16.gmra.mrb[4].mxu0 %v4950_v33 }
 0x1dd   : > { %v1211_v37 = vpop.permute.xlu0 %1210  ;;  %2068 = vmatprep.mubr.bf16.mxu0 %v4951_v49 }
 0x1de   : > { %1539 = vrot.lane.b32.xlu0 %v1524_v38, %s7846_s20  ;;  %v1216_v8 = vsel %vm7843_vm5, %v1209_v12, %v1211_v37 }
 0x1df   : > { %v1207_v4 = vpop.permute.xlu1 %1206  ;;  %1543 = vrot.lane.b32.xlu1 %v1526_v15, %s7846_s20  ;;  %2091 = vmatprep.subr.bf16.mxu0 %v1216_v8  ;;  %v1742_v8 = vld [vmem:[%s7707_s2] sm:$0xff]  ;;  %s8085_s20 = smov 63  }
 0x1e0   : > { %v1215_v20 = vsel %vm7843_vm5, %v1207_v4, %v1209_v12  ;;  %vm7856_vm5 = vcmask 629760   ;;  %v1743_v4 = vld [vmem:[%s7707_s2 + $0x8] sm:$0xff] }
 0x1e1   : > { %2092 = vmatpush1.bf16.msra.mxu0 %v1215_v20  ;;  %v1240_v39 = vpop.permute.xlu0 %1239 }
 0x1e2   : > { %1595 = vrot.lane.b32.xlu0 %v1578_v59, %s7844_s15  ;;  %v1746_v59 = vld [vmem:[%s7707_s2 + $0x20] sm:$0xff] }
 0x1e3   : > { %v1242_v40 = vpop.permute.xlu1 %1241  ;;  %1593 = vrot.lane.b32.xlu1 %v1577_v42, %s7844_s15 }
 0x1e4   : > { %v1251_v16 = vsel %vm7852_vm7, %v1240_v39, %v1242_v40  ;;  %2069 = vmatmul.mubr.bf16.gmra.mrb[8].mxu0 %v4953_v11  ;;  %v1747_v11 = vld [vmem:[%s7707_s2 + $0x28] sm:$0xff]  ;;  %v1745_v40 = vld [vmem:[%s7707_s2 + $0x18] sm:$0xff] }
 0x1e5   : > { %2093 = vmatprep.subr.bf16.mxu0 %v1251_v16  ;;  %v1238_v9 = vpop.permute.xlu0 %1237  ;;  %2078 = vmatprep.mubr.bf16.mxu0 %v4954_v36  ;;  %v1744_v16 = vld [vmem:[%s7707_s2 + $0x10] sm:$0xff] }
 0x1e6   : > { %v1250_v61 = vsel %vm7852_vm7, %v1238_v9, %v1240_v39  ;;  %1752 = vperm.xlu0 %4931, %v1742_v8  }
 0x1e7   : > { %v1246_v1 = vpop.permute.xlu1 %1245  ;;  %1591 = vrot.lane.b32.xlu1 %v1576_v47, %s7844_s15  ;;  %2094 = vmatpush1.bf16.msra.mxu0 %v1250_v61  ;;  %v1749_v61 = vld [vmem:[%s7707_s2 + $0x38] sm:$0xff]  ;;  %s7971_s15 = smov 95  }
 0x1e9   : > { %v1248_v33 = vpop.permute.xlu0 %1247 }
 0x1ea   : > { %v1253_v26 = vsel %vm7852_vm7, %v1246_v1, %v1248_v33  ;;  %1777 = vperm.xlu0 %4931, %v1747_v11  }
 0x1eb   : > { %v1244_v49 = vpop.permute.xlu1 %1243  ;;  %2095 = vmatprep.subr.bf16.mxu0 %v1253_v26  ;;  %1757 = vperm.xlu1 %4932, %v1743_v4  }
 0x1ec   : > { %v1252_v22 = vsel %vm7852_vm7, %v1244_v49, %v1246_v1  ;;  %2079 = vmatmul.mubr.bf16.gmra.mrb[12].mxu0 %v4956_v44  ;;  %vm7853_vm7 = vcmask 621568   ;;  %v1748_v1 = vld [vmem:[%s7707_s2 + $0x30] sm:$0xff] }
 0x1ed   : > { %2096 = vmatpush1.bf16.msra.mxu0 %v1252_v22  ;;  %2121 = vmatprep.mubr.bf16.mxu0 %v4959_v25 }
 0x1ee   : > { %1767 = vperm.xlu0 %4931, %v1745_v40  }
 0x1ef   : > { %1772 = vperm.xlu1 %4932, %v1746_v59  }
 0x1f0   : > { %v1294_v5 = vpop.permute.xlu1 %1293 }
 0x1f1   : > { %v1292_v14 = vpop.permute.xlu0 %1291 }
 0x1f2   : > { %v1303_v12 = vsel %vm7856_vm5, %v1292_v14, %v1294_v5  ;;  %1787 = vperm.xlu0 %4931, %v1749_v61  }
 0x1f3   : > { %2097 = vmatprep.subr.bf16.mxu0 %v1303_v12  ;;  %1762 = vperm.xlu1 %4932, %v1744_v16  }
 0x1f4   : > { %v1298_v37 = vpop.permute.xlu1 %1297 }
 0x1f5   : > { %v1290_v38 = vpop.permute.xlu0 %1289 }
 0x1f6   : > { %v1302_v15 = vsel %vm7856_vm5, %v1290_v38, %v1292_v14 }
 0x1f7   : > { %2098 = vmatpush1.bf16.msra.mxu0 %v1302_v15  ;;  %1782 = vperm.xlu1 %4932, %v1748_v1  }
 0x1f8   : > { %v1296_v20 = vpop.permute.xlu1 %1295 }
 0x1f9   : > { %v1300_v39 = vpop.permute.xlu0 %1299  ;;  %v1304_v42 = vsel %vm7856_vm5, %v1296_v20, %v1298_v37 }
 0x1fa   : > { %v1305_v36 = vsel %vm7856_vm5, %v1298_v37, %v1300_v39  ;;  %vm1597_vm5 = vcmask 490496  }
 0x1fb   : > { %2099 = vmatprep.subr.bf16.mxu0 %v1305_v36 }
 0x1fc   : > { %2100 = vmatpush1.bf16.msra.mxu0 %v1304_v42 }
 0x200   : > { %v1346_v9 = vpop.permute.xlu1 %1345 }
 0x201   : > { %v1344_v47 = vpop.permute.xlu0 %1343 }
 0x202   : > { %v1355_v44 = vsel %vm7853_vm7, %v1344_v47, %v1346_v9 }
 0x203   : > { %2101 = vmatprep.subr.bf16.mxu0 %v1355_v44 }
 0x204   : > { %v1350_v33 = vpop.permute.xlu1 %1349 }
 0x205   : > { %v1342_v25 = vpop.permute.xlu0 %1341 }
 0x206   : > { %v1354_v26 = vsel %vm7853_vm7, %v1342_v25, %v1344_v47 }
 0x207   : > { %2102 = vmatpush1.bf16.msra.mxu0 %v1354_v26 }
 0x208   : > { %v1348_v49 = vpop.permute.xlu1 %1347 }
 0x209   : > { %v1352_v22 = vpop.permute.xlu0 %1351  ;;  %v1356_v14 = vsel %vm7853_vm7, %v1348_v49, %v1350_v33 }
 0x20a   : > { %v1357_v5 = vsel %vm7853_vm7, %v1350_v33, %v1352_v22  ;;  %vm7855_vm7 = vcmask 515072  }
 0x20b   : > { %2103 = vmatprep.subr.bf16.mxu0 %v1357_v5 }
 0x20c   : > { %2104 = vmatpush1.bf16.msra.mxu0 %v1356_v14 }
 0x210   : > { %v1398_v12 = vpop.permute.xlu1 %1397 }
 0x211   : > { %v1396_v37 = vpop.permute.xlu0 %1395 }
 0x212   : > { %v1406_v38 = vsel %vm7854_vm10, %v1396_v37, %v1398_v12 }
 0x213   : > { %2105 = vmatprep.subr.bf16.mxu0 %v1406_v38 }
 0x214   : > { %v1402_v15 = vpop.permute.xlu1 %1401 }
 0x215   : > { %v1394_v8 = vpop.permute.xlu0 %1393 }
 0x216   : > { %v1405_v4 = vsel %vm7854_vm10, %v1394_v8, %v1396_v37 }
 0x217   : > { %2106 = vmatpush1.bf16.msra.mxu0 %v1405_v4 }
 0x218   : > { %v1400_v20 = vpop.permute.xlu1 %1399 }
 0x219   : > { %v1404_v11 = vpop.permute.xlu0 %1403  ;;  %v1407_v59 = vsel %vm7854_vm10, %v1400_v20, %v1402_v15 }
 0x21a   : > { %v1408_v39 = vsel %vm7854_vm10, %v1402_v15, %v1404_v11  ;;  %vm1493_vm10 = vcmask 506880  }
 0x21b   : > { %2107 = vmatprep.subr.bf16.mxu0 %v1408_v39 }
 0x21c   : > { %2108 = vmatpush1.bf16.msra.mxu0 %v1407_v59 }
 0x220   : > { %v1449_v36 = vpop.permute.xlu1 %1448 }
 0x221   : > { %v1447_v42 = vpop.permute.xlu0 %1446 }
 0x222   : > { %v1458_v40 = vsel %vm7855_vm7, %v1447_v42, %v1449_v36 }
 0x223   : > { %2109 = vmatprep.subr.bf16.mxu0 %v1458_v40 }
 0x224   : > { %v1453_v16 = vpop.permute.xlu1 %1452 }
 0x225   : > { %v1445_v9 = vpop.permute.xlu0 %1444 }
 0x226   : > { %v1457_v61 = vsel %vm7855_vm7, %v1445_v9, %v1447_v42 }
 0x227   : > { %2110 = vmatpush1.bf16.msra.mxu0 %v1457_v61 }
 0x228   : > { %v1451_v47 = vpop.permute.xlu1 %1450 }
 0x229   : > { %v1455_v1 = vpop.permute.xlu0 %1454  ;;  %v1459_v33 = vsel %vm7855_vm7, %v1451_v47, %v1453_v16 }
 0x22a   : > { %v1460_v44 = vsel %vm7855_vm7, %v1453_v16, %v1455_v1  ;;  %vm1545_vm7 = vcmask 498688  }
 0x22b   : > { %2111 = vmatprep.subr.bf16.mxu0 %v1460_v44 }
 0x22c   : > { %v1486_v25 = vpop.permute.xlu1 %1485  ;;  %2112 = vmatpush1.bf16.msra.mxu0 %v1459_v33  ;;  %v4957_v33 = vld [vmem:[%s7706_s1 + $0x10] ss:$28 sps:$4 sm:$0xff]  }
 0x22d   : > { %v1484_v26 = vpop.permute.xlu0 %1483 }
 0x22e   : > { %v1495_v49 = vsel %vm1493_vm10, %v1484_v26, %v1486_v25 }
 0x22f   : > { %2113 = vmatprep.subr.bf16.mxu0 %v1495_v49 }
 0x230   : > { %v1490_v22 = vpop.permute.xlu1 %1489 }
 0x231   : > { %v1482_v5 = vpop.permute.xlu0 %1481 }
 0x232   : > { %v1494_v14 = vsel %vm1493_vm10, %v1482_v5, %v1484_v26  ;;  %v4960_v26 = vld [vmem:[%s7706_s1 + $0x4c] ss:$28 sps:$4 sm:$0xff]  }
 0x233   : > { %2114 = vmatpush1.bf16.msra.mxu0 %v1494_v14 }
 0x234   : > { %v1488_v12 = vpop.permute.xlu1 %1487 }
 0x235   : > { %v1492_v37 = vpop.permute.xlu0 %1491  ;;  %v1496_v15 = vsel %vm1493_vm10, %v1488_v12, %v1490_v22  ;;  %v4962_v12 = vld [vmem:[%s7706_s1 + $0x18] ss:$28 sps:$4 sm:$0xff]  }
 0x236   : > { %v1497_v38 = vsel %vm1493_vm10, %v1490_v22, %v1492_v37  ;;  %v4963_v37 = vld [vmem:[%s7706_s1 + $0x48] ss:$28 sps:$4 sm:$0xff]  }
 0x237   : > { %2115 = vmatprep.subr.bf16.mxu0 %v1497_v38  ;;  %v4964_v38 = vld [vmem:[%s7706_s1 + $0x84] ss:$28 sps:$4 sm:$0xff]  }
 0x238   : > { %2116 = vmatpush1.bf16.msra.mxu0 %v1496_v15  ;;  %v7940_v15 = vmov 0  }
 0x23c   : > { %v1538_v8 = vpop.permute.xlu1 %1537 }
 0x23d   : > { %v1536_v4 = vpop.permute.xlu0 %1535 }
 0x23e   : > { %v1547_v20 = vsel %vm1545_vm7, %v1536_v4, %v1538_v8  ;;  %v4966_v8 = vld [vmem:[%s7706_s1 + $0x50] ss:$28 sps:$4 sm:$0xff]  }
 0x23f   : > { %2117 = vmatprep.subr.bf16.mxu0 %v1547_v20  ;;  %v4968_v20 = vld [vmem:[%s7706_s1 + $0xbc] ss:$28 sps:$4 sm:$0xff]  }
 0x241   : > { %v1534_v11 = vpop.permute.xlu0 %1533 }
 0x242   : > { %v1546_v39 = vsel %vm1545_vm7, %v1534_v11, %v1536_v4  ;;  %v4967_v4 = vld [vmem:[%s7706_s1 + $0x80] ss:$28 sps:$4 sm:$0xff]   ;;  %v4970_v11 = vld [vmem:[%s7706_s1 + $0x88] ss:$28 sps:$4 sm:$0xff]  }
 0x243   : > { %2118 = vmatpush1.bf16.msra.mxu0 %v1546_v39  ;;  %v4971_v39 = vld [vmem:[%s7706_s1 + $0xb8] ss:$28 sps:$4 sm:$0xff]  }
 0x248   : > { %v1590_v59 = vpop.permute.xlu0 %1589 }
 0x249   : > { %v1588_v36 = vpop.permute.xlu1 %1587 }
 0x24a   : > { %v1599_v42 = vsel %vm1597_vm5, %v1588_v36, %v1590_v59  ;;  %v4972_v59 = vld [vmem:[%s7706_s1 + $0xc0] ss:$28 sps:$4 sm:$0xff]  }
 0x24b   : > { %2162 = vmatprep.subr.bf16.mxu1 %v1599_v42 }
 0x24c   : > { %v1542_v40 = vpop.permute.xlu0 %1541 }
 0x24d   : > { %v1586_v16 = vpop.permute.xlu1 %1585 }
 0x24e   : > { %v1598_v9 = vsel %vm1597_vm5, %v1586_v16, %v1588_v36 }
 0x24f   : > { %2163 = vmatpush1.bf16.msra.mxu1 %v1598_v9 }
 0x250   : > { %v1540_v61 = vpop.permute.xlu0 %1539 }
 0x251   : > { %v1544_v47 = vpop.permute.xlu1 %1543  ;;  %v1548_v44 = vsel %vm1545_vm7, %v1540_v61, %v1542_v40 }
 0x252   : > { %v1549_v1 = vsel %vm1545_vm7, %v1542_v40, %v1544_v47 }
 0x253   : > { %2119 = vmatprep.subr.bf16.mxu0 %v1549_v1 }
 0x254   : > { %2120 = vmatpush1.bf16.msra.mxu0 %v1548_v44  ;;  %v1596_v25 = vpop.permute.xlu0 %1595 }
 0x255   : > { %v1594_v49 = vpop.permute.xlu1 %1593 }
 0x256   : > { %v1601_v22 = vsel %vm1597_vm5, %v1594_v49, %v1596_v25 }
 0x257   : > { %2122 = vmatmul.mubr.bf16.vlgmr.msra.gmra.mrb[0].mxu0 %v4957_v33  ;;  %2164 = vmatprep.subr.bf16.mxu1 %v1601_v22 }
 0x258   : > { %2131 = vmatprep.mubr.bf16.mxu0 %v4960_v26 }
 0x259   : > { %v1592_v5 = vpop.permute.xlu1 %1591 }
 0x25a   : > { %v1600_v14 = vsel %vm1597_vm5, %v1592_v5, %v1594_v49 }
 0x25b   : > { %2165 = vmatpush1.bf16.msra.mxu1 %v1600_v14 }
 0x25e   : > { %4691 = vmatmul.mubr.msk.bf16.vlgmr.msra.gmra.mrb[0].mxu1 %vm886_vm12, %v4962_v12 }
 0x25f   : > { %2132 = vmatmul.mubr.bf16.gmra.mrb[4].mxu0 %v4963_v37  ;;  %2204 = vmatprep.mubr.bf16.mxu1 %v7940_v15 }
 0x260   : > { %2141 = vmatprep.mubr.bf16.mxu0 %v4964_v38 }
 0x265   : > { %v1753_v9 = vpop.permute.xlu0 %1752 }
 0x266   : > { %4692 = vmatmul.mubr.msk.bf16.gmra.mrb[4].mxu1 %vm886_vm12, %v4966_v8 }
 0x267   : > { %2142 = vmatmul.mubr.bf16.gmra.mrb[8].mxu0 %v4967_v4  ;;  %2214 = vmatprep.mubr.bf16.mxu1 %v7940_v15 }
 0x268   : > { %2151 = vmatprep.mubr.bf16.mxu0 %v4968_v20 }
 0x269   : > { %v1778_v33 = vpop.permute.xlu0 %1777 }
 0x26a   : > { %v1758_v36 = vpop.permute.xlu1 %1757 }
 0x26e   : > { %4693 = vmatmul.mubr.msk.bf16.gmra.mrb[8].mxu1 %vm886_vm12, %v4970_v11  ;;  %v1773_v47 = vpop.permute.xlu1 %1772 }
 0x26f   : > { %2152 = vmatmul.mubr.bf16.gmra.mrb[12].mxu0 %v4971_v39  ;;  %2224 = vmatprep.mubr.bf16.mxu1 %v7940_v15  ;;  %v1768_v15 = vpop.permute.xlu0 %1767 }
 0x272   : > { %v1763_v11 = vpop.permute.xlu1 %1762 }
 0x276   : > { %4694 = vmatmul.mubr.msk.bf16.gmra.mrb[12].mxu1 %vm886_vm12, %v4972_v59 }
 0x32a   : > { %v2123_v42 = vpop.f32.mrb[0].mxu0 }
 0x32b   : > { %v2125_v40 = vpop.f32.mrb[1].mxu0  ;;  %v4743_v1 = vadd.f32 %v2123_v42, %v1753_v9 }
 0x32c   : > { %v2127_v16 = vpop.f32.mrb[2].mxu0  ;;  %v4745_v44 = vadd.f32 %v2125_v40, %v1753_v9 }
 0x32d   : > { %v2129_v61 = vpop.f32.mrb[3].mxu0  ;;  %v4747_v26 = vadd.f32 %v2127_v16, %v1758_v36 }
 0x32e   : > { %v4749_v14 = vadd.f32 %v2129_v61, %v1758_v36 }
 0x331   : > { %v2196_v25 = vpop.f32.mrb[0].mxu1 }
 0x332   : > { %v4744_v49 = vadd.f32 %v4743_v1, %v2196_v25  ;;  %v2133_v22 = vpop.f32.mrb[4].mxu0  ;;  %v2198_v5 = vpop.f32.mrb[1].mxu1 }
 0x333   : > { %v4746_v12 = vadd.f32 %v4745_v44, %v2198_v5  ;;  %v2135_v37 = vpop.f32.mrb[5].mxu0  ;;  %v2200_v38 = vpop.f32.mrb[2].mxu1  ;;  %v4751_v56 = vadd.f32 %v2133_v22, %v1763_v11 }
 0x334   : > { %v4748_v8 = vadd.f32 %v4747_v26, %v2200_v38  ;;  %v2137_v4 = vpop.f32.mrb[6].mxu0  ;;  %v2202_v20 = vpop.f32.mrb[3].mxu1  ;;  %v4753_v42 = vadd.f32 %v2135_v37, %v1763_v11 }
 0x335   : > { %v4750_v39 = vadd.f32 %v4749_v14, %v2202_v20  ;;  %v2139_v59 = vpop.f32.mrb[7].mxu0  ;;  %v4755_v25 = vadd.f32 %v2137_v4, %v1768_v15 }
 0x336   : > { %v4757_v35 = vadd.f32 %v2139_v59, %v1768_v15  ;;  %v2235_v59 = vmax.f32 %v4744_v49, 0.0  ;;  %v1788_v49 = vpop.permute.xlu0 %1787 }
 0x339   : > { %v2206_v40 = vpop.f32.mrb[4].mxu1 }
 0x33a   : > { %v6367_v9 = vadd.f32 %v4751_v56, %v2206_v40  ;;  %v2143_v16 = vpop.f32.mrb[8].mxu0  ;;  %v2208_v1 = vpop.f32.mrb[5].mxu1 }
 0x33b   : > { %v6369_v36 = vadd.f32 %v4753_v42, %v2208_v1  ;;  %v2145_v61 = vpop.f32.mrb[9].mxu0  ;;  %v2210_v44 = vpop.f32.mrb[6].mxu1  ;;  %v4759_v20 = vadd.f32 %v2143_v16, %v1773_v47  ;;  %v2237_v16 = vmax.f32 %v4748_v8, 0.0 }
 0x33c   : > { %v4756_v26 = vadd.f32 %v4755_v25, %v2210_v44  ;;  %v2147_v5 = vpop.f32.mrb[10].mxu0  ;;  %v2212_v38 = vpop.f32.mrb[7].mxu1  ;;  %v4761_v62 = vadd.f32 %v2145_v61, %v1773_v47  ;;  %v2236_v44 = vmax.f32 %v4746_v12, 0.0 }
 0x33d   : > { %v4758_v13 = vadd.f32 %v4757_v35, %v2212_v38  ;;  %v2149_v14 = vpop.f32.mrb[11].mxu0  ;;  %v4763_v37 = vadd.f32 %v2147_v5, %v1778_v33  ;;  %v2238_v5 = vmax.f32 %v4750_v39, 0.0 }
 0x33e   : > { %v4765_v28 = vadd.f32 %v2149_v14, %v1778_v33 }
 0x341   : > { %v2216_v22 = vpop.f32.mrb[8].mxu1 }
 0x342   : > { %v4760_v11 = vadd.f32 %v4759_v20, %v2216_v22  ;;  %v2153_v56 = vpop.f32.mrb[12].mxu0  ;;  %v2218_v40 = vpop.f32.mrb[9].mxu1 }
 0x343   : > { %v4762_v21 = vadd.f32 %v4761_v62, %v2218_v40  ;;  %v2155_v4 = vpop.f32.mrb[13].mxu0  ;;  %v2220_v15 = vpop.f32.mrb[10].mxu1 }
 0x344   : > { %v2243_v42 = vmax.f32 %v4760_v11, 0.0  ;;  %v4764_v1 = vadd.f32 %v4763_v37, %v2220_v15  ;;  %v2157_v23 = vpop.f32.mrb[14].mxu0  ;;  %v2222_v25 = vpop.f32.mrb[11].mxu1 }
 0x345   : > { %v2244_v18 = vmax.f32 %v4762_v21, 0.0  ;;  %v4766_v35 = vadd.f32 %v4765_v28, %v2222_v25  ;;  %v2159_v38 = vpop.f32.mrb[15].mxu0  ;;  %v1783_v20 = vpop.permute.xlu1 %1782  ;;  %v4771_v21 = vadd.f32 %v2157_v23, %v1788_v49  ;;  %v2240_v25 = vmax.f32 %v6369_v36, 0.0 }
 0x346   : > { %v6371_v47 = vadd.f32 %v2243_v42, %v2235_v59  ;;  %v2245_v61 = vmax.f32 %v4764_v1, 0.0  ;;  %v4767_v33 = vadd.f32 %v2153_v56, %v1783_v20  ;;  %v4769_v37 = vadd.f32 %v2155_v4, %v1783_v20 }
 0x347   : > { %v6373_v22 = vadd.f32 %v2244_v18, %v2236_v44  ;;  %v2246_v62 = vmax.f32 %v4766_v35, 0.0  ;;  %v4773_v18 = vadd.f32 %v2159_v38, %v1788_v49  ;;  %v2239_v56 = vmax.f32 %v6367_v9, 0.0 }
 0x348   : > { %7941 = vst [vmem:[#allocation38_spill] sm:$0xff] %v6371_v47  ;;  %v6375_v14 = vadd.f32 %v2245_v61, %v2237_v16  ;;  %v2241_v23 = vmax.f32 %v4756_v26, 0.0  ;;  %v2242_v38 = vmax.f32 %v4758_v13, 0.0 }
 0x349   : > { %7942 = vst [vmem:[#allocation39_spill] sm:$0xff] %v6373_v22  ;;  %v6377_v11 = vadd.f32 %v2246_v62, %v2238_v5  ;;  %v2226_v12 = vpop.f32.mrb[12].mxu1 }
 0x34a   : > { %7943 = vst [vmem:[#allocation40_spill] sm:$0xff] %v6375_v14  ;;  %v2259_v28 = vpack.c.bf16 %v6375_v14, %v6371_v47  ;;  %v4768_v8 = vadd.f32 %v4767_v33, %v2226_v12  ;;  %v2228_v40 = vpop.f32.mrb[13].mxu1 }
 0x34b   : > { %7944 = vst [vmem:[#allocation41_spill] sm:$0xff] %v6377_v11  ;;  %v2260_v39 = vpack.c.bf16 %v6377_v11, %v6373_v22  ;;  %v4770_v15 = vadd.f32 %v4769_v37, %v2228_v40  ;;  %v2230_v59 = vpop.f32.mrb[14].mxu1 }
 0x34c   : > { %v2247_v42 = vmax.f32 %v4768_v8, 0.0  ;;  %v4772_v1 = vadd.f32 %v4771_v21, %v2230_v59  ;;  %v2232_v4 = vpop.f32.mrb[15].mxu1  ;;  %2267 = vrot.lane.b32.xlu1 %v2259_v28, %s5038_s11 }
 0x34d   : > { %v2248_v44 = vmax.f32 %v4770_v15, 0.0  ;;  %v4774_v35 = vadd.f32 %v4773_v18, %v2232_v4  ;;  %2269 = vrot.lane.b32.xlu0 %v2260_v39, %s5038_s11 }
 0x34e   : > { %v6387_v16 = vadd.f32 %v2247_v42, %v2239_v56  ;;  %v2249_v61 = vmax.f32 %v4772_v1, 0.0 }
 0x34f   : > { %v6389_v5 = vadd.f32 %v2248_v44, %v2240_v25  ;;  %v2250_v20 = vmax.f32 %v4774_v35, 0.0  ;;  %v7955_v44 = vld [vmem:[#allocation5_spill] sm:$0xff] }
 0x350   : > { %7945 = vst [vmem:[#allocation42_spill] sm:$0xff] %v6387_v16  ;;  %v6391_v9 = vadd.f32 %v2249_v61, %v2241_v23  ;;  %v7957_v23 = vld [vmem:[#allocation12_spill] sm:$0xff] }
 0x351   : > { %7946 = vst [vmem:[#allocation43_spill] sm:$0xff] %v6389_v5  ;;  %v6393_v62 = vadd.f32 %v2250_v20, %v2242_v38  ;;  %v7959_v38 = vld [vmem:[#allocation11_spill] sm:$0xff] }
 0x352   : > { %7947 = vst [vmem:[#allocation44_spill] sm:$0xff] %v6391_v9  ;;  %v2261_v33 = vpack.c.bf16 %v6391_v9, %v6387_v16 }
 0x353   : > { %7948 = vst [vmem:[#allocation45_spill] sm:$0xff] %v6393_v62  ;;  %v2262_v36 = vpack.c.bf16 %v6393_v62, %v6389_v5 }
 0x354   : > { %2271 = vrot.lane.b32.xlu1 %v2261_v33, %s5038_s11  ;;  %v7961_v33 = vld [vmem:[#allocation15_spill] sm:$0xff] }
 0x355   : > { %2273 = vrot.lane.b32.xlu0 %v2262_v36, %s5038_s11 }
 0x3be   : > { %v2268_v26 = vpop.permute.xlu1 %2267 }
 0x3bf   : > { %2283 = vst.msk [vmem:[#allocation3] sm:$0xff] %vm7875_vm14, %v2268_v26  ;;  %v2270_v13 = vpop.permute.xlu0 %2269 }
 0x3c0   : > { %v6403_v49 = vsel %vm7874_vm0, %v2268_v26, %v2270_v13  ;;  %2285 = vst.msk [vmem:[#allocation3 + $0x10] sm:$0xff] %vm7874_vm0, %v2270_v13  ;;  %v7963_v26 = vld [vmem:[#allocation14_spill] sm:$0xff] }
 0x3c1   : > { %2284 = vst [vmem:[#allocation3 + $0x8] sm:$0xff] %v6403_v49  ;;  %4741 = vmatprep.subr.msk.bf16.mxu1 %vm387_vm15, %v6403_v49 }
 0x3c6   : > { %v2272_v37 = vpop.permute.xlu1 %2271  ;;  %v6410_v12 = vld [vmem:[#allocation3] sm:$0xff] }
 0x3c7   : > { %2286 = vst.msk [vmem:[#allocation3 + $0x18] sm:$0xff] %vm7875_vm14, %v2272_v37  ;;  %2355 = vrot.lane.b32.xlu1 %v6410_v12, %s5051_s24  ;;  %v2274_v28 = vpop.permute.xlu0 %2273  ;;  %v6415_v21 = vld [vmem:[#allocation3 + $0x10] sm:$0xff]  ;;  %v2293_v8 = vsel %vm386_vm1, %v6410_v12, 0  ;;  %v2307_v39 = vsel %vm422_vm2, %v6410_v12, 0  ;;  %v2385_v59 = vsel %vm525_vm4, %v6410_v12, 0  ;;  %vm7952_vm14 = vcmp.ne.s16.totalorder %v5314_v60, 0 }
 0x3c8   : > { %v6421_v40 = vsel %vm7874_vm0, %v2272_v37, %v2274_v28  ;;  %2288 = vst.msk [vmem:[#allocation3 + $0x28] sm:$0xff] %vm7874_vm0, %v2274_v28  ;;  %2359 = vrot.lane.b32.xlu0 %v6415_v21, %s5051_s24  ;;  %3612 = vmatpush1.bf16.msra.mxu1 %v2293_v8  ;;  %v2309_v15 = vsel %vm424_vm3, %v6415_v21, 0  ;;  %vm7950_vm0 = vcmp.ne.s16.totalorder %v5292_v54, 0  ;;  %v2469_v1 = vsel %vm7952_vm14, %v6410_v12, 0  ;;  %v7965_v37 = vld [vmem:[#allocation17_spill] sm:$0xff]  ;;  %v7967_v8 = vld [vmem:[#allocation16_spill] sm:$0xff] }
 0x3c9   : > { %2287 = vst [vmem:[#allocation3 + $0x20] sm:$0xff] %v6421_v40  ;;  %4742 = vmatprep.subr.msk.bf16.mxu1 %vm387_vm15, %v6421_v40  ;;  %vm7949_vm15 = vcmp.ne.s16.totalorder %v5283_v52, 0  ;;  %v2427_v32 = vsel %vm7950_vm0, %v6410_v12, 0  ;;  %vm7954_vm0 = vcmp.ne.s16.totalorder %v5336_v3, 0  ;;  %vm7958_vm14 = vcmp.ne.s16.totalorder %v7957_v23, 0 }
 0x3ca   : > { %v2387_v56 = vsel %vm7949_vm15, %v6415_v21, 0  ;;  %vm7953_vm15 = vcmp.ne.s16.totalorder %v5325_v63, 0  ;;  %v2511_v25 = vsel %vm7954_vm0, %v6410_v12, 0  ;;  %v2589_v61 = vsel %vm7958_vm14, %v6410_v12, 0 }
 0x3cb   : > { %2559 = vrot.lane.b32.xlu1 %v6410_v12, %s5052_s25  ;;  %v2471_v4 = vsel %vm7953_vm15, %v6415_v21, 0  ;;  %vm7960_vm15 = vcmp.ne.s16.totalorder %v7959_v38, 0  ;;  %vm7962_vm0 = vcmp.ne.s16.totalorder %v7961_v33, 0  ;;  %vm7966_vm14 = vcmp.ne.s16.totalorder %v7965_v37, 0 }
 0x3cc   : > { %2563 = vrot.lane.b32.xlu0 %v6415_v21, %s5052_s25  ;;  %v2591_v20 = vsel %vm7960_vm15, %v6415_v21, 0  ;;  %v2631_v36 = vsel %vm7962_vm0, %v6410_v12, 0  ;;  %v2673_v28 = vsel %vm7966_vm14, %v6410_v12, 0  ;;  %vm7968_vm15 = vcmp.ne.s16.totalorder %v7967_v8, 0 }
 0x3ce   : > { %v6437_v18 = vld [vmem:[#allocation3 + $0x18] sm:$0xff] }
 0x3cf   : > { %2319 = vrot.lane.b32.xlu1 %v2307_v39, %s5053_s26  ;;  %v2295_v31 = vsel %vm386_vm1, %v6437_v18, 0  ;;  %vm7951_vm1 = vcmp.ne.s16.totalorder %v5303_v57, 0  ;;  %v2675_v39 = vsel %vm7968_vm15, %v6415_v21, 0 }
 0x3d0   : > { %2323 = vrot.lane.b32.xlu0 %v2309_v15, %s5053_s26  ;;  %3614 = vmatpush1.bf16.msra.mxu1 %v2295_v31  ;;  %v2429_v42 = vsel %vm7951_vm1, %v6415_v21, 0  ;;  %vm7956_vm1 = vcmp.ne.s16.totalorder %v7955_v44, 0  ;;  %v7969_v15 = vld [vmem:[#allocation20_spill] sm:$0xff] }
 0x3d1   : > { %v2513_v35 = vsel %vm7956_vm1, %v6415_v21, 0  ;;  %vm7964_vm1 = vcmp.ne.s16.totalorder %v7963_v26, 0  ;;  %vm7970_vm0 = vcmp.ne.s16.totalorder %v7969_v15, 0 }
 0x3d2   : > { %v2633_v13 = vsel %vm7964_vm1, %v6415_v21, 0  ;;  %v2715_v31 = vsel %vm7970_vm0, %v6410_v12, 0 }
 0x3d3   : > { %2397 = vrot.lane.b32.xlu1 %v2385_v59, %s5054_s30  ;;  %v7972_v59 = vld [vmem:[#allocation18_spill] sm:$0xff] }
 0x3d4   : > { %2401 = vrot.lane.b32.xlu0 %v2387_v56, %s5054_s30  ;;  %vm7973_vm1 = vcmp.ne.s16.totalorder %v7972_v59, 0 }
 0x3d5   : > { %v2717_v56 = vsel %vm7973_vm1, %v6415_v21, 0 }
 0x3d7   : > { %2439 = vrot.lane.b32.xlu1 %v2427_v32, %s5055_s9  ;;  %v7974_v32 = vld [vmem:[#allocation6_spill] sm:$0xff] }
 0x3d8   : > { %2443 = vrot.lane.b32.xlu0 %v2429_v42, %s5055_s9  ;;  %vm7975_vm14 = vcmp.ne.s16.totalorder %v7974_v32, 0 }
 0x3d9   : > { %v2308_v42 = vsel %vm7975_vm14, %v6403_v49, 0 }
 0x3db   : > { %2481 = vrot.lane.b32.xlu1 %v2469_v1, %s5056_s12  ;;  %v2310_v1 = vsel %vm422_vm2, %v6437_v18, 0  ;;  %vm7980_vm2 = vcmp.ne.s16.totalorder %v5292_v54, 0 }
 0x3dc   : > { %2485 = vrot.lane.b32.xlu0 %v2471_v4, %s5056_s12  ;;  %v7976_v4 = vld [vmem:[#allocation7_spill] sm:$0xff]  ;;  %v2430_v45 = vsel %vm7980_vm2, %v6437_v18, 0  ;;  %vm7989_vm2 = vcmp.ne.s16.totalorder %v7957_v23, 0 }
 0x3dd   : > { %vm7977_vm15 = vcmp.ne.s16.totalorder %v7976_v4, 0 }
 0x3df   : > { %2523 = vrot.lane.b32.xlu1 %v2511_v25, %s5057_s13  ;;  %v2386_v25 = vsel %vm7977_vm15, %v6403_v49, 0  ;;  %vm7986_vm15 = vcmp.ne.s16.totalorder %v5336_v3, 0 }
 0x3e0   : > { %2527 = vrot.lane.b32.xlu0 %v2513_v35, %s5057_s13  ;;  %v2388_v35 = vsel %vm525_vm4, %v6437_v18, 0  ;;  %vm7983_vm4 = vcmp.ne.s16.totalorder %v5314_v60, 0  ;;  %v2514_v54 = vsel %vm7986_vm15, %v6437_v18, 0  ;;  %v2592_v60 = vsel %vm7989_vm2, %v6437_v18, 0 }
 0x3e1   : > { %v2472_v50 = vsel %vm7983_vm4, %v6437_v18, 0  ;;  %vm7992_vm4 = vcmp.ne.s16.totalorder %v7961_v33, 0  ;;  %vm7995_vm15 = vcmp.ne.s16.totalorder %v7965_v37, 0  ;;  %v6589_v33 = vld [vmem:[#allocation3 + $0x28] sm:$0xff]  ;;  %vm7998_vm2 = vcmp.ne.s16.totalorder %v7974_v32, 0 }
 0x3e2   : > { %v2311_v37 = vsel %vm7998_vm2, %v6421_v40, 0  ;;  %vm8006_vm2 = vcmp.ne.s16.totalorder %v7959_v38, 0 }
 0x3e3   : > { %2601 = vrot.lane.b32.xlu1 %v2589_v61, %s5058_s14  ;;  %v7978_v61 = vld [vmem:[#allocation8_spill] sm:$0xff] }
 0x3e4   : > { %2605 = vrot.lane.b32.xlu0 %v2591_v20, %s5058_s14  ;;  %vm7979_vm0 = vcmp.ne.s16.totalorder %v7978_v61, 0 }
 0x3e5   : > { %v2428_v20 = vsel %vm7979_vm0, %v6403_v49, 0 }
 0x3e7   : > { %2643 = vrot.lane.b32.xlu1 %v2631_v36, %s5060_s16  ;;  %v7981_v36 = vld [vmem:[#allocation9_spill] sm:$0xff] }
 0x3e8   : > { %2647 = vrot.lane.b32.xlu0 %v2633_v13, %s5060_s16  ;;  %vm7982_vm1 = vcmp.ne.s16.totalorder %v7981_v36, 0 }
 0x3e9   : > { %v2470_v13 = vsel %vm7982_vm1, %v6403_v49, 0 }
 0x3eb   : > { %2685 = vrot.lane.b32.xlu1 %v2673_v28, %s5061_s19  ;;  %v7984_v28 = vld [vmem:[#allocation10_spill] sm:$0xff] }
 0x3ec   : > { %2689 = vrot.lane.b32.xlu0 %v2675_v39, %s5061_s19  ;;  %vm7985_vm14 = vcmp.ne.s16.totalorder %v7984_v28, 0 }
 0x3ed   : > { %v2512_v39 = vsel %vm7985_vm14, %v6403_v49, 0 }
 0x3ef   : > { %2727 = vrot.lane.b32.xlu1 %v2715_v31, %s7971_s15  ;;  %v7987_v31 = vld [vmem:[#allocation13_spill] sm:$0xff] }
 0x3f0   : > { %2731 = vrot.lane.b32.xlu0 %v2717_v56, %s7971_s15  ;;  %vm7988_vm0 = vcmp.ne.s16.totalorder %v7987_v31, 0 }
 0x3f1   : > { %v2590_v56 = vsel %vm7988_vm0, %v6403_v49, 0 }
 0x3f3   : > { %2357 = vrot.lane.b32.xlu1 %v6403_v49, %s5051_s24 }
 0x3f4   : > { %2361 = vrot.lane.b32.xlu0 %v6437_v18, %s5051_s24 }
 0x3f7   : > { %2561 = vrot.lane.b32.xlu1 %v6403_v49, %s5052_s25 }
 0x3f8   : > { %2565 = vrot.lane.b32.xlu0 %v6437_v18, %s5052_s25 }
 0x3fb   : > { %2321 = vrot.lane.b32.xlu1 %v2308_v42, %s5053_s26  ;;  %v7990_v42 = vld [vmem:[#allocation19_spill] sm:$0xff] }
 0x3fc   : > { %2325 = vrot.lane.b32.xlu0 %v2310_v1, %s5053_s26  ;;  %vm7991_vm1 = vcmp.ne.s16.totalorder %v7990_v42, 0 }
 0x3fd   : > { %v2632_v1 = vsel %vm7991_vm1, %v6403_v49, 0  ;;  %vm7999_vm1 = vcmp.ne.s16.totalorder %v7969_v15, 0 }
 0x3ff   : > { %2399 = vrot.lane.b32.xlu1 %v2386_v25, %s5054_s30  ;;  %v2634_v25 = vsel %vm7992_vm4, %v6437_v18, 0  ;;  %vm8000_vm4 = vcmp.ne.s16.totalorder %v5283_v52, 0 }
 0x400   : > { %2403 = vrot.lane.b32.xlu0 %v2388_v35, %s5054_s30  ;;  %v7993_v35 = vld [vmem:[#allocation23_spill] sm:$0xff] }
 0x401   : > { %vm7994_vm14 = vcmp.ne.s16.totalorder %v7993_v35, 0 }
 0x403   : > { %2441 = vrot.lane.b32.xlu1 %v2428_v20, %s5055_s9  ;;  %v2674_v20 = vsel %vm7994_vm14, %v6403_v49, 0  ;;  %vm8003_vm14 = vcmp.ne.s16.totalorder %v5325_v63, 0 }
 0x404   : > { %2445 = vrot.lane.b32.xlu0 %v2430_v45, %s5055_s9  ;;  %v2676_v45 = vsel %vm7995_vm15, %v6437_v18, 0  ;;  %v2474_v32 = vsel %vm8003_vm14, %v6589_v33, 0  ;;  %vm8004_vm15 = vcmp.ne.s16.totalorder %v7976_v4, 0  ;;  %v2594_v4 = vsel %vm8006_vm2, %v6589_v33, 0 }
 0x405   : > { %v2389_v52 = vsel %vm8004_vm15, %v6421_v40, 0  ;;  %vm8012_vm14 = vcmp.ne.s16.totalorder %v7967_v8, 0  ;;  %vm8013_vm15 = vcmp.ne.s16.totalorder %v7981_v36, 0  ;;  %v8015_v8 = vld [vmem:[#allocation22_spill] sm:$0xff] }
 0x406   : > { %vm8016_vm2 = vcmp.ne.s16.totalorder %v8015_v8, 0 }
 0x407   : > { %2483 = vrot.lane.b32.xlu1 %v2470_v13, %s5056_s12  ;;  %v7996_v13 = vld [vmem:[#allocation24_spill] sm:$0xff] }
 0x408   : > { %2487 = vrot.lane.b32.xlu0 %v2472_v50, %s5056_s12  ;;  %vm7997_vm0 = vcmp.ne.s16.totalorder %v7996_v13, 0 }
 0x409   : > { %v2716_v50 = vsel %vm7997_vm0, %v6403_v49, 0  ;;  %vm8005_vm0 = vcmp.ne.s16.totalorder %v7955_v44, 0 }
 0x40b   : > { %2525 = vrot.lane.b32.xlu1 %v2512_v39, %s5057_s13  ;;  %v2312_v39 = vsel %vm424_vm3, %v6589_v33, 0  ;;  %vm8002_vm3 = vcmp.ne.s16.totalorder %v5303_v57, 0  ;;  %v2516_v57 = vsel %vm8005_vm0, %v6589_v33, 0  ;;  %vm8014_vm0 = vcmp.ne.s16.totalorder %v7972_v59, 0 }
 0x40c   : > { %2529 = vrot.lane.b32.xlu0 %v2514_v54, %s5057_s13  ;;  %v2718_v54 = vsel %vm7999_vm1, %v6437_v18, 0  ;;  %v2432_v46 = vsel %vm8002_vm3, %v6589_v33, 0  ;;  %vm8007_vm1 = vcmp.ne.s16.totalorder %v7978_v61, 0 }
 0x40f   : > { %2603 = vrot.lane.b32.xlu1 %v2590_v56, %s5058_s14  ;;  %v2390_v56 = vsel %vm8000_vm4, %v6589_v33, 0  ;;  %vm8008_vm4 = vcmp.ne.s16.totalorder %v7963_v26, 0  ;;  %v2473_v26 = vsel %vm8013_vm15, %v6421_v40, 0  ;;  %vm8023_vm15 = vcmp.ne.s16.totalorder %v5536_v19, 0 }
 0x410   : > { %2607 = vrot.lane.b32.xlu0 %v2592_v60, %s5058_s14  ;;  %v2879_v59 = vsel %vm8023_vm15, %v6415_v21, 0  ;;  %vm8033_vm15 = vcmp.ne.s16.totalorder %v5532_v17, 0 }
 0x413   : > { %2645 = vrot.lane.b32.xlu1 %v2632_v1, %s5060_s16  ;;  %v2431_v1 = vsel %vm8007_vm1, %v6421_v40, 0  ;;  %vm8017_vm1 = vcmp.ne.s16.totalorder %v7984_v28, 0 }
 0x414   : > { %2649 = vrot.lane.b32.xlu0 %v2634_v25, %s5060_s16 }
 0x417   : > { %2687 = vrot.lane.b32.xlu1 %v2674_v20, %s5061_s19 }
 0x418   : > { %2691 = vrot.lane.b32.xlu0 %v2676_v45, %s5061_s19  ;;  %v2636_v45 = vsel %vm8008_vm4, %v6589_v33, 0  ;;  %vm8018_vm4 = vcmp.ne.s16.totalorder %v5516_v10, 0 }
 0x41b   : > { %2729 = vrot.lane.b32.xlu1 %v2716_v50, %s7971_s15  ;;  %v8009_v50 = vld [vmem:[#allocation21_spill] sm:$0xff] }
 0x41c   : > { %2363 = vrot.lane.b32.xlu0 %v6421_v40, %s5051_s24  ;;  %vm8010_vm3 = vcmp.ne.s16.totalorder %v8009_v50, 0 }
 0x41f   : > { %2365 = vrot.lane.b32.xlu1 %v6589_v33, %s5051_s24  ;;  %s8001_s24 = smov 94  }
 0x420   : > { %2567 = vrot.lane.b32.xlu0 %v6421_v40, %s5052_s25 }
 0x423   : > { %2569 = vrot.lane.b32.xlu1 %v6589_v33, %s5052_s25 }
 0x424   : > { %2327 = vrot.lane.b32.xlu0 %v2311_v37, %s5053_s26  ;;  %v2795_v37 = vsel %vm8010_vm3, %v6415_v21, 0  ;;  %vm8020_vm3 = vcmp.ne.s16.totalorder %v5532_v17, 0 }
 0x427   : > { %2329 = vrot.lane.b32.xlu1 %v2312_v39, %s5053_s26  ;;  %s8011_s26 = smov 93  }
 0x428   : > { %2733 = vrot.lane.b32.xlu0 %v2718_v54, %s7971_s15  ;;  %v2678_v54 = vsel %vm8012_vm14, %v6589_v33, 0 }
 0x42b   : > { %2407 = vrot.lane.b32.xlu1 %v2390_v56, %s5054_s30 }
 0x42c   : > { %2767 = vrot.lane.b32.xlu0 %v6415_v21, %s8001_s24 }
 0x42f   : > { %2449 = vrot.lane.b32.xlu1 %v2432_v46, %s5055_s9 }
 0x430   : > { %2771 = vrot.lane.b32.xlu0 %v6421_v40, %s8001_s24 }
 0x433   : > { %2491 = vrot.lane.b32.xlu1 %v2474_v32, %s5056_s12  ;;  %v2720_v32 = vsel %vm8014_vm0, %v6589_v33, 0  ;;  %vm8025_vm0 = vmmov %vm8016_vm2 }
 0x434   : > { %2405 = vrot.lane.b32.xlu0 %v2389_v52, %s5054_s30  ;;  %v2796_v52 = vsel %vm8016_vm2, %v6437_v18, 0  ;;  %vm8026_vm2 = vcmp.ne.s16.totalorder %v7987_v31, 0  ;;  %s8282_s30 = sshll.u32 %s8284_s28, 6 }
 0x437   : > { %2533 = vrot.lane.b32.xlu1 %v2516_v57, %s5057_s13 }
 0x438   : > { %2769 = vrot.lane.b32.xlu0 %v6437_v18, %s8001_s24 }
 0x439   : > { %v6635_v60 = vpop.permute.xlu1 %2355 }
 0x43a   : > { %v6637_v63 = vpop.permute.xlu0 %2359 }
 0x43b   : > { %2611 = vrot.lane.b32.xlu1 %v2594_v4, %s5058_s14  ;;  %v2515_v4 = vsel %vm8017_vm1, %v6421_v40, 0  ;;  %vm8027_vm1 = vcmp.ne.s16.totalorder %v8009_v50, 0 }
 0x43c   : > { %2447 = vrot.lane.b32.xlu0 %v2431_v1, %s5055_s9 }
 0x43d   : > { %v6647_v25 = vpop.permute.xlu1 %2559 }
 0x43e   : > { %v6649_v20 = vpop.permute.xlu0 %2563 }
 0x43f   : > { %2653 = vrot.lane.b32.xlu1 %v2636_v45, %s5060_s16 }
 0x440   : > { %2809 = vrot.lane.b32.xlu0 %v2795_v37, %s8011_s26  ;;  %v4975_v37 = vld [vmem:[%s7708_s3 + $0x4] ss:$28 sps:$4 sm:$0xff]  }
 0x441   : > { %v6659_v61 = vpop.permute.xlu1 %2319  ;;  %3643 = vmatprep.mubr.bf16.mxu1 %v4975_v37 }
 0x442   : > { %v6661_v39 = vpop.permute.xlu0 %2323 }
 0x443   : > { %2695 = vrot.lane.b32.xlu1 %v2678_v54, %s5061_s19  ;;  %v2837_v54 = vsel %vm8018_vm4, %v6415_v21, 0  ;;  %vm8028_vm4 = vcmp.ne.s16.totalorder %v5548_v27, 0 }
 0x444   : > { %2489 = vrot.lane.b32.xlu0 %v2473_v26, %s5056_s12  ;;  %s8019_s12 = smov 92  }
 0x445   : > { %v6671_v56 = vpop.permute.xlu1 %2397 }
 0x446   : > { %v6673_v46 = vpop.permute.xlu0 %2401 }
 0x447   : > { %2737 = vrot.lane.b32.xlu1 %v2720_v32, %s7971_s15 }
 0x448   : > { %2811 = vrot.lane.b32.xlu0 %v2796_v52, %s8011_s26  ;;  %v2838_v52 = vsel %vm8020_vm3, %v6437_v18, 0  ;;  %vm8031_vm3 = vcmp.ne.s16.totalorder %v5698_v43, 0 }
 0x449   : > { %v6683_v36 = vpop.permute.xlu1 %2439 }
 0x44a   : > { %v6685_v57 = vpop.permute.xlu0 %2443 }
 0x44b   : > { %2765 = vrot.lane.b32.xlu1 %v6403_v49, %s8001_s24 }
 0x44c   : > { %2531 = vrot.lane.b32.xlu0 %v2515_v4, %s5057_s13 }
 0x44d   : > { %v6693_v1 = vpop.permute.xlu1 %2481 }
 0x44e   : > { %v6695_v45 = vpop.permute.xlu0 %2485 }
 0x44f   : > { %2763 = vrot.lane.b32.xlu1 %v6410_v12, %s8001_s24 }
 0x450   : > { %2851 = vrot.lane.b32.xlu0 %v2837_v54, %s8019_s12  ;;  %v8021_v54 = vld [vmem:[#allocation25_spill] sm:$0xff] }
 0x451   : > { %v6706_v26 = vpop.permute.xlu1 %2523  ;;  %vm8022_vm14 = vcmp.ne.s16.totalorder %v8021_v54, 0 }
 0x452   : > { %v6708_v32 = vpop.permute.xlu0 %2527  ;;  %v2794_v37 = vsel %vm8022_vm14, %v6403_v49, 0  ;;  %vm8032_vm14 = vcmp.ne.s16.totalorder %v7990_v42, 0 }
 0x453   : > { %2773 = vrot.lane.b32.xlu1 %v6589_v33, %s8001_s24 }
 0x454   : > { %2853 = vrot.lane.b32.xlu0 %v2838_v52, %s8019_s12  ;;  %v2793_v52 = vsel %vm8025_vm0, %v6410_v12, 0  ;;  %vm8034_vm0 = vcmp.ne.s16.totalorder %v5838_v34, 0 }
 0x455   : > { %v6716_v4 = vpop.permute.xlu1 %2601 }
 0x456   : > { %v6718_v28 = vpop.permute.xlu0 %2605 }
 0x457   : > { %2807 = vrot.lane.b32.xlu1 %v2794_v37, %s8011_s26  ;;  %v2593_v37 = vsel %vm8026_vm2, %v6421_v40, 0  ;;  %vm8036_vm2 = vcmp.ne.s16.totalorder %v5516_v10, 0 }
 0x458   : > { %2893 = vrot.lane.b32.xlu0 %v2879_v59, %s8024_s22  ;;  %v2798_v59 = vsel %vm8027_vm1, %v6589_v33, 0  ;;  %vm8037_vm1 = vcmp.ne.s16.totalorder %v7993_v35, 0 }
 0x459   : > { %v6728_v15 = vpop.permute.xlu1 %2643  ;;  %v2677_v17 = vsel %vm8037_vm1, %v6421_v40, 0  ;;  %vm8044_vm1 = vcmp.ne.s16.totalorder %v5536_v19, 0 }
 0x45a   : > { %v6730_v38 = vpop.permute.xlu0 %2647 }
 0x45b   : > { %2805 = vrot.lane.b32.xlu1 %v2793_v52, %s8011_s26  ;;  %v2880_v52 = vsel %vm8028_vm4, %v6437_v18, 0  ;;  %vm8038_vm4 = vcmp.ne.s16.totalorder %v5743_v0, 0 }
 0x45c   : > { %2609 = vrot.lane.b32.xlu0 %v2593_v37, %s5058_s14  ;;  %v2836_v37 = vsel %vm8031_vm3, %v6403_v49, 0  ;;  %vm8039_vm3 = vcmask 1039360  }
 0x45d   : > { %v6740_v23 = vpop.permute.xlu1 %2685 }
 0x45e   : > { %v6742_v44 = vpop.permute.xlu0 %2689 }
 0x45f   : > { %2815 = vrot.lane.b32.xlu1 %v2798_v59, %s8011_s26  ;;  %v2635_v59 = vsel %vm8032_vm14, %v6421_v40, 0  ;;  %vm8040_vm14 = vmmov %vm8039_vm3 }
 0x460   : > { %2895 = vrot.lane.b32.xlu0 %v2880_v52, %s8024_s22  ;;  %v2835_v52 = vsel %vm8033_vm15, %v6410_v12, 0  ;;  %vm8041_vm15 = vcmp.ne.s16.totalorder %v5833_v58, 0 }
 0x461   : > { %v6752_v8 = vpop.permute.xlu1 %2727  ;;  %v2922_v35 = vsel %vm8041_vm15, %v6437_v18, 0 }
 0x462   : > { %8029 = vst [vmem:[#allocation15_spill] sm:$0xff] %v6752_v8  ;;  %v6754_v31 = vpop.permute.xlu0 %2731 }
 0x463   : > { %8030 = vst [vmem:[#allocation14_spill] sm:$0xff] %v6754_v31  ;;  %2849 = vrot.lane.b32.xlu1 %v2836_v37, %s8019_s12  ;;  %v2921_v37 = vsel %vm8034_vm0, %v6415_v21, 0  ;;  %vm8042_vm0 = vcmp.ne.s16.totalorder %v5548_v27, 0 }
 0x464   : > { %2651 = vrot.lane.b32.xlu0 %v2635_v59, %s5060_s16  ;;  %v2840_v59 = vsel %vm8036_vm2, %v6589_v33, 0  ;;  %vm8043_vm2 = vcmp.ne.s16.totalorder %v7996_v13, 0  ;;  %s8045_s16 = smov 78  }
 0x465   : > { %v6764_v50 = vpop.permute.xlu1 %2357 }
 0x466   : > { %v6766_v3 = vpop.permute.xlu0 %2361 }
 0x467   : > { %2847 = vrot.lane.b32.xlu1 %v2835_v52, %s8019_s12 }
 0x468   : > { %2935 = vrot.lane.b32.xlu0 %v2921_v37, %s8035_s18  ;;  %v2878_v37 = vsel %vm8038_vm4, %v6403_v49, 0  ;;  %vm8046_vm4 = vcmp.ne.s16.totalorder %v5842_v2, 0 }
 0x469   : > { %v6776_v42 = vpop.permute.xlu1 %2561 }
 0x46a   : > { %v6778_v62 = vpop.permute.xlu0 %2565 }
 0x46b   : > { %2857 = vrot.lane.b32.xlu1 %v2840_v59, %s8019_s12 }
 0x46c   : > { %2693 = vrot.lane.b32.xlu0 %v2677_v17, %s5061_s19  ;;  %s8051_s19 = smov 77  }
 0x46d   : > { %v2322_v52 = vpop.permute.xlu1 %2321 }
 0x46e   : > { %v6788_v5 = vpop.permute.xlu0 %2325  ;;  %v2332_v9 = vsel %vm8039_vm3, %v2322_v52, %v6661_v39  ;;  %v2331_v10 = vsel %vm8040_vm14, %v6659_v61, %v2322_v52  ;;  %v2877_v39 = vsel %vm8042_vm0, %v6410_v12, 0  ;;  %vm8047_vm3 = vmmov %vm8041_vm15  ;;  %vm8048_vm14 = vcmp.ne.s16.totalorder %v5838_v34, 0 }
 0x46f   : > { %2891 = vrot.lane.b32.xlu1 %v2878_v37, %s8024_s22  ;;  %3615 = vmatprep.subr.bf16.mxu1 %v2332_v9  ;;  %v2719_v9 = vsel %vm8043_vm2, %v6421_v40, 0  ;;  %v2882_v37 = vsel %vm8044_vm1, %v6589_v33, 0  ;;  %vm8049_vm15 = vcmp.ne.s16.totalorder %v8021_v54, 0  ;;  %vm8050_vm0 = vcmp.ne.s16.totalorder %v5962_v6, 0 }
 0x470   : > { %2937 = vrot.lane.b32.xlu0 %v2922_v35, %s8035_s18  ;;  %3616 = vmatpush1.bf16.msra.mxu1 %v2331_v10  ;;  %v2920_v35 = vsel %vm8046_vm4, %v6403_v49, 0  ;;  %v2797_v58 = vsel %vm8049_vm15, %v6421_v40, 0  ;;  %v2999_v34 = vsel %vm8050_vm0, %v6415_v21, 0  ;;  %vm8053_vm2 = vcmp.ne.s16.totalorder %v5698_v43, 0 }
 0x471   : > { %v6802_v59 = vpop.permute.xlu1 %2399  ;;  %vm8055_vm1 = vcmp.ne.s16.totalorder %v5957_v53, 0  ;;  %vm8056_vm4 = vcmp.ne.s16.totalorder %v5966_v24, 0  ;;  %vm8059_vm15 = vcmp.ne.s16.totalorder %v6030_v7, 0 }
 0x472   : > { %v6804_v17 = vpop.permute.xlu0 %2403  ;;  %v2998_v43 = vsel %vm8056_vm4, %v6403_v49, 0  ;;  %v3041_v31 = vsel %vm8059_vm15, %v6415_v21, 0  ;;  %vm8066_vm15 = vcmp.ne.s16.totalorder %v6027_v48, 0 }
 0x473   : > { %2889 = vrot.lane.b32.xlu1 %v2877_v39, %s8024_s22 }
 0x474   : > { %2735 = vrot.lane.b32.xlu0 %v2719_v9, %s7971_s15  ;;  %v2919_v9 = vsel %vm8047_vm3, %v6410_v12, 0  ;;  %vm8057_vm3 = vcmp.ne.s16.totalorder %v5743_v0, 0 }
 0x475   : > { %v6814_v61 = vpop.permute.xlu1 %2441 }
 0x476   : > { %v6816_v52 = vpop.permute.xlu0 %2445 }
 0x477   : > { %2899 = vrot.lane.b32.xlu1 %v2882_v37, %s8024_s22 }
 0x478   : > { %2971 = vrot.lane.b32.xlu0 %v6415_v21, %s8045_s16 }
 0x479   : > { %v6824_v27 = vpop.permute.xlu1 %2483 }
 0x47a   : > { %v6826_v10 = vpop.permute.xlu0 %2487 }
 0x47b   : > { %2933 = vrot.lane.b32.xlu1 %v2920_v35, %s8035_s18  ;;  %v2924_v35 = vsel %vm8048_vm14, %v6589_v33, 0  ;;  %vm8058_vm14 = vmmov %vm8055_vm1 }
 0x47c   : > { %2975 = vrot.lane.b32.xlu0 %v6421_v40, %s8045_s16 }
 0x47d   : > { %v6834_v19 = vpop.permute.xlu1 %2525 }
 0x47e   : > { %v6836_v39 = vpop.permute.xlu0 %2529 }
 0x47f   : > { %2931 = vrot.lane.b32.xlu1 %v2919_v9, %s8035_s18 }
 0x480   : > { %2973 = vrot.lane.b32.xlu0 %v6437_v18, %s8045_s16 }
 0x481   : > { %v6844_v37 = vpop.permute.xlu1 %2603 }
 0x482   : > { %v6846_v13 = vpop.permute.xlu0 %2607 }
 0x483   : > { %2941 = vrot.lane.b32.xlu1 %v2924_v35, %s8035_s18 }
 0x484   : > { %2813 = vrot.lane.b32.xlu0 %v2797_v58, %s8011_s26  ;;  %v2839_v58 = vsel %vm8053_vm2, %v6421_v40, 0  ;;  %vm8061_vm2 = vcmask 1039360  }
 0x485   : > { %v6856_v9 = vpop.permute.xlu1 %2645  ;;  %vm8063_vm4 = vmmov %vm8061_vm2 }
 0x486   : > { %v6858_v16 = vpop.permute.xlu0 %2649 }
 0x487   : > { %2969 = vrot.lane.b32.xlu1 %v6403_v49, %s8045_s16 }
 0x488   : > { %3013 = vrot.lane.b32.xlu0 %v2999_v34, %s8051_s19  ;;  %v3000_v34 = vsel %vm8055_vm1, %v6437_v18, 0  ;;  %vm8062_vm1 = vcmp.ne.s16.totalorder %v5842_v2, 0 }
 0x489   : > { %v6866_v35 = vpop.permute.xlu1 %2687 }
 0x48a   : > { %v6868_v11 = vpop.permute.xlu0 %2691 }
 0x48b   : > { %8052 = vst [vmem:[#allocation17_spill] sm:$0xff] %v6868_v11  ;;  %2967 = vrot.lane.b32.xlu1 %v6410_v12, %s8045_s16 }
 0x48c   : > { %2855 = vrot.lane.b32.xlu0 %v2839_v58, %s8019_s12  ;;  %v2881_v58 = vsel %vm8057_vm3, %v6421_v40, 0  ;;  %vm8064_vm3 = vcmask 1031168   ;;  %s7685_s12 = scalar_lea.vmem %s7713_s8, %s8282_s30 }
 0x48d   : > { %v6876_v54 = vpop.permute.xlu1 %2729 }
 0x48e   : > { %8054 = vst [vmem:[#allocation16_spill] sm:$0xff] %v6876_v54  ;;  %v2364_v22 = vpop.permute.xlu0 %2363 }
 0x48f   : > { %2977 = vrot.lane.b32.xlu1 %v6589_v33, %s8045_s16 }
 0x490   : > { %3015 = vrot.lane.b32.xlu0 %v3000_v34, %s8051_s19  ;;  %v2997_v34 = vsel %vm8058_vm14, %v6410_v12, 0  ;;  %vm8065_vm14 = vcmp.ne.s16.totalorder %v6034_v30, 0 }
 0x491   : > { %v2366_v14 = vpop.permute.xlu1 %2365 }
 0x492   : > { %v6884_v47 = vpop.permute.xlu0 %2567 }
 0x493   : > { %3011 = vrot.lane.b32.xlu1 %v2998_v43, %s8051_s19 }
 0x494   : > { %2897 = vrot.lane.b32.xlu0 %v2881_v58, %s8024_s22  ;;  %v3002_v58 = vsel %vm8050_vm0, %v6589_v33, 0  ;;  %vm8067_vm0 = vmmov %vm8064_vm3  ;;  %s8111_s22 = smov 61  }
 0x495   : > { %v6894_v8 = vpop.permute.xlu1 %2569 }
 0x496   : > { %v2328_v54 = vpop.permute.xlu0 %2327 }
 0x497   : > { %3009 = vrot.lane.b32.xlu1 %v2997_v34, %s8051_s19  ;;  %v2923_v34 = vsel %vm8062_vm1, %v6421_v40, 0  ;;  %v2333_v53 = vsel %vm8063_vm4, %v6788_v5, %v2328_v54  ;;  %v3042_v5 = vsel %vm8066_vm15, %v6437_v18, 0  ;;  %vm8069_vm1 = vmmov %vm8066_vm15  ;;  %vm8070_vm4 = vcmp.ne.s16.totalorder %v6078_v41, 0 }
 0x498   : > { %3055 = vrot.lane.b32.xlu0 %v3041_v31, %s8060_s29  ;;  %v2368_v31 = vsel %vm8064_vm3, %v6764_v50, %v6637_v63  ;;  %vm8071_vm3 = vmmov %vm8067_vm0  ;;  %vm8074_vm15 = vcmp.ne.s16.totalorder %v6030_v7, 0 }
 0x499   : > { %v2330_v43 = vpop.permute.xlu1 %2329 }
 0x49a   : > { %v6904_v0 = vpop.permute.xlu0 %2733  ;;  %v2334_v11 = vsel %vm8061_vm2, %v2328_v54, %v2330_v43  ;;  %vm8068_vm2 = vmmov %vm8067_vm0 }
 0x49b   : > { %3019 = vrot.lane.b32.xlu1 %v3002_v58, %s8051_s19  ;;  %3617 = vmatprep.subr.bf16.mxu1 %v2334_v11  ;;  %v3040_v11 = vsel %vm8065_vm14, %v6403_v49, 0  ;;  %v2370_v63 = vsel %vm8068_vm2, %v2364_v22, %v2366_v14  ;;  %vm8073_vm14 = vcmask 1022976  }
 0x49c   : > { %2939 = vrot.lane.b32.xlu0 %v2923_v34, %s8035_s18  ;;  %3618 = vmatpush1.bf16.msra.mxu1 %v2333_v53  ;;  %v2367_v53 = vsel %vm8067_vm0, %v6635_v60, %v6764_v50  ;;  %v3039_v34 = vsel %vm8069_vm1, %v6410_v12, 0  ;;  %v2369_v60 = vsel %vm8071_vm3, %v6766_v3, %v2364_v22  ;;  %v2410_v14 = vsel %vm8073_vm14, %v6802_v59, %v6673_v46  ;;  %vm8076_vm2 = vmmov %vm8073_vm14 }
 0x49d   : > { %v2408_v6 = vpop.permute.xlu1 %2407  ;;  %3619 = vmatprep.subr.bf16.mxu1 %v2368_v31  ;;  %v3083_v31 = vsel %vm8070_vm4, %v6415_v21, 0  ;;  %vm8075_vm0 = vcmp.ne.s16.totalorder %v6076_v51, 0  ;;  %v2409_v22 = vsel %vm8076_vm2, %v6671_v56, %v6802_v59  ;;  %vm8077_vm1 = vmmov %vm8076_vm2  ;;  %vm8078_vm4 = vcmp.ne.s16.totalorder %v6083_v55, 0 }
 0x49e   : > { %v6920_v43 = vpop.permute.xlu0 %2767  ;;  %v3084_v3 = vsel %vm8075_vm0, %v6437_v18, 0  ;;  %v3082_v7 = vsel %vm8078_vm4, %v6403_v49, 0  ;;  %vm8079_vm3 = vcmp.ne.s16.totalorder %v5966_v24, 0  ;;  %vm8080_vm14 = vmmov %vm8077_vm1  ;;  %vm8082_vm2 = vcmp.ne.s16.totalorder %v6118_v29, 0 }
 0x49f   : > { %3053 = vrot.lane.b32.xlu1 %v3040_v11, %s8060_s29  ;;  %v3044_v11 = vsel %vm8074_vm15, %v6589_v33, 0  ;;  %vm8081_vm15 = vcmask 1014784  }
 0x4a0   : > { %3057 = vrot.lane.b32.xlu0 %v3042_v5, %s8060_s29  ;;  %3620 = vmatpush1.bf16.msra.mxu1 %v2367_v53  ;;  %v2452_v56 = vsel %vm8081_vm15, %v6814_v61, %v6685_v57 }
 0x4a1   : > { %v2450_v54 = vpop.permute.xlu1 %2449  ;;  %3621 = vmatprep.subr.bf16.mxu1 %v2370_v63  ;;  %v3001_v63 = vsel %vm8079_vm3, %v6421_v40, 0  ;;  %vm8086_vm3 = vcmp.ne.s16.totalorder %v6078_v41, 0 }
 0x4a2   : > { %v6934_v58 = vpop.permute.xlu0 %2771 }
 0x4a3   : > { %3051 = vrot.lane.b32.xlu1 %v3039_v34, %s8060_s29 }
 0x4a4   : > { %3097 = vrot.lane.b32.xlu0 %v3083_v31, %s8072_s17  ;;  %3622 = vmatpush1.bf16.msra.mxu1 %v2369_v60  ;;  %v3081_v31 = vsel %vm8075_vm0, %v6410_v12, 0  ;;  %vm8089_vm0 = vcmask 916480  }
 0x4a5   : > { %v2492_v50 = vpop.permute.xlu1 %2491  ;;  %3623 = vmatprep.subr.bf16.mxu1 %v2410_v14 }
 0x4a6   : > { %v2406_v48 = vpop.permute.xlu0 %2405 }
 0x4a7   : > { %3061 = vrot.lane.b32.xlu1 %v3044_v11, %s8060_s29  ;;  %v2412_v5 = vsel %vm8077_vm1, %v2406_v48, %v2408_v6  ;;  %v2411_v6 = vsel %vm8080_vm14, %v6804_v17, %v2406_v48  ;;  %v3125_v17 = vsel %vm8082_vm2, %v6415_v21, 0  ;;  %vm8083_vm1 = vmmov %vm8081_vm15  ;;  %v3086_v48 = vsel %vm8086_vm3, %v6589_v33, 0 }
 0x4a8   : > { %3099 = vrot.lane.b32.xlu0 %v3084_v3, %s8072_s17  ;;  %3624 = vmatpush1.bf16.msra.mxu1 %v2409_v22  ;;  %v2451_v60 = vsel %vm8083_vm1, %v6683_v36, %v6814_v61  ;;  %vm8084_vm4 = vmmov %vm8083_vm1  ;;  %vm8087_vm14 = vcmp.ne.s16.totalorder %v6034_v30, 0  ;;  %v8090_v3 = vld [vmem:[#allocation31_spill] sm:$0xff]  ;;  %v8092_v30 = vld [vmem:[#allocation30_spill] sm:$0xff] }
 0x4a9   : > { %v2534_v46 = vpop.permute.xlu1 %2533  ;;  %3625 = vmatprep.subr.bf16.mxu1 %v2412_v5  ;;  %v3043_v36 = vsel %vm8087_vm14, %v6421_v40, 0  ;;  %vm8088_vm15 = vmmov %vm8083_vm1  ;;  %vm8091_vm2 = vcmp.ne.s16.totalorder %v8090_v3, 0  ;;  %vm8093_vm1 = vcmp.ne.s16.totalorder %v8092_v30, 0 }
 0x4aa   : > { %v6961_v53 = vpop.permute.xlu0 %2769  ;;  %v3124_v22 = vsel %vm8091_vm2, %v6403_v49, 0  ;;  %vm8095_vm3 = vmmov %vm8089_vm0  ;;  %vm8098_vm2 = vcmask 908288  }
 0x4ab   : > { %3095 = vrot.lane.b32.xlu1 %v3082_v7, %s8072_s17  ;;  %vm8096_vm14 = vmmov %vm8093_vm1 }
 0x4ac   : > { %3017 = vrot.lane.b32.xlu0 %v3001_v63, %s8051_s19  ;;  %3626 = vmatpush1.bf16.msra.mxu1 %v2411_v6  ;;  %v3123_v6 = vsel %vm8096_vm14, %v6410_v12, 0  ;;  %vm8103_vm14 = vcmp.ne.s16.totalorder %v8090_v3, 0  ;;  %v3199_v3 = vld [vmem:[#allocation3 + $0x20] sm:$0xff] }
 0x4ad   : > { %v6976_v59 = vpop.permute.xlu1 %2611  ;;  %3627 = vmatprep.subr.bf16.mxu1 %v2452_v56 }
 0x4ae   : > { %v2448_v34 = vpop.permute.xlu0 %2447 }
 0x4af   : > { %3093 = vrot.lane.b32.xlu1 %v3081_v31, %s8072_s17  ;;  %v2454_v57 = vsel %vm8084_vm4, %v2448_v34, %v2450_v54  ;;  %v2453_v61 = vsel %vm8088_vm15, %v6816_v52, %v2448_v34  ;;  %v2494_v54 = vsel %vm8089_vm0, %v6824_v27, %v6695_v45  ;;  %v3126_v52 = vsel %vm8093_vm1, %v6437_v18, 0  ;;  %vm8094_vm4 = vmmov %vm8089_vm0 }
 0x4b0   : > { %3139 = vrot.lane.b32.xlu0 %v3125_v17, %s8085_s20  ;;  %3628 = vmatpush1.bf16.msra.mxu1 %v2451_v60  ;;  %v2493_v5 = vsel %vm8094_vm4, %v6693_v1, %v6824_v27  ;;  %vm8097_vm15 = vcmp.ne.s16.totalorder %v6083_v55, 0  ;;  %vm8099_vm1 = vcmp.ne.s16.totalorder %v6118_v29, 0  ;;  %vm8100_vm4 = vmmov %vm8098_vm2  ;;  %v3127_v29 = vsel %vm8103_vm14, %v6421_v40, 0 }
 0x4b1   : > { %v6990_v14 = vpop.permute.xlu1 %2653  ;;  %3629 = vmatprep.subr.bf16.mxu1 %v2454_v57  ;;  %v3085_v1 = vsel %vm8097_vm15, %v6421_v40, 0  ;;  %v3128_v31 = vsel %vm8099_vm1, %v6589_v33, 0  ;;  %v2535_v55 = vsel %vm8100_vm4, %v6706_v26, %v6834_v19  ;;  %vm8104_vm15 = vmmov %vm8098_vm2 }
 0x4b2   : > { %v6992_v51 = vpop.permute.xlu0 %2809 }
 0x4b3   : > { %3103 = vrot.lane.b32.xlu1 %v3086_v48, %s8072_s17  ;;  %v3248_v48 = vsel %vm1572_vm9, %v6589_v33, 0 }
 0x4b4   : > { %3059 = vrot.lane.b32.xlu0 %v3043_v36, %s8060_s29  ;;  %3630 = vmatpush1.bf16.msra.mxu1 %v2453_v61 }
 0x4b5   : > { %v7007_v11 = vpop.permute.xlu1 %2695  ;;  %3631 = vmatprep.subr.bf16.mxu1 %v2494_v54 }
 0x4b6   : > { %v2490_v41 = vpop.permute.xlu0 %2489 }
 0x4b7   : > { %3137 = vrot.lane.b32.xlu1 %v3124_v22, %s8085_s20  ;;  %v2496_v45 = vsel %vm8095_vm3, %v2490_v41, %v2492_v50  ;;  %v2495_v27 = vsel %vm8089_vm0, %v6826_v10, %v2490_v41  ;;  %v2536_v50 = vsel %vm8098_vm2, %v6834_v19, %v6708_v32  ;;  %vm8101_vm3 = vmmov %vm8098_vm2  ;;  %vm8105_vm0 = vcmask 900096   ;;  %v3195_v41 = vld [vmem:[#allocation3] sm:$0xff] }
 0x4b8   : > { %3141 = vrot.lane.b32.xlu0 %v3126_v52, %s8085_s20  ;;  %3632 = vmatpush1.bf16.msra.mxu1 %v2493_v5  ;;  %vm8106_vm2 = vmmov %vm8105_vm0  ;;  %v8115_v52 = vld [vmem:[#allocation32_spill] sm:$0xff] }
 0x4b9   : > { %v7021_v7 = vpop.permute.xlu1 %2737  ;;  %3633 = vmatprep.subr.bf16.mxu1 %v2496_v45  ;;  %vm8107_vm1 = vmmov %vm8105_vm0 }
 0x4ba   : > { %v7023_v63 = vpop.permute.xlu0 %2811  ;;  %vm8108_vm4 = vmmov %vm8105_vm0 }
 0x4bb   : > { %3135 = vrot.lane.b32.xlu1 %v3123_v6, %s8085_s20  ;;  %v3198_v6 = vld [vmem:[#allocation3 + $0x18] sm:$0xff] }
 0x4bc   : > { %3101 = vrot.lane.b32.xlu0 %v3085_v1, %s8072_s17  ;;  %3634 = vmatpush1.bf16.msra.mxu1 %v2495_v27  ;;  %v4979_v27 = vld [vmem:[%s7708_s3 + $0x74] ss:$28 sps:$4 sm:$0xff]  }
 0x4bd   : > { %v7038_v56 = vpop.permute.xlu1 %2765  ;;  %3635 = vmatprep.subr.bf16.mxu1 %v2536_v50  ;;  %v3206_v50 = vsel %vm1520_vm8, %v6589_v33, 0 }
 0x4be   : > { %v2532_v34 = vpop.permute.xlu0 %2531 }
 0x4bf   : > { %3145 = vrot.lane.b32.xlu1 %v3128_v31, %s8085_s20  ;;  %v2538_v10 = vsel %vm8101_vm3, %v2532_v34, %v2534_v46  ;;  %v2537_v26 = vsel %vm8104_vm15, %v6836_v39, %v2532_v34  ;;  %vm8109_vm3 = vcmask 891904  }
 0x4c0   : > { %3175 = vrot.lane.b32.xlu0 %v6415_v21, %s8102_s21  ;;  %3636 = vmatpush1.bf16.msra.mxu1 %v2535_v55  ;;  %v2572_v21 = vsel %vm8105_vm0, %v6776_v42, %v6649_v20  ;;  %v2574_v20 = vsel %vm8107_vm1, %v6884_v47, %v6894_v8  ;;  %v2614_v8 = vsel %vm8109_vm3, %v6844_v37, %v6718_v28  ;;  %vm8113_vm14 = vmmov %vm8109_vm3  ;;  %vm8116_vm0 = vcmp.ne.s16.totalorder %v8115_v52, 0 }
 0x4c1   : > { %v7050_v32 = vpop.permute.xlu1 %2763  ;;  %3637 = vmatprep.subr.bf16.mxu1 %v2538_v10  ;;  %v2613_v28 = vsel %vm8113_vm14, %v6716_v4, %v6844_v37  ;;  %vm8114_vm15 = vmmov %vm8109_vm3  ;;  %v3201_v5 = vsel %vm8116_vm0, %v3195_v41, 0  ;;  %v3205_v4 = vsel %vm1519_vm11, %v3199_v3, 0  ;;  %vm8118_vm1 = vcmask 883712  }
 0x4c2   : > { %v7052_v17 = vpop.permute.xlu0 %2851  ;;  %v2656_v45 = vsel %vm8118_vm1, %v6856_v9, %v6730_v38  ;;  %vm8126_vm14 = vcmask 785408  }
 0x4c3   : > { %3173 = vrot.lane.b32.xlu1 %v6403_v49, %s8102_s21  ;;  %v2571_v49 = vsel %vm8106_vm2, %v6647_v25, %v6776_v42  ;;  %v3196_v25 = vld [vmem:[#allocation3 + $0x8] sm:$0xff]  ;;  %v3197_v42 = vld [vmem:[#allocation3 + $0x10] sm:$0xff]  ;;  %vm8117_vm2 = vmmov %vm8109_vm3 }
 0x4c4   : > { %3143 = vrot.lane.b32.xlu0 %v3127_v29, %s8085_s20  ;;  %3638 = vmatpush1.bf16.msra.mxu1 %v2537_v26  ;;  %v3202_v36 = vsel %vm1519_vm11, %v3196_v25, 0  ;;  %v3203_v61 = vsel %vm1520_vm8, %v3197_v42, 0  ;;  %vm8119_vm11 = vmmov %vm8116_vm0  ;;  %v3244_v26 = vsel %vm1571_vm6, %v3196_v25, 0  ;;  %v3243_v25 = vsel %vm1570_vm13, %v3195_v41, 0  ;;  %v3412_v41 = vld [vmem:[%s7709_s4 + $0x8] sm:$0xff]  ;;  %v3417_v29 = vld [vmem:[%s7709_s4 + $0x30] sm:$0xff] }
 0x4c5   : > { %v7065_v19 = vpop.permute.xlu1 %2773  ;;  %3639 = vmatprep.subr.bf16.mxu1 %v2572_v21  ;;  %v3204_v34 = vsel %vm8119_vm11, %v3198_v6, 0  ;;  %vm8121_vm3 = vmmov %vm8118_vm1  ;;  %vm8139_vm11 = vcmask 769024   ;;  %v3418_v21 = vld [vmem:[%s7709_s4 + $0x38] sm:$0xff] }
 0x4c6   : > { %v7067_v46 = vpop.permute.xlu0 %2853  ;;  %vm8125_vm8 = vmmov %vm8118_vm1 }
 0x4c7   : > { %3171 = vrot.lane.b32.xlu1 %v6410_v12, %s8102_s21  ;;  %v2573_v12 = vsel %vm8108_vm4, %v6778_v62, %v6884_v47  ;;  %v4976_v47 = vld [vmem:[%s7708_s3 + $0x3c] ss:$28 sps:$4 sm:$0xff]   ;;  %vm8120_vm4 = vmmov %vm8118_vm1 }
 0x4c8   : > { %3179 = vrot.lane.b32.xlu0 %v6421_v40, %s8102_s21  ;;  %3640 = vmatpush1.bf16.msra.mxu1 %v2571_v49  ;;  %v4973_v40 = vld [vmem:[%s7708_s3] ss:$28 sps:$4 sm:$0xff]   ;;  %v2655_v38 = vsel %vm8120_vm4, %v6728_v15, %v6856_v9  ;;  %v3245_v15 = vsel %vm1572_vm9, %v3197_v42, 0  ;;  %v2698_v49 = vsel %vm8126_vm14, %v6866_v35, %v6742_v44  ;;  %vm8129_vm0 = vmmov %vm8126_vm14 }
 0x4c9   : > { %v7079_v39 = vpop.permute.xlu1 %2807  ;;  %3641 = vmatprep.subr.bf16.mxu1 %v2574_v20  ;;  %vm8140_vm4 = vmmov %vm8139_vm11 }
 0x4ca   : > { %v7081_v60 = vpop.permute.xlu0 %2893 }
 0x4cb   : > { %3181 = vrot.lane.b32.xlu1 %v6589_v33, %s8102_s21  ;;  %v3411_v33 = vld [vmem:[%s7709_s4] sm:$0xff] }
 0x4cc   : > { %3177 = vrot.lane.b32.xlu0 %v6437_v18, %s8102_s21  ;;  %3642 = vmatpush1.bf16.msra.mxu1 %v2573_v12  ;;  %v4982_v12 = vld [vmem:[%s7708_s3 + $0xac] ss:$28 sps:$4 sm:$0xff]   ;;  %v8132_v18 = vld [vmem:[#allocation14_spill] sm:$0xff] }
 0x4cd   : > { %v7096_v57 = vpop.permute.xlu1 %2805  ;;  %3684 = vmatprep.subr.bf16.mxu1 %v2614_v8  ;;  %v3247_v8 = vsel %vm1571_vm6, %v3199_v3, 0  ;;  %vm8131_vm6 = vmmov %vm8129_vm0  ;;  %v4987_v3 = vld [vmem:[%s7708_s3 + $0xc] ss:$28 sps:$4 sm:$0xff]  }
 0x4ce   : > { %v2610_v62 = vpop.permute.xlu0 %2609 }
 0x4cf   : > { %3215 = vrot.lane.b32.xlu1 %v3202_v36, %s8111_s22  ;;  %3644 = vmatmul.mubr.bf16.vlgmr.msra.gmra.mrb[16].mxu1 %v4973_v40  ;;  %v2616_v54 = vsel %vm8114_vm15, %v2610_v62, %v6976_v59  ;;  %v2615_v37 = vsel %vm8117_vm2, %v6846_v13, %v2610_v62  ;;  %v4978_v59 = vld [vmem:[%s7708_s3 + $0x38] ss:$28 sps:$4 sm:$0xff]   ;;  %vm8128_vm15 = vmmov %vm8126_vm14  ;;  %v4984_v36 = vld [vmem:[%s7708_s3 + $0xa8] ss:$28 sps:$4 sm:$0xff]   ;;  %vm8134_vm2 = vcmask 777216   ;;  %vm8143_vm14 = vcmask 760832  }
 0x4d0   : > { %3217 = vrot.lane.b32.xlu0 %v3203_v61, %s8111_s22  ;;  %3685 = vmatpush1.bf16.msra.mxu1 %v2613_v28  ;;  %v2697_v44 = vsel %vm8128_vm15, %v6740_v23, %v6866_v35  ;;  %v3246_v23 = vsel %vm1570_vm13, %v3198_v6, 0  ;;  %v8130_v35 = vld [vmem:[#allocation17_spill] sm:$0xff]  ;;  %v8133_v61 = vld [vmem:[#allocation16_spill] sm:$0xff]  ;;  %vm8136_vm9 = vmmov %vm8134_vm2 }
 0x4d1   : > { %v7112_v22 = vpop.permute.xlu1 %2815  ;;  %3686 = vmatprep.subr.bf16.mxu1 %v2616_v54  ;;  %3653 = vmatprep.mubr.bf16.mxu1 %v4976_v47  ;;  %v2740_v28 = vsel %vm8134_vm2, %v8133_v61, %v8132_v18  ;;  %vm8137_vm13 = vmmov %vm8134_vm2  ;;  %v3416_v6 = vld [vmem:[%s7709_s4 + $0x28] sm:$0xff] }
 0x4d2   : > { %v7114_v30 = vpop.permute.xlu0 %2895  ;;  %vm8138_vm1 = vmmov %vm8134_vm2  ;;  %vm8147_vm2 = vcmask 752640  }
 0x4d3   : > { %3213 = vrot.lane.b32.xlu1 %v3201_v5, %s8111_s22  ;;  %v8135_v5 = vld [vmem:[#allocation15_spill] sm:$0xff]  ;;  %vm8144_vm15 = vmmov %vm8143_vm14 }
 0x4d4   : > { %3221 = vrot.lane.b32.xlu0 %v3205_v4, %s8111_s22  ;;  %3687 = vmatpush1.bf16.msra.mxu1 %v2615_v37  ;;  %v2739_v4 = vsel %vm8136_vm9, %v8135_v5, %v8133_v61  ;;  %vm8148_vm9 = vmmov %vm8147_vm2  ;;  %v4990_v61 = vld [vmem:[%s7708_s3 + $0x40] ss:$28 sps:$4 sm:$0xff]  }
 0x4d5   : > { %v7130_v1 = vpop.permute.xlu1 %2849  ;;  %3688 = vmatprep.subr.bf16.mxu1 %v2656_v45 }
 0x4d6   : > { %v2652_v13 = vpop.permute.xlu0 %2651 }
 0x4d7   : > { %3223 = vrot.lane.b32.xlu1 %v3206_v50, %s8111_s22  ;;  %v2658_v31 = vsel %vm8121_vm3, %v2652_v13, %v6990_v14  ;;  %3654 = vmatmul.mubr.bf16.gmra.mrb[20].mxu1 %v4978_v59  ;;  %v2657_v9 = vsel %vm8125_vm8, %v6858_v16, %v2652_v13  ;;  %v4981_v14 = vld [vmem:[%s7708_s3 + $0x70] ss:$28 sps:$4 sm:$0xff]   ;;  %v3415_v59 = vld [vmem:[%s7709_s4 + $0x20] sm:$0xff]  ;;  %v2776_v13 = vsel %vm8139_vm11, %v7038_v56, %v6920_v43  ;;  %vm8141_vm3 = vmmov %vm8140_vm4  ;;  %vm8151_vm11 = vcmask 654336  }
 0x4d8   : > { %3219 = vrot.lane.b32.xlu0 %v3204_v34, %s8111_s22  ;;  %3689 = vmatpush1.bf16.msra.mxu1 %v2655_v38  ;;  %v3413_v50 = vld [vmem:[%s7709_s4 + $0x10] sm:$0xff]  ;;  %v3414_v38 = vld [vmem:[%s7709_s4 + $0x18] sm:$0xff]  ;;  %v2778_v43 = vsel %vm8141_vm3, %v6934_v58, %v7065_v19  ;;  %vm8142_vm8 = vmmov %vm8141_vm3 }
 0x4d9   : > { %v7147_v55 = vpop.permute.xlu1 %2847  ;;  %3690 = vmatprep.subr.bf16.mxu1 %v2658_v31  ;;  %3663 = vmatprep.mubr.bf16.mxu1 %v4979_v27 }
 0x4da   : > { %v7149_v10 = vpop.permute.xlu0 %2935 }
 0x4db   : > { %3257 = vrot.lane.b32.xlu1 %v3244_v26, %s8123_s23 }
 0x4dc   : > { %3259 = vrot.lane.b32.xlu0 %v3245_v15, %s8123_s23  ;;  %3691 = vmatpush1.bf16.msra.mxu1 %v2657_v9 }
 0x4dd   : > { %v7165_v20 = vpop.permute.xlu1 %2857  ;;  %3692 = vmatprep.subr.bf16.mxu1 %v2698_v49 }
 0x4de   : > { %v2694_v40 = vpop.permute.xlu0 %2693 }
 0x4df   : > { %3255 = vrot.lane.b32.xlu1 %v3243_v25, %s8123_s23  ;;  %v2700_v42 = vsel %vm8129_vm0, %v2694_v40, %v7007_v11  ;;  %3664 = vmatmul.mubr.bf16.gmra.mrb[24].mxu1 %v4981_v14  ;;  %v2699_v11 = vsel %vm8131_vm6, %v8130_v35, %v2694_v40  ;;  %v2817_v14 = vsel %vm8144_vm15, %v7096_v57, %v7079_v39  ;;  %vm8145_vm0 = vmmov %vm8143_vm14 }
 0x4e0   : > { %3263 = vrot.lane.b32.xlu0 %v3247_v8, %s8123_s23  ;;  %3693 = vmatpush1.bf16.msra.mxu1 %v2697_v44  ;;  %vm8146_vm6 = vmmov %vm8145_vm0 }
 0x4e1   : > { %v7181_v47 = vpop.permute.xlu1 %2891  ;;  %3694 = vmatprep.subr.bf16.mxu1 %v2700_v42  ;;  %3673 = vmatprep.mubr.bf16.mxu1 %v4982_v12 }
 0x4e2   : > { %v7183_v62 = vpop.permute.xlu0 %2937 }
 0x4e3   : > { %3265 = vrot.lane.b32.xlu1 %v3248_v48, %s8123_s23 }
 0x4e4   : > { %3261 = vrot.lane.b32.xlu0 %v3246_v23, %s8123_s23  ;;  %3695 = vmatpush1.bf16.msra.mxu1 %v2699_v11 }
 0x4e5   : > { %v7203_v54 = vpop.permute.xlu1 %2889  ;;  %3696 = vmatprep.subr.bf16.mxu1 %v2740_v28 }
 0x4e6   : > { %v2736_v52 = vpop.permute.xlu0 %2735 }
 0x4e7   : > { %3421 = vperm.xlu1 %4932, %v3411_v33   ;;  %v2742_v37 = vsel %vm8137_vm13, %v2736_v52, %v7021_v7  ;;  %3674 = vmatmul.mubr.bf16.gmra.mrb[28].mxu1 %v4984_v36  ;;  %v2741_v7 = vsel %vm8138_vm1, %v6904_v0, %v2736_v52  ;;  %v2775_v0 = vsel %vm8140_vm4, %v7050_v32, %v7038_v56  ;;  %vm8149_vm13 = vmmov %vm8147_vm2  ;;  %v4991_v33 = vld [vmem:[%s7708_s3 + $0x7c] ss:$28 sps:$4 sm:$0xff]  }
 0x4e8   : > { %3426 = vperm.xlu0 %4931, %v3412_v41   ;;  %3697 = vmatpush1.bf16.msra.mxu1 %v2739_v4  ;;  %v2777_v56 = vsel %vm8142_vm8, %v6961_v53, %v6934_v58  ;;  %v2818_v32 = vsel %vm8143_vm14, %v7079_v39, %v6992_v51  ;;  %v2860_v51 = vsel %vm8147_vm2, %v7130_v1, %v7052_v17  ;;  %vm8150_vm1 = vmmov %vm8147_vm2  ;;  %vm8155_vm14 = vcmask 646144  }
 0x4e9   : > { %v2900_v45 = vpop.permute.xlu1 %2899  ;;  %3698 = vmatprep.subr.bf16.mxu1 %v2742_v37  ;;  %3716 = vmatprep.mubr.bf16.mxu1 %v4987_v3  ;;  %v2859_v39 = vsel %vm8148_vm9, %v7147_v55, %v7130_v1  ;;  %v2902_v17 = vsel %vm8151_vm11, %v7181_v47, %v7081_v60  ;;  %vm8152_vm4 = vmmov %vm8151_vm11  ;;  %v4985_v60 = vld [vmem:[%s7708_s3 + $0x8] ss:$28 sps:$4 sm:$0xff]   ;;  %vm8159_vm2 = vcmask 637952   ;;  %v4993_v37 = vld [vmem:[%s7708_s3 + $0x78] ss:$28 sps:$4 sm:$0xff]   ;;  %vm8163_vm11 = vcmask 629760  }
 0x4ea   : > { %v7222_v27 = vpop.permute.xlu0 %2971  ;;  %v2901_v1 = vsel %vm8152_vm4, %v7203_v54, %v7181_v47  ;;  %vm8153_vm3 = vmmov %vm8152_vm4  ;;  %v4988_v47 = vld [vmem:[%s7708_s3 + $0x44] ss:$28 sps:$4 sm:$0xff]  }
 0x4eb   : > { %3441 = vperm.xlu1 %4932, %v3415_v59   ;;  %vm8154_vm8 = vmmov %vm8153_vm3 }
 0x4ec   : > { %3446 = vperm.xlu0 %4931, %v3416_v6   ;;  %3699 = vmatpush1.bf16.msra.mxu1 %v2741_v7  ;;  %vm8156_vm15 = vmmov %vm8155_vm14 }
 0x4ed   : > { %v2934_v34 = vpop.permute.xlu1 %2933  ;;  %3700 = vmatprep.subr.bf16.mxu1 %v2776_v13  ;;  %vm8160_vm9 = vmmov %vm8159_vm2 }
 0x4ee   : > { %v7235_v31 = vpop.permute.xlu0 %2975  ;;  %v2944_v48 = vsel %vm8155_vm14, %v2934_v34, %v7149_v10  ;;  %vm8164_vm4 = vmmov %vm8163_vm11 }
 0x4ef   : > { %3431 = vperm.xlu1 %4932, %v3413_v50  }
 0x4f0   : > { %3436 = vperm.xlu0 %4931, %v3414_v38   ;;  %3701 = vmatpush1.bf16.msra.mxu1 %v2775_v0 }
 0x4f1   : > { %v2932_v26 = vpop.permute.xlu1 %2931  ;;  %3702 = vmatprep.subr.bf16.mxu1 %v2778_v43  ;;  %v4999_v43 = vld [vmem:[%s7708_s3 + $0x14] ss:$28 sps:$4 sm:$0xff]  }
 0x4f2   : > { %v7249_v15 = vpop.permute.xlu0 %2973  ;;  %v2943_v11 = vsel %vm8156_vm15, %v2932_v26, %v2934_v34 }
 0x4f3   : > { %3451 = vperm.xlu1 %4932, %v3417_v29  }
 0x4f4   : > { %3456 = vperm.xlu0 %4931, %v3418_v21   ;;  %3703 = vmatpush1.bf16.msra.mxu1 %v2777_v56 }
 0x4f5   : > { %v2942_v19 = vpop.permute.xlu1 %2941  ;;  %3704 = vmatprep.subr.bf16.mxu1 %v2818_v32 }
 0x4f6   : > { %v2814_v9 = vpop.permute.xlu0 %2813 }
 0x4f7   : > { %v2820_v49 = vsel %vm8145_vm0, %v2814_v9, %v7112_v22  ;;  %v2819_v53 = vsel %vm8146_vm6, %v7023_v63, %v2814_v9  ;;  %vm8157_vm0 = vmmov %vm8155_vm14  ;;  %vm8167_vm14 = vcmask 621568  }
 0x4f8   : > { %3705 = vmatpush1.bf16.msra.mxu1 %v2817_v14  ;;  %vm8158_vm6 = vmmov %vm8157_vm0 }
 0x4f9   : > { %v2970_v12 = vpop.permute.xlu1 %2969  ;;  %3706 = vmatprep.subr.bf16.mxu1 %v2820_v49  ;;  %vm8168_vm15 = vmmov %vm8167_vm14 }
 0x4fa   : > { %v3014_v58 = vpop.permute.xlu0 %3013  ;;  %v2980_v28 = vsel %vm8159_vm2, %v2970_v12, %v7222_v27 }
 0x4fc   : > { %3707 = vmatpush1.bf16.msra.mxu1 %v2819_v53 }
 0x4fd   : > { %v2968_v40 = vpop.permute.xlu1 %2967  ;;  %3708 = vmatprep.subr.bf16.mxu1 %v2860_v51 }
 0x4fe   : > { %v2856_v16 = vpop.permute.xlu0 %2855  ;;  %v2979_v3 = vsel %vm8160_vm9, %v2968_v40, %v2970_v12 }
 0x4ff   : > { %v2862_v57 = vsel %vm8149_vm13, %v2856_v16, %v7165_v20  ;;  %v2861_v63 = vsel %vm8150_vm1, %v7067_v46, %v2856_v16  ;;  %vm8161_vm13 = vmmov %vm8159_vm2 }
 0x500   : > { %3709 = vmatpush1.bf16.msra.mxu1 %v2859_v39  ;;  %vm8162_vm1 = vmmov %vm8159_vm2  ;;  %vm8171_vm2 = vcmask 523264  }
 0x501   : > { %v2978_v22 = vpop.permute.xlu1 %2977  ;;  %3710 = vmatprep.subr.bf16.mxu1 %v2862_v57  ;;  %v2981_v4 = vsel %vm8162_vm1, %v7249_v15, %v7235_v31  ;;  %vm8172_vm9 = vmmov %vm8171_vm2 }
 0x502   : > { %v3016_v25 = vpop.permute.xlu0 %3015  ;;  %vm8174_vm1 = vmmov %vm8171_vm2 }
 0x504   : > { %3711 = vmatpush1.bf16.msra.mxu1 %v2861_v63 }
 0x505   : > { %v3012_v8 = vpop.permute.xlu1 %3011  ;;  %3712 = vmatprep.subr.bf16.mxu1 %v2902_v17 }
 0x506   : > { %v2898_v44 = vpop.permute.xlu0 %2897  ;;  %v3022_v59 = vsel %vm8163_vm11, %v3012_v8, %v3014_v58  ;;  %vm8175_vm11 = vcmask 515072  }
 0x507   : > { %v2904_v55 = vsel %vm8153_vm3, %v2898_v44, %v2900_v45  ;;  %v2903_v46 = vsel %vm8154_vm8, %v7114_v30, %v2898_v44  ;;  %v4994_v45 = vld [vmem:[%s7708_s3 + $0xb4] ss:$28 sps:$4 sm:$0xff]   ;;  %vm8165_vm3 = vmmov %vm8164_vm4 }
 0x508   : > { %3713 = vmatpush1.bf16.msra.mxu1 %v2901_v1  ;;  %vm8166_vm8 = vmmov %vm8165_vm3 }
 0x509   : > { %v3010_v20 = vpop.permute.xlu1 %3009  ;;  %3714 = vmatprep.subr.bf16.mxu1 %v2904_v55 }
 0x50a   : > { %v3056_v42 = vpop.permute.xlu0 %3055  ;;  %v3021_v7 = vsel %vm8164_vm4, %v3010_v20, %v3012_v8  ;;  %vm8176_vm4 = vmmov %vm8175_vm11 }
 0x50c   : > { %3715 = vmatpush1.bf16.msra.mxu1 %v2903_v46 }
 0x50d   : > { %v3020_v23 = vpop.permute.xlu1 %3019  ;;  %3757 = vmatprep.subr.bf16.mxu1 %v2944_v48 }
 0x50e   : > { %v2940_v35 = vpop.permute.xlu0 %2939 }
 0x50f   : > { %3717 = vmatmul.mubr.bf16.vlgmr.msra.gmra.mrb[16].mxu1 %v4985_v60  ;;  %v2946_v30 = vsel %vm8157_vm0, %v2940_v35, %v2942_v19  ;;  %v2945_v10 = vsel %vm8158_vm6, %v7183_v62, %v2940_v35  ;;  %v2982_v62 = vsel %vm8161_vm13, %v7235_v31, %v2978_v22  ;;  %v4996_v31 = vld [vmem:[%s7708_s3 + $0xb0] ss:$28 sps:$4 sm:$0xff]   ;;  %vm8169_vm0 = vmmov %vm8167_vm14 }
 0x510   : > { %3758 = vmatpush1.bf16.msra.mxu1 %v2943_v11  ;;  %3726 = vmatprep.mubr.bf16.mxu1 %v4988_v47  ;;  %vm8170_vm6 = vmmov %vm8169_vm0 }
 0x511   : > { %v3054_v36 = vpop.permute.xlu1 %3053  ;;  %3759 = vmatprep.subr.bf16.mxu1 %v2946_v30  ;;  %vm8173_vm13 = vmmov %vm8171_vm2 }
 0x512   : > { %v3058_v18 = vpop.permute.xlu0 %3057  ;;  %v3064_v0 = vsel %vm8167_vm14, %v3054_v36, %v3056_v42 }
 0x514   : > { %3760 = vmatpush1.bf16.msra.mxu1 %v2945_v10 }
 0x515   : > { %v3052_v54 = vpop.permute.xlu1 %3051  ;;  %3761 = vmatprep.subr.bf16.mxu1 %v2980_v28  ;;  %v5000_v28 = vld [vmem:[%s7708_s3 + $0x4c] ss:$28 sps:$4 sm:$0xff]  }
 0x516   : > { %v3098_v41 = vpop.permute.xlu0 %3097  ;;  %v3063_v21 = vsel %vm8168_vm15, %v3052_v54, %v3054_v36 }
 0x517   : > { %3727 = vmatmul.mubr.bf16.gmra.mrb[20].mxu1 %v4990_v61  ;;  %v4997_v61 = vld [vmem:[%s7708_s3 + $0x10] ss:$28 sps:$4 sm:$0xff]  }
 0x518   : > { %3762 = vmatpush1.bf16.msra.mxu1 %v2979_v3  ;;  %3736 = vmatprep.mubr.bf16.mxu1 %v4991_v33 }
 0x519   : > { %v3062_v52 = vpop.permute.xlu1 %3061  ;;  %3763 = vmatprep.subr.bf16.mxu1 %v2982_v62 }
 0x51a   : > { %v3100_v5 = vpop.permute.xlu0 %3099 }
 0x51c   : > { %3764 = vmatpush1.bf16.msra.mxu1 %v2981_v4  ;;  %v5003_v4 = vld [vmem:[%s7708_s3 + $0x84] ss:$28 sps:$4 sm:$0xff]  }
 0x51d   : > { %v3096_v6 = vpop.permute.xlu1 %3095  ;;  %3765 = vmatprep.subr.bf16.mxu1 %v3022_v59 }
 0x51e   : > { %v3018_v27 = vpop.permute.xlu0 %3017  ;;  %v3106_v9 = vsel %vm8171_vm2, %v3096_v6, %v3098_v41 }
 0x51f   : > { %v3024_v13 = vsel %vm8165_vm3, %v3018_v27, %v3020_v23  ;;  %3737 = vmatmul.mubr.bf16.gmra.mrb[24].mxu1 %v4993_v37  ;;  %v3023_v38 = vsel %vm8166_vm8, %v3016_v25, %v3018_v27  ;;  %vm8177_vm3 = vmmov %vm8176_vm4  ;;  %v5005_v27 = vld [vmem:[%s7708_s3 + $0x80] ss:$28 sps:$4 sm:$0xff]  }
 0x520   : > { %3766 = vmatpush1.bf16.msra.mxu1 %v3021_v7  ;;  %3746 = vmatprep.mubr.bf16.mxu1 %v4994_v45  ;;  %vm8178_vm8 = vmmov %vm8177_vm3  ;;  %v5006_v7 = vld [vmem:[%s7708_s3 + $0xbc] ss:$28 sps:$4 sm:$0xff]  }
 0x521   : > { %v3094_v50 = vpop.permute.xlu1 %3093  ;;  %3767 = vmatprep.subr.bf16.mxu1 %v3024_v13  ;;  %v5008_v13 = vld [vmem:[%s7708_s3 + $0xb8] ss:$28 sps:$4 sm:$0xff]  }
 0x522   : > { %v3140_v34 = vpop.permute.xlu0 %3139  ;;  %v3105_v12 = vsel %vm8172_vm9, %v3094_v50, %v3096_v6  ;;  %v8179_v50 = vmov 0  }
 0x524   : > { %3768 = vmatpush1.bf16.msra.mxu1 %v3023_v38  ;;  %v5010_v38 = vld [vmem:[%s7708_s3 + $0x50] ss:$28 sps:$4 sm:$0xff]  }
 0x525   : > { %v3104_v29 = vpop.permute.xlu1 %3103  ;;  %3769 = vmatprep.subr.bf16.mxu1 %v3064_v0  ;;  %v5012_v0 = vld [vmem:[%s7708_s3 + $0xc0] ss:$28 sps:$4 sm:$0xff]  }
 0x526   : > { %v3060_v26 = vpop.permute.xlu0 %3059 }
 0x527   : > { %v3066_v15 = vsel %vm8169_vm0, %v3060_v26, %v3062_v52  ;;  %3747 = vmatmul.mubr.bf16.gmra.mrb[28].mxu1 %v4996_v31  ;;  %v3065_v19 = vsel %vm8170_vm6, %v3058_v18, %v3060_v26  ;;  %v5011_v31 = vld [vmem:[%s7708_s3 + $0x88] ss:$28 sps:$4 sm:$0xff]  }
 0x528   : > { %3770 = vmatpush1.bf16.msra.mxu1 %v3063_v21  ;;  %3789 = vmatprep.mubr.bf16.mxu1 %v4999_v43 }
 0x529   : > { %v3138_v56 = vpop.permute.xlu1 %3137  ;;  %3771 = vmatprep.subr.bf16.mxu1 %v3066_v15 }
 0x52a   : > { %v3142_v32 = vpop.permute.xlu0 %3141  ;;  %v3148_v16 = vsel %vm8175_vm11, %v3138_v56, %v3140_v34  ;;  %v5009_v34 = vld [vmem:[%s7708_s3 + $0x18] ss:$28 sps:$4 sm:$0xff]  }
 0x52c   : > { %3772 = vmatpush1.bf16.msra.mxu1 %v3065_v19 }
 0x52d   : > { %v3136_v14 = vpop.permute.xlu1 %3135  ;;  %3773 = vmatprep.subr.bf16.mxu1 %v3106_v9 }
 0x52e   : > { %v3102_v49 = vpop.permute.xlu0 %3101  ;;  %v3147_v22 = vsel %vm8176_vm4, %v3136_v14, %v3138_v56 }
 0x52f   : > { %v3108_v58 = vsel %vm8173_vm13, %v3102_v49, %v3104_v29  ;;  %v3107_v40 = vsel %vm8174_vm1, %v3100_v5, %v3102_v49  ;;  %v5002_v5 = vld [vmem:[%s7708_s3 + $0x48] ss:$28 sps:$4 sm:$0xff]  }
 0x530   : > { %3774 = vmatpush1.bf16.msra.mxu1 %v3105_v12 }
 0x531   : > { %v3146_v53 = vpop.permute.xlu1 %3145  ;;  %3775 = vmatprep.subr.bf16.mxu1 %v3108_v58 }
 0x532   : > { %v3176_v51 = vpop.permute.xlu0 %3175 }
 0x534   : > { %3776 = vmatpush1.bf16.msra.mxu1 %v3107_v40 }
 0x535   : > { %v3174_v39 = vpop.permute.xlu1 %3173  ;;  %3777 = vmatprep.subr.bf16.mxu1 %v3148_v16 }
 0x536   : > { %v3144_v57 = vpop.permute.xlu0 %3143  ;;  %v3184_v44 = vsel %vm1493_vm10, %v3174_v39, %v3176_v51 }
 0x537   : > { %v3150_v25 = vsel %vm8177_vm3, %v3144_v57, %v3146_v53  ;;  %v3149_v8 = vsel %vm8178_vm8, %v3142_v32, %v3144_v57 }
 0x538   : > { %3778 = vmatpush1.bf16.msra.mxu1 %v3147_v22 }
 0x539   : > { %v3172_v63 = vpop.permute.xlu1 %3171  ;;  %3779 = vmatprep.subr.bf16.mxu1 %v3150_v25 }
 0x53a   : > { %v3180_v17 = vpop.permute.xlu0 %3179  ;;  %v3183_v20 = vsel %vm1493_vm10, %v3172_v63, %v3174_v39 }
 0x53c   : > { %3780 = vmatpush1.bf16.msra.mxu1 %v3149_v8 }
 0x53d   : > { %v3182_v1 = vpop.permute.xlu1 %3181  ;;  %3781 = vmatprep.subr.bf16.mxu1 %v3184_v44 }
 0x53e   : > { %v3178_v55 = vpop.permute.xlu0 %3177  ;;  %v3186_v42 = vsel %vm1493_vm10, %v3180_v17, %v3182_v1 }
 0x53f   : > { %v3185_v48 = vsel %vm1493_vm10, %v3178_v55, %v3180_v17 }
 0x540   : > { %3782 = vmatpush1.bf16.msra.mxu1 %v3183_v20 }
 0x541   : > { %v3216_v46 = vpop.permute.xlu1 %3215  ;;  %3783 = vmatprep.subr.bf16.mxu1 %v3186_v42 }
 0x542   : > { %v3218_v60 = vpop.permute.xlu0 %3217 }
 0x543   : > { %v3226_v47 = vsel %vm1545_vm7, %v3216_v46, %v3218_v60 }
 0x544   : > { %3784 = vmatpush1.bf16.msra.mxu1 %v3185_v48 }
 0x545   : > { %v3214_v23 = vpop.permute.xlu1 %3213  ;;  %3785 = vmatprep.subr.bf16.mxu1 %v3226_v47 }
 0x546   : > { %v3225_v35 = vsel %vm1545_vm7, %v3214_v23, %v3216_v46  ;;  %v3222_v11 = vpop.permute.xlu0 %3221 }
 0x548   : > { %3786 = vmatpush1.bf16.msra.mxu1 %v3225_v35 }
 0x549   : > { %v3224_v30 = vpop.permute.xlu1 %3223 }
 0x54a   : > { %v3220_v36 = vpop.permute.xlu0 %3219  ;;  %v3228_v18 = vsel %vm1545_vm7, %v3222_v11, %v3224_v30 }
 0x54b   : > { %v3227_v10 = vsel %vm1545_vm7, %v3220_v36, %v3222_v11  ;;  %3787 = vmatprep.subr.bf16.mxu1 %v3228_v18  ;;  %vm8189_vm7 = vcmask 277504  }
 0x54c   : > { %3788 = vmatpush1.bf16.msra.mxu1 %v3227_v10  ;;  %vm8190_vm10 = vmmov %vm8189_vm7 }
 0x54d   : > { %v3258_v33 = vpop.permute.xlu1 %3257  ;;  %vm8192_vm15 = vmmov %vm8189_vm7 }
 0x54e   : > { %v3260_v54 = vpop.permute.xlu0 %3259  ;;  %vm8193_vm0 = vmmov %vm8189_vm7 }
 0x54f   : > { %3790 = vmatmul.mubr.bf16.vlgmr.msra.gmra.mrb[16].mxu1 %v4997_v61  ;;  %v3268_v41 = vsel %vm1597_vm5, %v3258_v33, %v3260_v54  ;;  %v8180_v54 = vld [vmem:[#allocation38_spill] sm:$0xff] }
 0x550   : > { %3830 = vmatprep.subr.bf16.mxu1 %v3268_v41  ;;  %3799 = vmatprep.mubr.bf16.mxu1 %v5000_v28 }
 0x551   : > { %v3256_v3 = vpop.permute.xlu1 %3255 }
 0x552   : > { %v3267_v62 = vsel %vm1597_vm5, %v3256_v3, %v3258_v33  ;;  %v3264_v52 = vpop.permute.xlu0 %3263  ;;  %v8181_v3 = vld [vmem:[#allocation40_spill] sm:$0xff] }
 0x553   : > { %3831 = vmatpush1.bf16.msra.mxu1 %v3267_v62 }
 0x555   : > { %v3266_v37 = vpop.permute.xlu1 %3265 }
 0x556   : > { %v3262_v59 = vpop.permute.xlu0 %3261  ;;  %v3270_v45 = vsel %vm1597_vm5, %v3264_v52, %v3266_v37 }
 0x557   : > { %v3269_v6 = vsel %vm1597_vm5, %v3262_v59, %v3264_v52  ;;  %3800 = vmatmul.mubr.bf16.gmra.mrb[20].mxu1 %v5002_v5  ;;  %3832 = vmatprep.subr.bf16.mxu1 %v3270_v45  ;;  %v8182_v59 = vld [vmem:[#allocation39_spill] sm:$0xff]  ;;  %vm8188_vm5 = vcmask 1047824  }
 0x558   : > { %3833 = vmatpush1.bf16.msra.mxu1 %v3269_v6  ;;  %3809 = vmatprep.mubr.bf16.mxu1 %v5003_v4  ;;  %v8183_v6 = vld [vmem:[#allocation41_spill] sm:$0xff]  ;;  %vm8191_vm14 = vmmov %vm8188_vm5 }
 0x55f   : > { %3810 = vmatmul.mubr.bf16.gmra.mrb[24].mxu1 %v5005_v27 }
 0x560   : > { %3819 = vmatprep.mubr.bf16.mxu1 %v5006_v7 }
 0x566   : > { %v3422_v15 = vpop.permute.xlu1 %3421 }
 0x567   : > { %3820 = vmatmul.mubr.bf16.gmra.mrb[28].mxu1 %v5008_v13  ;;  %v3427_v56 = vpop.permute.xlu0 %3426 }
 0x568   : > { %3862 = vmatprep.mubr.bf16.mxu1 %v8179_v50 }
 0x56a   : > { %v3442_v49 = vpop.permute.xlu1 %3441 }
 0x56b   : > { %v3447_v12 = vpop.permute.xlu0 %3446 }
 0x56e   : > { %v3432_v57 = vpop.permute.xlu1 %3431 }
 0x56f   : > { %4723 = vmatmul.mubr.msk.bf16.vlgmr.msra.gmra.mrb[16].mxu1 %vm886_vm12, %v5009_v34  ;;  %v3437_v55 = vpop.permute.xlu0 %3436 }
 0x570   : > { %3872 = vmatprep.mubr.bf16.mxu1 %v8179_v50 }
 0x572   : > { %v3452_v18 = vpop.permute.xlu1 %3451 }
 0x573   : > { %v3457_v4 = vpop.permute.xlu0 %3456 }
 0x577   : > { %4724 = vmatmul.mubr.msk.bf16.gmra.mrb[20].mxu1 %vm886_vm12, %v5010_v38 }
 0x578   : > { %3882 = vmatprep.mubr.bf16.mxu1 %v8179_v50 }
 0x57f   : > { %4725 = vmatmul.mubr.msk.bf16.gmra.mrb[24].mxu1 %vm886_vm12, %v5011_v31 }
 0x580   : > { %3892 = vmatprep.mubr.bf16.mxu1 %v8179_v50 }
 0x587   : > { %4726 = vmatmul.mubr.msk.bf16.gmra.mrb[28].mxu1 %vm886_vm12, %v5012_v0 }
 0x588   : > { %4490 = vmatprep.mubr.bf16.mxu1 %v8179_v50 }
 0x642   : > { %v3864_v43 = vpop.f32.mrb[16].mxu1 }
 0x643   : > { %v3866_v29 = vpop.f32.mrb[17].mxu1  ;;  %v4775_v58 = vadd.f32 %v3864_v43, %v3422_v15 }
 0x644   : > { %v3868_v26 = vpop.f32.mrb[18].mxu1  ;;  %v4776_v53 = vadd.f32 %v3866_v29, %v3422_v15 }
 0x645   : > { %v3870_v21 = vpop.f32.mrb[19].mxu1  ;;  %v4777_v40 = vadd.f32 %v3868_v26, %v3427_v56  ;;  %v3903_v17 = vmax.f32 %v4775_v58, 0.0 }
 0x646   : > { %v4778_v22 = vadd.f32 %v3870_v21, %v3427_v56  ;;  %v3904_v20 = vmax.f32 %v4776_v53, 0.0  ;;  %v8184_v53 = vld [vmem:[#allocation42_spill] sm:$0xff] }
 0x647   : > { %v3905_v60 = vmax.f32 %v4777_v40, 0.0  ;;  %v8185_v40 = vld [vmem:[#allocation44_spill] sm:$0xff] }
 0x648   : > { %v3906_v23 = vmax.f32 %v4778_v22, 0.0  ;;  %v8187_v22 = vld [vmem:[#allocation45_spill] sm:$0xff] }
 0x64a   : > { %v3874_v32 = vpop.f32.mrb[20].mxu1 }
 0x64b   : > { %v3876_v19 = vpop.f32.mrb[21].mxu1  ;;  %v4779_v30 = vadd.f32 %v3874_v32, %v3432_v57 }
 0x64c   : > { %v3878_v9 = vpop.f32.mrb[22].mxu1  ;;  %v4780_v10 = vadd.f32 %v3876_v19, %v3432_v57 }
 0x64d   : > { %v3880_v14 = vpop.f32.mrb[23].mxu1  ;;  %v4781_v33 = vadd.f32 %v3878_v9, %v3437_v55  ;;  %v3907_v34 = vmax.f32 %v4779_v30, 0.0 }
 0x64e   : > { %v4782_v37 = vadd.f32 %v3880_v14, %v3437_v55  ;;  %v3908_v29 = vmax.f32 %v4780_v10, 0.0  ;;  %v8202_v10 = vld [vmem:[#allocation20_spill] sm:$0xff] }
 0x64f   : > { %v3909_v56 = vmax.f32 %v4781_v33, 0.0  ;;  %vm8203_vm1 = vcmp.ne.s16.totalorder %v8202_v10, 0 }
 0x650   : > { %v3910_v9 = vmax.f32 %v4782_v37, 0.0 }
 0x652   : > { %v3884_v51 = vpop.f32.mrb[24].mxu1 }
 0x653   : > { %v4783_v16 = vadd.f32 %v3884_v51, %v3442_v49  ;;  %v3886_v39 = vpop.f32.mrb[25].mxu1 }
 0x654   : > { %v4784_v25 = vadd.f32 %v3886_v39, %v3442_v49  ;;  %v3888_v63 = vpop.f32.mrb[26].mxu1  ;;  %v8186_v39 = vld [vmem:[#allocation43_spill] sm:$0xff] }
 0x655   : > { %v3911_v8 = vmax.f32 %v4783_v16, 0.0  ;;  %v4785_v44 = vadd.f32 %v3888_v63, %v3447_v12  ;;  %v3890_v1 = vpop.f32.mrb[27].mxu1 }
 0x656   : > { %v3912_v42 = vmax.f32 %v4784_v25, 0.0  ;;  %v4786_v46 = vadd.f32 %v3890_v1, %v3447_v12 }
 0x657   : > { %v3919_v48 = vmul.f32 %v3911_v8, %v3903_v17  ;;  %v3913_v47 = vmax.f32 %v4785_v44, 0.0 }
 0x658   : > { %v3920_v35 = vmul.f32 %v3912_v42, %v3904_v20  ;;  %v3914_v11 = vmax.f32 %v4786_v46, 0.0 }
 0x659   : > { %v3921_v36 = vmul.f32 %v3913_v47, %v3905_v60  ;;  %v3927_v41 = vadd.f32 %v3919_v48, %v8180_v54  ;;  %v8194_v48 = vld [vmem:[#allocation4_spill] sm:$0xff] }
 0x65a   : > { %v3922_v61 = vmul.f32 %v3914_v11, %v3906_v23  ;;  %v3894_v28 = vpop.f32.mrb[28].mxu1  ;;  %v3928_v45 = vadd.f32 %v3920_v35, %v8182_v59  ;;  %vm8195_vm6 = vcmp.ne.s16.totalorder %v8194_v48, 0  ;;  %v8196_v23 = vld [vmem:[#allocation5_spill] sm:$0xff]  ;;  %v8198_v11 = vld [vmem:[#allocation12_spill] sm:$0xff] }
 0x65b   : > { %v3929_v62 = vadd.f32 %v3921_v36, %v8181_v3  ;;  %v4787_v52 = vadd.f32 %v3894_v28, %v3452_v18  ;;  %v3896_v5 = vpop.f32.mrb[29].mxu1  ;;  %vm8197_vm2 = vcmp.ne.s16.totalorder %v8196_v23, 0  ;;  %vm8199_vm9 = vcmp.ne.s16.totalorder %v8198_v11, 0  ;;  %v8200_v36 = vld [vmem:[#allocation11_spill] sm:$0xff]  ;;  %v8204_v28 = vld [vmem:[#allocation18_spill] sm:$0xff]  ;;  %vm8206_vm4 = vmmov %vm8195_vm6 }
 0x65c   : > { %v3930_v27 = vadd.f32 %v3922_v61, %v8183_v6  ;;  %v4788_v7 = vadd.f32 %v3896_v5, %v3452_v18  ;;  %v3898_v13 = vpop.f32.mrb[30].mxu1  ;;  %vm8201_vm13 = vcmp.ne.s16.totalorder %v8200_v36, 0  ;;  %vm8205_vm11 = vcmp.ne.s16.totalorder %v8204_v28, 0  ;;  %v8207_v3 = vld [vmem:[#allocation10_spill] sm:$0xff]  ;;  %vm8209_vm8 = vmmov %vm8199_vm9  ;;  %v8210_v5 = vld [vmem:[#allocation13_spill] sm:$0xff] }
 0x65d   : > { %v3935_v38 = vpack.c.bf16 %v3929_v62, %v3927_v41  ;;  %v3915_v31 = vmax.f32 %v4787_v52, 0.0  ;;  %v4789_v0 = vadd.f32 %v3898_v13, %v3457_v4  ;;  %v3900_v43 = vpop.f32.mrb[31].mxu1  ;;  %vm8208_vm3 = vcmp.ne.s16.totalorder %v8207_v3, 0  ;;  %v8213_v59 = vld [vmem:[#allocation24_spill] sm:$0xff]  ;;  %v4546_v23 = vld [vmem:[%s7712_s7 + $0x18] sm:$0xff] }
 0x65e   : > { %v3936_v26 = vpack.c.bf16 %v3930_v27, %v3928_v45  ;;  %v3916_v21 = vmax.f32 %v4788_v7, 0.0  ;;  %v4790_v15 = vadd.f32 %v3900_v43, %v3457_v4  ;;  %v4545_v48 = vld [vmem:[%s7712_s7 + $0x10] sm:$0xff] }
 0x65f   : > { %v3923_v32 = vmul.f32 %v3915_v31, %v3907_v34  ;;  %v3917_v19 = vmax.f32 %v4789_v0, 0.0  ;;  %3943 = vrot.lane.b32.xlu1 %v3935_v38, %s5038_s11  ;;  %v8218_v34 = vld [vmem:[#allocation21_spill] sm:$0xff]  ;;  %v8221_v0 = vld [vmem:[#allocation22_spill] sm:$0xff] }
 0x660   : > { %v3924_v14 = vmul.f32 %v3916_v21, %v3908_v29  ;;  %v3918_v49 = vmax.f32 %v4790_v15, 0.0  ;;  %3945 = vrot.lane.b32.xlu0 %v3936_v26, %s5038_s11  ;;  %v8223_v29 = vld [vmem:[#allocation25_spill] sm:$0xff] }
 0x661   : > { %v3925_v12 = vmul.f32 %v3917_v19, %v3909_v56  ;;  %v3931_v51 = vadd.f32 %v3923_v32, %v8184_v53  ;;  %v8227_v56 = vld [vmem:[#allocation27_spill] sm:$0xff] }
 0x662   : > { %v3926_v58 = vmul.f32 %v3918_v49, %v3910_v9  ;;  %v3932_v57 = vadd.f32 %v3924_v14, %v8186_v39  ;;  %v8232_v49 = vld [vmem:[#allocation26_spill] sm:$0xff] }
 0x663   : > { %v3933_v16 = vadd.f32 %v3925_v12, %v8185_v40 }
 0x664   : > { %v3934_v25 = vadd.f32 %v3926_v58, %v8187_v22 }
 0x665   : > { %v3937_v63 = vpack.c.bf16 %v3933_v16, %v3931_v51  ;;  %v8236_v51 = vld [vmem:[#allocation29_spill] sm:$0xff] }
 0x666   : > { %v3938_v17 = vpack.c.bf16 %v3934_v25, %v3932_v57  ;;  %v8240_v57 = vld [vmem:[#allocation28_spill] sm:$0xff] }
 0x667   : > { %3947 = vrot.lane.b32.xlu1 %v3937_v63, %s5038_s11  ;;  %v5015_v63 = vld [vmem:[%s7710_s5 + $0x4] ss:$12 sps:$4 sm:$0xff]  }
 0x668   : > { %3949 = vrot.lane.b32.xlu0 %v3938_v17, %s5038_s11  ;;  %4437 = vmatprep.mubr.bf16.mxu0 %v5015_v63 }
 0x6d1   : > { %v3944_v8 = vpop.permute.xlu1 %3943 }
 0x6d2   : > { %3959 = vst.msk [vmem:[#allocation3] sm:$0xff] %vm8188_vm5, %v3944_v8  ;;  %v3946_v44 = vpop.permute.xlu0 %3945  ;;  %vm8211_vm5 = vcmp.ne.s16.totalorder %v8210_v5, 0 }
 0x6d3   : > { %v7405_v1 = vsel %vm8189_vm7, %v3944_v8, %v3946_v44  ;;  %3961 = vst.msk [vmem:[#allocation3 + $0x10] sm:$0xff] %vm8190_vm10, %v3946_v44  ;;  %vm8212_vm7 = vmmov %vm8203_vm1  ;;  %vm8214_vm10 = vcmp.ne.s16.totalorder %v8213_v59, 0  ;;  %v4512_v44 = vld [vmem:[%s7711_s6 + $0x8] sm:$0xff] }
 0x6d4   : > { %3960 = vst [vmem:[#allocation3 + $0x8] sm:$0xff] %v7405_v1  ;;  %v3972_v62 = vsel %vm8208_vm3, %v7405_v1, 0  ;;  %v4050_v4 = vsel %vm8211_vm5, %v7405_v1, 0  ;;  %v4092_v45 = vsel %vm8214_vm10, %v7405_v1, 0 }
 0x6d9   : > { %v3948_v55 = vpop.permute.xlu1 %3947  ;;  %v7409_v20 = vld [vmem:[#allocation3] sm:$0xff] }
 0x6da   : > { %3962 = vst.msk [vmem:[#allocation3 + $0x18] sm:$0xff] %vm8191_vm14, %v3948_v55  ;;  %4019 = vrot.lane.b32.xlu1 %v7409_v20, %s5052_s25  ;;  %v3950_v42 = vpop.permute.xlu0 %3949  ;;  %v7414_v46 = vld [vmem:[#allocation3 + $0x10] sm:$0xff]  ;;  %v3971_v47 = vsel %vm8195_vm6, %v7409_v20, 0  ;;  %v4049_v30 = vsel %vm8199_vm9, %v7409_v20, 0  ;;  %v4091_v61 = vsel %vm8203_vm1, %v7409_v20, 0  ;;  %vm8215_vm14 = vmmov %vm8197_vm2  ;;  %vm8219_vm6 = vcmp.ne.s16.totalorder %v8218_v34, 0 }
 0x6db   : > { %v7417_v60 = vsel %vm8192_vm15, %v3948_v55, %v3950_v42  ;;  %3964 = vst.msk [vmem:[#allocation3 + $0x28] sm:$0xff] %vm8193_vm0, %v3950_v42  ;;  %4023 = vrot.lane.b32.xlu0 %v7414_v46, %s5052_s25  ;;  %v3973_v35 = vsel %vm8197_vm2, %v7414_v46, 0  ;;  %v4051_v18 = vsel %vm8201_vm13, %v7414_v46, 0  ;;  %v4093_v33 = vsel %vm8205_vm11, %v7414_v46, 0  ;;  %vm8216_vm15 = vmmov %vm8208_vm3  ;;  %v4514_v55 = vld [vmem:[%s7711_s6 + $0x18] sm:$0xff] }
 0x6dc   : > { %3963 = vst [vmem:[#allocation3 + $0x20] sm:$0xff] %v7417_v60  ;;  %v3975_v7 = vsel %vm8216_vm15, %v7417_v60, 0  ;;  %vm8217_vm0 = vmmov %vm8201_vm13  ;;  %v4171_v38 = vsel %vm8219_vm6, %v7414_v46, 0  ;;  %vm8222_vm9 = vcmp.ne.s16.totalorder %v8221_v0, 0  ;;  %vm8224_vm13 = vcmp.ne.s16.totalorder %v8223_v29, 0 }
 0x6dd   : > { %vm8220_vm2 = vmmov %vm8205_vm11  ;;  %v4170_v26 = vsel %vm8224_vm13, %v7405_v1, 0  ;;  %vm8237_vm15 = vcmp.ne.s16.totalorder %v8236_v51, 0 }
 0x6de   : > { %4139 = vrot.lane.b32.xlu1 %v7409_v20, %s8001_s24  ;;  %vm8225_vm1 = vmmov %vm8211_vm5  ;;  %vm8231_vm5 = vcmp.ne.s16.totalorder %v5842_v2, 0  ;;  %v4291_v40 = vsel %vm8237_vm15, %v7414_v46, 0 }
 0x6df   : > { %4143 = vrot.lane.b32.xlu0 %v7414_v46, %s8001_s24  ;;  %v4053_v21 = vsel %vm8225_vm1, %v7417_v60, 0  ;;  %vm8226_vm11 = vmmov %vm8222_vm9  ;;  %v4212_v14 = vsel %vm8231_vm5, %v7405_v1, 0 }
 0x6e0   : > { %v4169_v15 = vsel %vm8226_vm11, %v7409_v20, 0  ;;  %vm8229_vm3 = vmmov %vm8219_vm6  ;;  %vm8239_vm6 = vcmp.ne.s16.totalorder %v5966_v24, 0  ;;  %v4511_v24 = vld [vmem:[%s7711_s6] sm:$0xff] }
 0x6e1   : > { %v7453_v54 = vld [vmem:[#allocation3 + $0x18] sm:$0xff]  ;;  %v4290_v39 = vsel %vm8239_vm6, %v7405_v1, 0  ;;  %vm8244_vm1 = vmmov %vm8237_vm15 }
 0x6e2   : > { %3983 = vrot.lane.b32.xlu1 %v3971_v47, %s5057_s13  ;;  %v3974_v41 = vsel %vm8206_vm4, %v7453_v54, 0  ;;  %v4052_v52 = vsel %vm8209_vm8, %v7453_v54, 0  ;;  %v4094_v37 = vsel %vm8212_vm7, %v7453_v54, 0  ;;  %v4012_v6 = vld [vmem:[#allocation3 + $0x28] sm:$0xff]  ;;  %v4172_v43 = vsel %vm8222_vm9, %v7453_v54, 0  ;;  %vm8230_vm8 = vmmov %vm8214_vm10 }
 0x6e3   : > { %3987 = vrot.lane.b32.xlu0 %v3973_v35, %s5057_s13  ;;  %v3976_v27 = vsel %vm8215_vm14, %v4012_v6, 0  ;;  %v4054_v13 = vsel %vm8217_vm0, %v4012_v6, 0  ;;  %v4096_v31 = vsel %vm8220_vm2, %v4012_v6, 0  ;;  %vm8228_vm4 = vcmp.ne.s16.totalorder %v8227_v56, 0  ;;  %vm8238_vm0 = vmmov %vm8224_vm13 }
 0x6e4   : > { %v4213_v32 = vsel %vm8228_vm4, %v7414_v46, 0  ;;  %v4174_v19 = vsel %vm8229_vm3, %v4012_v6, 0  ;;  %v4095_v9 = vsel %vm8230_vm8, %v7417_v60, 0  ;;  %vm8233_vm7 = vcmp.ne.s16.totalorder %v8232_v49, 0  ;;  %vm8235_vm14 = vmmov %vm8228_vm4 }
 0x6e5   : > { %v4214_v12 = vsel %vm8233_vm7, %v7453_v54, 0  ;;  %vm8234_vm10 = vmmov %vm8233_vm7  ;;  %v4216_v53 = vsel %vm8235_vm14, %v4012_v6, 0  ;;  %v4173_v16 = vsel %vm8238_vm0, %v7417_v60, 0  ;;  %vm8241_vm2 = vcmp.ne.s16.totalorder %v8240_v57, 0 }
 0x6e6   : > { %4061 = vrot.lane.b32.xlu1 %v4049_v30, %s5058_s14  ;;  %v4211_v58 = vsel %vm8234_vm10, %v7409_v20, 0  ;;  %v4289_v22 = vsel %vm8241_vm2, %v7409_v20, 0  ;;  %vm8242_vm9 = vmmov %vm8231_vm5  ;;  %v4294_v2 = vsel %vm8244_vm1, %v4012_v6, 0  ;;  %vm8246_vm4 = vcmask 908288  }
 0x6e7   : > { %4065 = vrot.lane.b32.xlu0 %v4051_v18, %s5058_s14  ;;  %v4215_v25 = vsel %vm8242_vm9, %v7417_v60, 0  ;;  %vm8243_vm13 = vmmov %vm8239_vm6  ;;  %vm8250_vm7 = vcmask 900096   ;;  %vm8254_vm0 = vcmask 891904  }
 0x6e8   : > { %v4293_v17 = vsel %vm8243_vm13, %v7417_v60, 0  ;;  %vm8245_vm11 = vmmov %vm8241_vm2  ;;  %vm8258_vm13 = vcmask 777216  }
 0x6e9   : > { %v4292_v8 = vsel %vm8245_vm11, %v7453_v54, 0  ;;  %vm8247_vm3 = vmmov %vm8246_vm4 }
 0x6ea   : > { %4103 = vrot.lane.b32.xlu1 %v4091_v61, %s7971_s15  ;;  %vm8248_vm8 = vmmov %vm8247_vm3 }
 0x6eb   : > { %4107 = vrot.lane.b32.xlu0 %v4093_v33, %s7971_s15  ;;  %vm8249_vm5 = vmmov %vm8247_vm3 }
 0x6ec   : > { %vm8251_vm10 = vmmov %vm8250_vm7 }
 0x6ed   : > { %vm8252_vm14 = vmmov %vm8250_vm7 }
 0x6ee   : > { %4021 = vrot.lane.b32.xlu1 %v7405_v1, %s5052_s25  ;;  %vm8253_vm15 = vmmov %vm8250_vm7 }
 0x6ef   : > { %4025 = vrot.lane.b32.xlu0 %v7453_v54, %s5052_s25  ;;  %vm8255_vm6 = vmmov %vm8254_vm0 }
 0x6f0   : > { %vm8256_vm2 = vmmov %vm8254_vm0 }
 0x6f1   : > { %vm8257_vm9 = vmmov %vm8254_vm0 }
 0x6f2   : > { %4141 = vrot.lane.b32.xlu1 %v7405_v1, %s8001_s24  ;;  %vm8259_vm1 = vmmov %vm8258_vm13 }
 0x6f3   : > { %3989 = vrot.lane.b32.xlu0 %v3974_v41, %s5057_s13  ;;  %vm8260_vm11 = vmmov %vm8259_vm1 }
 0x6f6   : > { %3985 = vrot.lane.b32.xlu1 %v3972_v62, %s5057_s13 }
 0x6f7   : > { %4067 = vrot.lane.b32.xlu0 %v4052_v52, %s5058_s14 }
 0x6fa   : > { %4063 = vrot.lane.b32.xlu1 %v4050_v4, %s5058_s14 }
 0x6fb   : > { %4109 = vrot.lane.b32.xlu0 %v4094_v37, %s7971_s15 }
 0x6fe   : > { %4105 = vrot.lane.b32.xlu1 %v4092_v45, %s7971_s15 }
 0x6ff   : > { %4027 = vrot.lane.b32.xlu0 %v7417_v60, %s5052_s25 }
 0x702   : > { %4029 = vrot.lane.b32.xlu1 %v4012_v6, %s5052_s25 }
 0x703   : > { %4147 = vrot.lane.b32.xlu0 %v7417_v60, %s8001_s24 }
 0x706   : > { %3993 = vrot.lane.b32.xlu1 %v3976_v27, %s5057_s13 }
 0x707   : > { %3991 = vrot.lane.b32.xlu0 %v3975_v7, %s5057_s13 }
 0x70a   : > { %4149 = vrot.lane.b32.xlu1 %v4012_v6, %s8001_s24 }
 0x70b   : > { %4145 = vrot.lane.b32.xlu0 %v7453_v54, %s8001_s24 }
 0x70e   : > { %4071 = vrot.lane.b32.xlu1 %v4054_v13, %s5058_s14 }
 0x70f   : > { %4185 = vrot.lane.b32.xlu0 %v4171_v38, %s8011_s26 }
 0x712   : > { %4113 = vrot.lane.b32.xlu1 %v4096_v31, %s7971_s15 }
 0x713   : > { %4187 = vrot.lane.b32.xlu0 %v4172_v43, %s8011_s26 }
 0x716   : > { %4183 = vrot.lane.b32.xlu1 %v4170_v26, %s8011_s26 }
 0x717   : > { %4069 = vrot.lane.b32.xlu0 %v4053_v21, %s5058_s14 }
 0x71a   : > { %4181 = vrot.lane.b32.xlu1 %v4169_v15, %s8011_s26 }
 0x71b   : > { %4227 = vrot.lane.b32.xlu0 %v4213_v32, %s8035_s18 }
 0x71e   : > { %4191 = vrot.lane.b32.xlu1 %v4174_v19, %s8011_s26 }
 0x71f   : > { %4111 = vrot.lane.b32.xlu0 %v4095_v9, %s7971_s15 }
 0x722   : > { %4225 = vrot.lane.b32.xlu1 %v4212_v14, %s8035_s18 }
 0x723   : > { %4229 = vrot.lane.b32.xlu0 %v4214_v12, %s8035_s18 }
 0x726   : > { %4223 = vrot.lane.b32.xlu1 %v4211_v58, %s8035_s18 }
 0x727   : > { %4263 = vrot.lane.b32.xlu0 %v7414_v46, %s8045_s16  ;;  %v4544_v46 = vld [vmem:[%s7712_s7 + $0x8] sm:$0xff] }
 0x72a   : > { %4233 = vrot.lane.b32.xlu1 %v4216_v53, %s8035_s18 }
 0x72b   : > { %4305 = vrot.lane.b32.xlu0 %v4291_v40, %s8051_s19 }
 0x72e   : > { %4261 = vrot.lane.b32.xlu1 %v7405_v1, %s8045_s16  ;;  %v4513_v1 = vld [vmem:[%s7711_s6 + $0x10] sm:$0xff] }
 0x72f   : > { %4189 = vrot.lane.b32.xlu0 %v4173_v16, %s8011_s26 }
 0x732   : > { %4303 = vrot.lane.b32.xlu1 %v4290_v39, %s8051_s19 }
 0x733   : > { %4301 = vrot.lane.b32.xlu0 %v4289_v22, %s8051_s19 }
 0x736   : > { %4259 = vrot.lane.b32.xlu1 %v7409_v20, %s8045_s16  ;;  %v4543_v20 = vld [vmem:[%s7712_s7] sm:$0xff] }
 0x737   : > { %4231 = vrot.lane.b32.xlu0 %v4215_v25, %s8035_s18 }
 0x73a   : > { %4267 = vrot.lane.b32.xlu1 %v7417_v60, %s8045_s16 }
 0x73b   : > { %4269 = vrot.lane.b32.xlu0 %v4012_v6, %s8045_s16 }
 0x73e   : > { %4309 = vrot.lane.b32.xlu1 %v4293_v17, %s8051_s19 }
 0x73f   : > { %4311 = vrot.lane.b32.xlu0 %v4294_v2, %s8051_s19 }
 0x742   : > { %4265 = vrot.lane.b32.xlu1 %v7453_v54, %s8045_s16 }
 0x743   : > { %4307 = vrot.lane.b32.xlu0 %v4292_v8, %s8051_s19 }
 0x746   : > { %4517 = vperm.xlu1 %4932, %v4511_v24  }
 0x747   : > { %4522 = vperm.xlu0 %4931, %v4512_v44  }
 0x74a   : > { %4527 = vperm.xlu1 %4932, %v4513_v1  }
 0x74b   : > { %4532 = vperm.xlu0 %4931, %v4514_v55  }
 0x74c   : > { %v4020_v42 = vpop.permute.xlu1 %4019 }
 0x74d   : > { %v4024_v60 = vpop.permute.xlu0 %4023 }
 0x74e   : > { %4549 = vperm.xlu1 %4932, %v4543_v20  }
 0x74f   : > { %4554 = vperm.xlu0 %4931, %v4544_v46  }
 0x750   : > { %v7616_v47 = vpop.permute.xlu1 %4139 }
 0x751   : > { %v7621_v35 = vpop.permute.xlu0 %4143 }
 0x752   : > { %4559 = vperm.xlu1 %4932, %v4545_v48  }
 0x753   : > { %4564 = vperm.xlu0 %4931, %v4546_v23  }
 0x754   : > { %v3984_v11 = vpop.permute.xlu1 %3983 }
 0x755   : > { %v3988_v30 = vpop.permute.xlu0 %3987 }
 0x758   : > { %v4062_v36 = vpop.permute.xlu1 %4061 }
 0x759   : > { %v4066_v18 = vpop.permute.xlu0 %4065 }
 0x75c   : > { %v4104_v10 = vpop.permute.xlu1 %4103 }
 0x75d   : > { %v4108_v61 = vpop.permute.xlu0 %4107 }
 0x760   : > { %v4022_v28 = vpop.permute.xlu1 %4021 }
 0x761   : > { %v4026_v33 = vpop.permute.xlu0 %4025  ;;  %v4032_v0 = vsel %vm8250_vm7, %v4022_v28, %v4024_v60  ;;  %v4031_v29 = vsel %vm8251_vm10, %v4020_v42, %v4022_v28  ;;  %vm8266_vm10 = vcmask 760832  }
 0x764   : > { %v4142_v54 = vpop.permute.xlu1 %4141 }
 0x765   : > { %v3990_v41 = vpop.permute.xlu0 %3989 }
 0x768   : > { %v3986_v3 = vpop.permute.xlu1 %3985 }
 0x769   : > { %v3995_v62 = vsel %vm8246_vm4, %v3984_v11, %v3986_v3  ;;  %v4068_v52 = vpop.permute.xlu0 %4067  ;;  %v3996_v5 = vsel %vm8247_vm3, %v3986_v3, %v3988_v30  ;;  %vm8261_vm4 = vmmov %vm8259_vm1  ;;  %vm8262_vm3 = vcmask 769024  }
 0x76a   : > { %4405 = vmatprep.subr.bf16.mxu0 %v3996_v5  ;;  %v4152_v2 = vsel %vm8262_vm3, %v4142_v54, %v7621_v35  ;;  %vm8265_vm7 = vmmov %vm8262_vm3 }
 0x76b   : > { %4406 = vmatpush1.bf16.msra.mxu0 %v3995_v62 }
 0x76c   : > { %v4064_v4 = vpop.permute.xlu1 %4063 }
 0x76d   : > { %v4110_v37 = vpop.permute.xlu0 %4109  ;;  %v4074_v19 = vsel %vm8254_vm0, %v4064_v4, %v4066_v18  ;;  %v4073_v14 = vsel %vm8255_vm6, %v4062_v36, %v4064_v4  ;;  %vm8269_vm0 = vmmov %vm8266_vm10  ;;  %vm8270_vm6 = vcmask 646144  }
 0x770   : > { %v4106_v59 = vpop.permute.xlu1 %4105 }
 0x771   : > { %v4028_v45 = vpop.permute.xlu0 %4027  ;;  %v4116_v40 = vsel %vm8258_vm13, %v4106_v59, %v4108_v61  ;;  %v4115_v39 = vsel %vm8259_vm1, %v4104_v10, %v4106_v59  ;;  %vm8273_vm13 = vmmov %vm8270_vm6 }
 0x772   : > { %v4033_v56 = vsel %vm8253_vm15, %v4026_v33, %v4028_v45  ;;  %vm8268_vm15 = vmmov %vm8266_vm10 }
 0x773   : > { %vm8274_vm1 = vmmov %vm8270_vm6 }
 0x774   : > { %v4030_v6 = vpop.permute.xlu1 %4029 }
 0x775   : > { %v4148_v27 = vpop.permute.xlu0 %4147  ;;  %v4034_v21 = vsel %vm8252_vm14, %v4028_v45, %v4030_v6  ;;  %vm8267_vm14 = vmmov %vm8266_vm10 }
 0x778   : > { %v3994_v7 = vpop.permute.xlu1 %3993 }
 0x779   : > { %v3992_v13 = vpop.permute.xlu0 %3991 }
 0x77a   : > { %v3997_v34 = vsel %vm8248_vm8, %v3990_v41, %v3992_v13  ;;  %v3998_v38 = vsel %vm8249_vm5, %v3992_v13, %v3994_v7  ;;  %vm8263_vm8 = vmmov %vm8262_vm3 }
 0x77b   : > { %4407 = vmatprep.subr.bf16.mxu0 %v3998_v38  ;;  %v4151_v24 = vsel %vm8263_vm8, %v7616_v47, %v4142_v54  ;;  %vm8264_vm5 = vmmov %vm8262_vm3 }
 0x77c   : > { %v4150_v31 = vpop.permute.xlu1 %4149  ;;  %4408 = vmatpush1.bf16.msra.mxu0 %v3997_v34  ;;  %v5013_v34 = vld [vmem:[%s7710_s5] ss:$12 sps:$4 sm:$0xff]  }
 0x77d   : > { %4409 = vmatprep.subr.bf16.mxu0 %v4032_v0  ;;  %v4146_v43 = vpop.permute.xlu0 %4145  ;;  %v4154_v1 = vsel %vm8264_vm5, %v4148_v27, %v4150_v31  ;;  %v5016_v31 = vld [vmem:[%s7710_s5 + $0x8] ss:$12 sps:$4 sm:$0xff]  }
 0x77e   : > { %v4153_v20 = vsel %vm8265_vm7, %v4146_v43, %v4148_v27  ;;  %v5017_v0 = vld [vmem:[%s7710_s5 + $0x1c] ss:$12 sps:$4 sm:$0xff]   ;;  %v5019_v43 = vld [vmem:[%s7710_s5 + $0x18] ss:$12 sps:$4 sm:$0xff]  }
 0x780   : > { %v4072_v26 = vpop.permute.xlu1 %4071  ;;  %4410 = vmatpush1.bf16.msra.mxu0 %v4031_v29  ;;  %v5020_v29 = vld [vmem:[%s7710_s5 + $0x20] ss:$12 sps:$4 sm:$0xff]  }
 0x781   : > { %4411 = vmatprep.subr.bf16.mxu0 %v4034_v21  ;;  %v4186_v15 = vpop.permute.xlu0 %4185 }
 0x784   : > { %v4114_v32 = vpop.permute.xlu1 %4113  ;;  %4412 = vmatpush1.bf16.msra.mxu0 %v4033_v56 }
 0x785   : > { %4413 = vmatprep.subr.bf16.mxu0 %v4074_v19  ;;  %v4188_v9 = vpop.permute.xlu0 %4187 }
 0x788   : > { %v4184_v49 = vpop.permute.xlu1 %4183  ;;  %4414 = vmatpush1.bf16.msra.mxu0 %v4073_v14 }
 0x789   : > { %v4070_v12 = vpop.permute.xlu0 %4069  ;;  %v4194_v46 = vsel %vm8266_vm10, %v4184_v49, %v4186_v15 }
 0x78a   : > { %v4075_v58 = vsel %vm8256_vm2, %v4068_v52, %v4070_v12  ;;  %v4076_v53 = vsel %vm8257_vm9, %v4070_v12, %v4072_v26  ;;  %vm8271_vm2 = vcmask 629760  }
 0x78b   : > { %4415 = vmatprep.subr.bf16.mxu0 %v4076_v53  ;;  %vm8272_vm9 = vmmov %vm8271_vm2 }
 0x78c   : > { %v4182_v51 = vpop.permute.xlu1 %4181  ;;  %4416 = vmatpush1.bf16.msra.mxu0 %v4075_v58  ;;  %vm8279_vm5 = vmmov %vm8271_vm2 }
 0x78d   : > { %4417 = vmatprep.subr.bf16.mxu0 %v4116_v40  ;;  %v4228_v16 = vpop.permute.xlu0 %4227  ;;  %v4193_v48 = vsel %vm8267_vm14, %v4182_v51, %v4184_v49  ;;  %vm8281_vm10 = vmmov %vm8271_vm2 }
 0x790   : > { %v4192_v57 = vpop.permute.xlu1 %4191  ;;  %4418 = vmatpush1.bf16.msra.mxu0 %v4115_v39 }
 0x791   : > { %v4112_v22 = vpop.permute.xlu0 %4111 }
 0x792   : > { %v4117_v25 = vsel %vm8260_vm11, %v4110_v37, %v4112_v22  ;;  %v4118_v63 = vsel %vm8261_vm4, %v4112_v22, %v4114_v32  ;;  %vm8275_vm11 = vmmov %vm8274_vm1  ;;  %vm8276_vm4 = vcmask 637952  }
 0x793   : > { %4419 = vmatprep.subr.bf16.mxu0 %v4118_v63  ;;  %vm8277_vm3 = vmmov %vm8276_vm4 }
 0x794   : > { %v4226_v17 = vpop.permute.xlu1 %4225  ;;  %4420 = vmatpush1.bf16.msra.mxu0 %v4117_v25  ;;  %vm8278_vm8 = vmmov %vm8277_vm3 }
 0x795   : > { %4421 = vmatprep.subr.bf16.mxu0 %v4152_v2  ;;  %v4230_v8 = vpop.permute.xlu0 %4229  ;;  %v4236_v36 = vsel %vm8270_vm6, %v4226_v17, %v4228_v16  ;;  %vm8280_vm7 = vmmov %vm8277_vm3 }
 0x798   : > { %v4224_v44 = vpop.permute.xlu1 %4223  ;;  %4422 = vmatpush1.bf16.msra.mxu0 %v4151_v24  ;;  %v5021_v24 = vld [vmem:[%s5151_s10] sm:$0xff] }
 0x799   : > { %4423 = vmatprep.subr.bf16.mxu0 %v4154_v1  ;;  %v4264_v55 = vpop.permute.xlu0 %4263  ;;  %v4235_v28 = vsel %vm8273_vm13, %v4224_v44, %v4226_v17 }
 0x79c   : > { %v4234_v42 = vpop.permute.xlu1 %4233  ;;  %4424 = vmatpush1.bf16.msra.mxu0 %v4153_v20  ;;  %v5022_v20 = vld [vmem:[%s5151_s10 + $0x8] sm:$0xff] }
 0x79d   : > { %4425 = vmatprep.subr.bf16.mxu0 %v4194_v46  ;;  %v4306_v60 = vpop.permute.xlu0 %4305 }
 0x7a0   : > { %v4262_v23 = vpop.permute.xlu1 %4261  ;;  %4426 = vmatpush1.bf16.msra.mxu0 %v4193_v48 }
 0x7a1   : > { %v4190_v35 = vpop.permute.xlu0 %4189  ;;  %v4272_v52 = vsel %vm8276_vm4, %v4262_v23, %v4264_v55 }
 0x7a2   : > { %v4195_v47 = vsel %vm8268_vm15, %v4188_v9, %v4190_v35  ;;  %v4196_v11 = vsel %vm8269_vm0, %v4190_v35, %v4192_v57  ;;  %v5023_v35 = vld [vmem:[%s5151_s10 + $0x10] sm:$0xff] }
 0x7a3   : > { %4427 = vmatprep.subr.bf16.mxu0 %v4196_v11 }
 0x7a4   : > { %v4304_v30 = vpop.permute.xlu1 %4303  ;;  %4428 = vmatpush1.bf16.msra.mxu0 %v4195_v47 }
 0x7a5   : > { %4429 = vmatprep.subr.bf16.mxu0 %v4236_v36  ;;  %v4302_v18 = vpop.permute.xlu0 %4301  ;;  %v4314_v10 = vsel %vm8271_vm2, %v4304_v30, %v4306_v60 }
 0x7a6   : > { %v4313_v61 = vsel %vm8272_vm9, %v4302_v18, %v4304_v30  ;;  %4458 = vmatprep.subr.bf16.mxu1 %v4314_v10  ;;  %v5024_v10 = vld [vmem:[%s5151_s10 + $0x18] sm:$0xff] }
 0x7a7   : > { %4459 = vmatpush1.bf16.msra.mxu1 %v4313_v61 }
 0x7a8   : > { %v4260_v33 = vpop.permute.xlu1 %4259  ;;  %4430 = vmatpush1.bf16.msra.mxu0 %v4235_v28 }
 0x7a9   : > { %v4232_v54 = vpop.permute.xlu0 %4231  ;;  %v4271_v4 = vsel %vm8277_vm3, %v4260_v33, %v4262_v23 }
 0x7aa   : > { %v4237_v41 = vsel %vm8274_vm1, %v4230_v8, %v4232_v54  ;;  %v4238_v3 = vsel %vm8275_vm11, %v4232_v54, %v4234_v42 }
 0x7ab   : > { %4431 = vmatprep.subr.bf16.mxu0 %v4238_v3 }
 0x7ac   : > { %v4268_v62 = vpop.permute.xlu1 %4267  ;;  %4432 = vmatpush1.bf16.msra.mxu0 %v4237_v41 }
 0x7ad   : > { %4433 = vmatprep.subr.bf16.mxu0 %v4272_v52  ;;  %v4270_v5 = vpop.permute.xlu0 %4269 }
 0x7ae   : > { %v4274_v59 = vsel %vm8278_vm8, %v4268_v62, %v4270_v5 }
 0x7b0   : > { %v4310_v37 = vpop.permute.xlu1 %4309  ;;  %4434 = vmatpush1.bf16.msra.mxu0 %v4271_v4 }
 0x7b1   : > { %4435 = vmatprep.subr.bf16.mxu0 %v4274_v59  ;;  %v4312_v45 = vpop.permute.xlu0 %4311 }
 0x7b2   : > { %v4316_v6 = vsel %vm8279_vm5, %v4310_v37, %v4312_v45 }
 0x7b3   : > { %4460 = vmatprep.subr.bf16.mxu1 %v4316_v6 }
 0x7b4   : > { %v4266_v27 = vpop.permute.xlu1 %4265 }
 0x7b5   : > { %v4273_v7 = vsel %vm8280_vm7, %v4266_v27, %v4268_v62  ;;  %v4308_v13 = vpop.permute.xlu0 %4307 }
 0x7b6   : > { %v4315_v38 = vsel %vm8281_vm10, %v4308_v13, %v4310_v37  ;;  %4436 = vmatpush1.bf16.msra.mxu0 %v4273_v7 }
 0x7b7   : > { %4461 = vmatpush1.bf16.msra.mxu1 %v4315_v38 }
 0x7b9   : > { %4438 = vmatmul.mubr.bf16.vlgmr.msra.gmra.mrb[16].mxu0 %v5013_v34  ;;  %v5025_v34 = vld [vmem:[%s5151_s10 + $0x20] sm:$0xff] }
 0x7ba   : > { %4733 = vmatmul.mubr.msk.bf16.vlgmr.msra.gmra.mrb[32].mxu1 %vm886_vm12, %v5016_v31  ;;  %4447 = vmatprep.mubr.bf16.mxu0 %v5017_v0  ;;  %v5026_v0 = vld [vmem:[%s5151_s10 + $0x28] sm:$0xff] }
 0x7bb   : > { %4500 = vmatprep.mubr.bf16.mxu1 %v8179_v50 }
 0x7c1   : > { %4448 = vmatmul.mubr.bf16.gmra.mrb[20].mxu0 %v5019_v43 }
 0x7c2   : > { %4734 = vmatmul.mubr.msk.bf16.gmra.mrb[36].mxu1 %vm886_vm12, %v5020_v29 }
 0x7c5   : > { %v4518_v26 = vpop.permute.xlu1 %4517 }
 0x7c6   : > { %v4523_v21 = vpop.permute.xlu0 %4522 }
 0x7c9   : > { %v4528_v15 = vpop.permute.xlu1 %4527 }
 0x7ca   : > { %v4533_v56 = vpop.permute.xlu0 %4532 }
 0x7cd   : > { %v4550_v39 = vpop.permute.xlu1 %4549 }
 0x7ce   : > { %v4555_v17 = vpop.permute.xlu0 %4554 }
 0x7d1   : > { %v4560_v5 = vpop.permute.xlu1 %4559 }
 0x7d2   : > { %v4565_v27 = vpop.permute.xlu0 %4564 }
 0x88c   : > { %v4439_v32 = vpop.f32.mrb[16].mxu0 }
 0x88d   : > { %v4492_v19 = vpop.f32.mrb[32].mxu1  ;;  %v4441_v9 = vpop.f32.mrb[17].mxu0 }
 0x88e   : > { %v4493_v14 = vadd.f32 %v4492_v19, %v4439_v32  ;;  %v4494_v50 = vpop.f32.mrb[33].mxu1  ;;  %v4443_v49 = vpop.f32.mrb[18].mxu0  ;;  %v5028_v19 = vld [vmem:[%s5151_s10 + $0x38] sm:$0xff] }
 0x88f   : > { %v4495_v12 = vadd.f32 %v4494_v50, %v4441_v9  ;;  %v4496_v58 = vpop.f32.mrb[34].mxu1  ;;  %v4445_v53 = vpop.f32.mrb[19].mxu0 }
 0x890   : > { %v4535_v51 = vmul.f32 %v4518_v26, %v4493_v14  ;;  %v4497_v40 = vadd.f32 %v4496_v58, %v4443_v49  ;;  %v4498_v16 = vpop.f32.mrb[35].mxu1 }
 0x891   : > { %v4536_v57 = vmul.f32 %v4518_v26, %v4495_v12  ;;  %v4499_v22 = vadd.f32 %v4498_v16, %v4445_v53 }
 0x892   : > { %v4567_v25 = vadd.f32 %v4550_v39, %v4535_v51  ;;  %v4537_v63 = vmul.f32 %v4523_v21, %v4497_v40 }
 0x893   : > { %v4568_v2 = vadd.f32 %v4550_v39, %v4536_v57  ;;  %v4538_v8 = vmul.f32 %v4523_v21, %v4499_v22  ;;  %v5027_v21 = vld [vmem:[%s5151_s10 + $0x30] sm:$0xff] }
 0x894   : > { %v4575_v44 = vadd.f32 %v5021_v24, %v4567_v25  ;;  %v4569_v1 = vadd.f32 %v4555_v17, %v4537_v63  ;;  %v4449_v55 = vpop.f32.mrb[20].mxu0 }
 0x895   : > { %v4576_v42 = vadd.f32 %v5022_v20, %v4568_v2  ;;  %v4570_v46 = vadd.f32 %v4555_v17, %v4538_v8  ;;  %v4502_v60 = vpop.f32.mrb[36].mxu1  ;;  %v4451_v48 = vpop.f32.mrb[21].mxu0 }
 0x896   : > { %v4583_v23 = vmax.f32 %v4575_v44, 0.0  ;;  %v4577_v47 = vadd.f32 %v5023_v35, %v4569_v1  ;;  %v4503_v11 = vadd.f32 %v4502_v60, %v4449_v55  ;;  %v4504_v30 = vpop.f32.mrb[37].mxu1  ;;  %v4453_v36 = vpop.f32.mrb[22].mxu0 }
 0x897   : > { %v4584_v18 = vmax.f32 %v4576_v42, 0.0  ;;  %v4578_v61 = vadd.f32 %v5024_v10, %v4570_v46  ;;  %v4505_v28 = vadd.f32 %v4504_v30, %v4451_v48  ;;  %v4506_v33 = vpop.f32.mrb[38].mxu1  ;;  %v4455_v54 = vpop.f32.mrb[23].mxu0 }
 0x898   : > { %4591 = vst [vmem:[%s7685_s12] sm:$0xff] %v4583_v23  ;;  %v4585_v41 = vmax.f32 %v4577_v47, 0.0  ;;  %v4539_v3 = vmul.f32 %v4528_v15, %v4503_v11  ;;  %v4507_v62 = vadd.f32 %v4506_v33, %v4453_v36  ;;  %v4508_v52 = vpop.f32.mrb[39].mxu1 }
 0x899   : > { %4592 = vst [vmem:[%s7685_s12 + $0x8] sm:$0xff] %v4584_v18  ;;  %v4586_v4 = vmax.f32 %v4578_v61, 0.0  ;;  %v4540_v37 = vmul.f32 %v4528_v15, %v4505_v28  ;;  %v4509_v59 = vadd.f32 %v4508_v52, %v4455_v54 }
 0x89a   : > { %4593 = vst [vmem:[%s7685_s12 + $0x10] sm:$0xff] %v4585_v41  ;;  %v4571_v45 = vadd.f32 %v4560_v5, %v4539_v3  ;;  %v4541_v6 = vmul.f32 %v4533_v56, %v4507_v62 }
 0x89b   : > { %4594 = vst [vmem:[%s7685_s12 + $0x18] sm:$0xff] %v4586_v4  ;;  %v4572_v7 = vadd.f32 %v4560_v5, %v4540_v37  ;;  %v4542_v13 = vmul.f32 %v4533_v56, %v4509_v59 }
 0x89c   : > { %v4579_v38 = vadd.f32 %v5025_v34, %v4571_v45  ;;  %v4573_v31 = vadd.f32 %v4565_v27, %v4541_v6 }
 0x89d   : > { %v4580_v43 = vadd.f32 %v5026_v0, %v4572_v7  ;;  %v4574_v29 = vadd.f32 %v4565_v27, %v4542_v13 }
 0x89e   : > { %v4587_v26 = vmax.f32 %v4579_v38, 0.0  ;;  %v4581_v15 = vadd.f32 %v5027_v21, %v4573_v31 }
 0x89f   : > { %v4588_v32 = vmax.f32 %v4580_v43, 0.0  ;;  %v4582_v9 = vadd.f32 %v5028_v19, %v4574_v29 }
 0x8a0   : > { %4595 = vst [vmem:[%s7685_s12 + $0x20] sm:$0xff] %v4587_v26  ;;  %v4589_v14 = vmax.f32 %v4581_v15, 0.0 }
 0x8a1   : > { %4596 = vst [vmem:[%s7685_s12 + $0x28] sm:$0xff] %v4588_v32  ;;  %v4590_v50 = vmax.f32 %v4582_v9, 0.0 }
 0x8a2   : > { %4597 = vst [vmem:[%s7685_s12 + $0x30] sm:$0xff] %v4589_v14 }
 0x8a3   : > { %4598 = vst [vmem:[%s7685_s12 + $0x38] sm:$0xff] %v4590_v50 }
 0x8a4 PF: > { %s18_s27 = sadd.s32 1, %s5035_s27  }
 0x8a5   : > { %p15_p4 = scmp.ge.s32.totalorder %s18_s27, 4  }
 0x8a7   :  { %17 = sbr.rel (!%p15_p4) target bundleno = 1 (0x1), region = 82 }

</bundles_post_ra>
